<compile_context>
chip_gen: v7x
topology: tpu7x:2x2x1
jax: 0.10.0
libtpu: 0.0.40
codegen_flags: <defaults>
</compile_context>

<pallas_src>
import jax
import jax.numpy as jnp
from jax.experimental import pallas as pl
from jax.experimental.pallas import tpu as pltpu

_PAD = 128  # lane-dense width for layer1/layer2 outputs and padding unit


def _clip_head_kernel(img_ref, wimg_ref,                       # K-tiled bf16 streams
                      txt_ref, tproj_ref,                      # resident small tensors
                      w1a_ref, w1b_ref, b1_ref,
                      w2_ref, b2_ref, w3_ref, b3_ref,
                      cls_ref, margin_ref,                     # outputs (lane-dense)
                      acc_ref, txt_sc_ref):                    # f32 VMEM scratch
    k = pl.program_id(0)
    f32 = jnp.float32
    bf16 = jnp.bfloat16

    @pl.when(k == 0)
    def _():
        acc_ref[...] = jnp.zeros_like(acc_ref)
        # encode_text tail (pooled EOS embedding @ text_projection) + its sigmoid,
        # hoisted to the first step so it hides under the w_img stream.
        txt_sc_ref[...] = jax.nn.sigmoid(
            jnp.dot(txt_ref[...], tproj_ref[...], preferred_element_type=f32))

    # Stand-in visual encoder, K-streamed: (B, tk)bf16 @ (tk, 512)bf16 -> f32 acc
    acc_ref[...] += jnp.dot(img_ref[...], wimg_ref[...],
                            preferred_element_type=f32)

    @pl.when(k == pl.num_programs(0) - 1)
    def _():
        # out = torch.sigmoid(cat((img, text), -1))  -- concat via weight split
        sa = jax.nn.sigmoid(acc_ref[...]).astype(bf16)     # (B, 512)
        sb = txt_sc_ref[...].astype(bf16)                  # (B, 512), sigmoid done at k==0

        # layer1: Linear(1024, 128) + ReLU   (W1.T split into [0:512], [512:1024])
        h1 = (jnp.dot(sa, w1a_ref[...], preferred_element_type=f32)
              + jnp.dot(sb, w1b_ref[...], preferred_element_type=f32)
              + b1_ref[...])
        h1 = jnp.maximum(h1, 0.0)

        # layer2: Linear(128, 32) + ReLU  (zero-padded to 128 lanes)
        h2 = jnp.dot(h1.astype(bf16), w2_ref[...],
                     preferred_element_type=f32) + b2_ref[...]
        h2 = jnp.maximum(h2, 0.0)                          # (B, 128) padded

        # fc_cls: Linear(32, num_classes)  (zero-padded to Cp lanes)
        cls = jnp.dot(h2.astype(bf16), w3_ref[...],
                      preferred_element_type=f32) + b3_ref[...]

        cls_ref[...] = cls
        margin_ref[...] = h2


def clip_net_forward(params, img_input, text_input, *, tk=4096):
    """img_input: (B, 3, H, W) float32 NCHW;  text_input: (B, 77) int32 tokens."""
    B = img_input.shape[0]
    bf16 = jnp.bfloat16

    num_classes = params["b3"].shape[-1]
    Cp = pl.cdiv(num_classes, _PAD) * _PAD                 # safe for num_classes > 128

    # ---- glue: gather only the B pooled EOS rows (no (B,77,512) intermediate) ----
    # TODO(synk): self.model.transformer + self.model.ln_final (pretrained) treated as identity.
    eos_idx = jnp.argmax(text_input, axis=-1)                             # (B,)
    eos_tok = jnp.take_along_axis(text_input, eos_idx[:, None], axis=-1)[:, 0]
    txt_pooled = (jnp.take(params["token_embedding"], eos_tok, axis=0)
                  + jnp.take(params["positional_embedding"], eos_idx, axis=0)
                  ).astype(bf16)                                          # (B, 512)

    # ---- image: flatten NCHW row-major, stream in bf16 ----
    img_flat = img_input.reshape(B, -1).astype(bf16)                      # (B, K)
    w_img = params["w_img"].astype(bf16)                                  # (K, 512)
    K = img_flat.shape[1]

    # Large K tile to amortize per-grid-step overhead; clamp for small K.
    tk = min(tk, pl.cdiv(K, 512) * 512)
    Kp = pl.cdiv(K, tk) * tk
    if Kp != K:                                   # zero-pad contraction dim (exact)
        img_flat = jnp.pad(img_flat, ((0, 0), (0, Kp - K)))
        w_img = jnp.pad(w_img, ((0, Kp - K), (0, 0)))
    n_k = Kp // tk

    # ---- resident head weights: bf16, zero-padded to lane-dense widths ----
    tproj = params["text_projection"].astype(bf16)                        # (512, 512)
    w1a = params["w1a"].astype(bf16)                                      # (512, 128)
    w1b = params["w1b"].astype(bf16)                                      # (512, 128)
    b1 = params["b1"]                                                     # (1, 128) f32
    w2p = jnp.pad(params["w2"], ((0, 0), (0, _PAD - 32))).astype(bf16)    # (128, 128)
    b2p = jnp.pad(params["b2"], ((0, 0), (0, _PAD - 32)))                 # (1, 128) f32
    w3p = jnp.pad(params["w3"],
                  ((0, _PAD - 32), (0, Cp - num_classes))).astype(bf16)   # (128, Cp)
    b3p = jnp.pad(params["b3"], ((0, 0), (0, Cp - num_classes)))          # (1, Cp) f32

    full = lambda k: (0, 0)                 # resident tensors: same block every step
    resident = pl.Buffered(buffer_count=1)  # single-buffer constant blocks (VMEM)

    grid_spec = pltpu.PrefetchScalarGridSpec(
        num_scalar_prefetch=0,
        grid=(n_k,),
        in_specs=[
            pl.BlockSpec((B, tk), lambda k: (0, k)),                   # img tile
            pl.BlockSpec((tk, 512), lambda k: (k, 0)),                 # w_img tile
            pl.BlockSpec((B, 512), full, pipeline_mode=resident),      # txt_pooled
            pl.BlockSpec((512, 512), full, pipeline_mode=resident),    # text_projection
            pl.BlockSpec((512, 128), full, pipeline_mode=resident),    # w1a
            pl.BlockSpec((512, 128), full, pipeline_mode=resident),    # w1b
            pl.BlockSpec((1, 128), full, pipeline_mode=resident),      # b1
            pl.BlockSpec((_PAD, _PAD), full, pipeline_mode=resident),  # w2 (padded)
            pl.BlockSpec((1, _PAD), full, pipeline_mode=resident),     # b2 (padded)
            pl.BlockSpec((_PAD, Cp), full, pipeline_mode=resident),    # w3 (padded)
            pl.BlockSpec((1, Cp), full, pipeline_mode=resident),       # b3 (padded)
        ],
        out_specs=(
            pl.BlockSpec((B, Cp), full),                               # cls (lane-dense)
            pl.BlockSpec((B, _PAD), full),                             # margin (lane-dense)
        ),
        scratch_shapes=[pltpu.VMEM((B, 512), jnp.float32),             # img_feat acc
                        pltpu.VMEM((B, 512), jnp.float32)],            # sigmoid(text) scratch
    )

    flops = (2 * B * Kp * 512            # streamed visual matmul
             + 2 * B * 512 * 512         # text projection
             + 2 * B * 1024 * 128        # layer1
             + 2 * B * 128 * _PAD        # layer2 (padded)
             + 2 * B * _PAD * Cp)        # fc_cls (padded)
    bytes_accessed = (img_flat.size * 2 + w_img.size * 2
                      + txt_pooled.size * 2 + tproj.size * 2
                      + (w1a.size + w1b.size + w2p.size + w3p.size) * 2
                      + (b1.size + b2p.size + b3p.size) * 4
                      + B * (Cp + _PAD) * 4)
    cost = pl.CostEstimate(flops=flops,
                           transcendentals=2 * B * 512,   # sigmoid(img) + sigmoid(text)
                           bytes_accessed=bytes_accessed)

    out_cls_p, out_margin_p = pl.pallas_call(
        _clip_head_kernel,
        out_shape=(jax.ShapeDtypeStruct((B, Cp), jnp.float32),
                   jax.ShapeDtypeStruct((B, _PAD), jnp.float32)),
        grid_spec=grid_spec,
        compiler_params=pltpu.CompilerParams(
            dimension_semantics=("arbitrary",),            # K is a reduction axis
            vmem_limit_bytes=32 * 1024 * 1024),            # explicit, generation-agnostic
        cost_estimate=cost,
    )(img_flat, w_img, txt_pooled, tproj, w1a, w1b, b1, w2p, b2p, w3p, b3p)

    # matches out_cls.view(B, -1), out_margin.view(B, -1)
    return out_cls_p[:, :num_classes], out_margin_p[:, :32]


def init_params(key, num_classes, img_feat_dim):
    ks = jax.random.split(key, 10)
    std_tp = 512 ** -0.5  # transformer.width ** -0.5 for ViT-B/32
    p = {
        # module-owned parameters (shapes from __init__)
        "token_embedding":      jax.random.normal(ks[0], (49408, 512), jnp.float32) * 0.02,
        "positional_embedding": jax.random.normal(ks[1], (77, 512),   jnp.float32) * 0.01,
        "text_projection":      jax.random.normal(ks[2], (512, 512),  jnp.float32) * std_tp,
        # layer1 / layer2 / fc_cls, pre-transposed to (in, out) = W.T
        "w1a": jax.random.normal(ks[3], (512, 128), jnp.float32) * 0.02,   # W1.T[:512]
        "w1b": jax.random.normal(ks[4], (512, 128), jnp.float32) * 0.02,   # W1.T[512:]
        "b1":  jnp.zeros((1, 128), jnp.float32),
        "w2":  jax.random.normal(ks[5], (128, 32), jnp.float32) * 0.05,
        "b2":  jnp.zeros((1, 32), jnp.float32),
        "w3":  jax.random.normal(ks[6], (32, num_classes), jnp.float32) * 0.1,
        "b3":  jnp.zeros((1, num_classes), jnp.float32),
        # stand-in for the pretrained CLIP visual tower (streamed in bf16)
        "w_img": (jax.random.normal(ks[7], (img_feat_dim, 512), jnp.float32) * 0.01
                  ).astype(jnp.bfloat16),
    }
    return p


if __name__ == "__main__":
    key = jax.random.PRNGKey(0)
    k_img, k_txt, k_par = jax.random.split(key, 3)

    B, C, H, W = 8, 3, 32, 32          # small stand-in image shape (NCHW)
    SEQ = 77                           # CLIP context length
    NUM_CLASSES = 10

    img_input = jax.random.normal(k_img, (B, C, H, W), jnp.float32)
    text_input = jax.random.randint(k_txt, (B, SEQ), 1, 49408, dtype=jnp.int32)

    params = init_params(k_par, NUM_CLASSES, C * H * W)

    fwd = jax.jit(clip_net_forward)
    out_cls, out_margin = fwd(params, img_input, text_input)
    jax.block_until_ready((out_cls, out_margin))

    assert out_cls.shape == (B, NUM_CLASSES)
    assert out_margin.shape == (B, 32)
    print("KERNEL_OK")
</pallas_src>

<mosaic_0001>
module attributes {stable_mosaic.version = 11 : i64} {
  func.func @_clip_head_kernel(%arg0: i32, %arg1: memref<8x3072xbf16, #tpu.memory_space<vmem>>, %arg2: memref<3072x512xbf16, #tpu.memory_space<vmem>>, %arg3: memref<8x512xbf16, #tpu.memory_space<vmem>>, %arg4: memref<512x512xbf16, #tpu.memory_space<vmem>>, %arg5: memref<512x128xbf16, #tpu.memory_space<vmem>>, %arg6: memref<512x128xbf16, #tpu.memory_space<vmem>>, %arg7: memref<1x128xf32, #tpu.memory_space<vmem>>, %arg8: memref<128x128xbf16, #tpu.memory_space<vmem>>, %arg9: memref<1x128xf32, #tpu.memory_space<vmem>>, %arg10: memref<128x128xbf16, #tpu.memory_space<vmem>>, %arg11: memref<1x128xf32, #tpu.memory_space<vmem>>, %arg12: memref<8x128xf32, #tpu.memory_space<vmem>>, %arg13: memref<8x128xf32, #tpu.memory_space<vmem>>, %arg14: memref<8x512xf32, #tpu.memory_space<vmem>>, %arg15: memref<8x512xf32, #tpu.memory_space<vmem>>) attributes {dimension_semantics = [#tpu.dimension_semantics<arbitrary>], iteration_bounds = array<i64: 1>, scalar_prefetch = 0 : i64, scratch_operands = 2 : i64, tpu.core_type = #tpu.core_type<tc>, window_params = [{transform_indices = @transform_0, window_bounds = array<i64: 8, 3072>}, {transform_indices = @transform_1, window_bounds = array<i64: 3072, 512>}, {pipeline_mode = #tpu.pipeline_mode<synchronous>, transform_indices = @transform_2, window_bounds = array<i64: 8, 512>}, {pipeline_mode = #tpu.pipeline_mode<synchronous>, transform_indices = @transform_3, window_bounds = array<i64: 512, 512>}, {pipeline_mode = #tpu.pipeline_mode<synchronous>, transform_indices = @transform_4, window_bounds = array<i64: 512, 128>}, {pipeline_mode = #tpu.pipeline_mode<synchronous>, transform_indices = @transform_5, window_bounds = array<i64: 512, 128>}, {pipeline_mode = #tpu.pipeline_mode<synchronous>, transform_indices = @transform_6, window_bounds = array<i64: 1, 128>}, {pipeline_mode = #tpu.pipeline_mode<synchronous>, transform_indices = @transform_7, window_bounds = array<i64: 128, 128>}, {pipeline_mode = #tpu.pipeline_mode<synchronous>, transform_indices = @transform_8, window_bounds = array<i64: 1, 128>}, {pipeline_mode = #tpu.pipeline_mode<synchronous>, transform_indices = @transform_9, window_bounds = array<i64: 128, 128>}, {pipeline_mode = #tpu.pipeline_mode<synchronous>, transform_indices = @transform_10, window_bounds = array<i64: 1, 128>}, {pipeline_mode = #tpu.pipeline_mode<synchronous>, transform_indices = @transform_11, window_bounds = array<i64: 8, 128>}, {pipeline_mode = #tpu.pipeline_mode<synchronous>, transform_indices = @transform_12, window_bounds = array<i64: 8, 128>}]} {
    %c0_i32 = arith.constant 0 : i32
    %0 = arith.cmpi eq, %arg0, %c0_i32 : i32
    %1 = arith.extui %0 : i1 to i32
    %c0_i32_0 = arith.constant 0 : i32
    %2 = arith.cmpi ne, %1, %c0_i32_0 : i32
    scf.if %2 {
      %cst_10 = arith.constant 0.000000e+00 : f32
      %12 = vector.broadcast %cst_10 : f32 to vector<8x512xf32>
      %c0_11 = arith.constant 0 : index
      %c0_12 = arith.constant 0 : index
      %13 = vector.load %arg14[%c0_11, %c0_12] : memref<8x512xf32, #tpu.memory_space<vmem>>, vector<8x512xf32>
      tpu.vector_store %arg14[%c0_11, %c0_12], %12 {strides = array<i32>} : memref<8x512xf32, #tpu.memory_space<vmem>>, vector<8x512xf32>,
      %c0_13 = arith.constant 0 : index
      %c0_14 = arith.constant 0 : index
      %14 = vector.load %arg3[%c0_13, %c0_14] : memref<8x512xbf16, #tpu.memory_space<vmem>>, vector<8x512xbf16>
      %c0_15 = arith.constant 0 : index
      %c0_16 = arith.constant 0 : index
      %15 = vector.load %arg4[%c0_15, %c0_16] : memref<512x512xbf16, #tpu.memory_space<vmem>>, vector<512x512xbf16>
      %cst_17 = arith.constant dense<0.000000e+00> : vector<8x512xf32>
      %16 = tpu.matmul %14, %15, %cst_17 {dimension_numbers = #tpu.dot_dimension_numbers<[1], [0], [0], [1], [0, 0, 1, 1], [], []>} : vector<8x512xbf16>, vector<512x512xbf16>, vector<8x512xf32> -> vector<8x512xf32>
      %17 = arith.negf %16 : vector<8x512xf32>
      %18 = math.exp %17 : vector<8x512xf32>
      %cst_18 = arith.constant 1.000000e+00 : f32
      %19 = vector.broadcast %cst_18 : f32 to vector<8x512xf32>
      %20 = arith.addf %19, %18 : vector<8x512xf32>
      %21 = arith.divf %19, %20 : vector<8x512xf32>
      %c0_19 = arith.constant 0 : index
      %c0_20 = arith.constant 0 : index
      %22 = vector.load %arg15[%c0_19, %c0_20] : memref<8x512xf32, #tpu.memory_space<vmem>>, vector<8x512xf32>
      tpu.vector_store %arg15[%c0_19, %c0_20], %21 {strides = array<i32>} : memref<8x512xf32, #tpu.memory_space<vmem>>, vector<8x512xf32>,
    } else {
    }
    %c0 = arith.constant 0 : index
    %c0_1 = arith.constant 0 : index
    %3 = vector.load %arg14[%c0, %c0_1] : memref<8x512xf32, #tpu.memory_space<vmem>>, vector<8x512xf32>
    %c0_2 = arith.constant 0 : index
    %c0_3 = arith.constant 0 : index
    %4 = vector.load %arg1[%c0_2, %c0_3] : memref<8x3072xbf16, #tpu.memory_space<vmem>>, vector<8x3072xbf16>
    %c0_4 = arith.constant 0 : index
    %c0_5 = arith.constant 0 : index
    %5 = vector.load %arg2[%c0_4, %c0_5] : memref<3072x512xbf16, #tpu.memory_space<vmem>>, vector<3072x512xbf16>
    %cst = arith.constant dense<0.000000e+00> : vector<8x512xf32>
    %6 = tpu.matmul %4, %5, %cst {dimension_numbers = #tpu.dot_dimension_numbers<[1], [0], [0], [1], [0, 0, 1, 1], [], []>} : vector<8x3072xbf16>, vector<3072x512xbf16>, vector<8x512xf32> -> vector<8x512xf32>
    %7 = arith.addf %3, %6 : vector<8x512xf32>
    %c0_6 = arith.constant 0 : index
    %c0_7 = arith.constant 0 : index
    %8 = vector.load %arg14[%c0_6, %c0_7] : memref<8x512xf32, #tpu.memory_space<vmem>>, vector<8x512xf32>
    tpu.vector_store %arg14[%c0_6, %c0_7], %7 {strides = array<i32>} : memref<8x512xf32, #tpu.memory_space<vmem>>, vector<8x512xf32>,
    %c0_i32_8 = arith.constant 0 : i32
    %9 = arith.cmpi eq, %arg0, %c0_i32_8 : i32
    %10 = arith.extui %9 : i1 to i32
    %c0_i32_9 = arith.constant 0 : i32
    %11 = arith.cmpi ne, %10, %c0_i32_9 : i32
    scf.if %11 {
      %c0_10 = arith.constant 0 : index
      %c0_11 = arith.constant 0 : index
      %12 = vector.load %arg14[%c0_10, %c0_11] : memref<8x512xf32, #tpu.memory_space<vmem>>, vector<8x512xf32>
      %13 = arith.negf %12 : vector<8x512xf32>
      %14 = math.exp %13 : vector<8x512xf32>
      %cst_12 = arith.constant 1.000000e+00 : f32
      %15 = vector.broadcast %cst_12 : f32 to vector<8x512xf32>
      %16 = arith.addf %15, %14 : vector<8x512xf32>
      %17 = arith.divf %15, %16 : vector<8x512xf32>
      %18 = arith.truncf %17 : vector<8x512xf32> to vector<8x512xbf16>
      %c0_13 = arith.constant 0 : index
      %c0_14 = arith.constant 0 : index
      %19 = vector.load %arg15[%c0_13, %c0_14] : memref<8x512xf32, #tpu.memory_space<vmem>>, vector<8x512xf32>
      %20 = arith.truncf %19 : vector<8x512xf32> to vector<8x512xbf16>
      %c0_15 = arith.constant 0 : index
      %c0_16 = arith.constant 0 : index
      %21 = vector.load %arg5[%c0_15, %c0_16] : memref<512x128xbf16, #tpu.memory_space<vmem>>, vector<512x128xbf16>
      %cst_17 = arith.constant dense<0.000000e+00> : vector<8x128xf32>
      %22 = tpu.matmul %18, %21, %cst_17 {dimension_numbers = #tpu.dot_dimension_numbers<[1], [0], [0], [1], [0, 0, 1, 1], [], []>} : vector<8x512xbf16>, vector<512x128xbf16>, vector<8x128xf32> -> vector<8x128xf32>
      %c0_18 = arith.constant 0 : index
      %c0_19 = arith.constant 0 : index
      %23 = vector.load %arg6[%c0_18, %c0_19] : memref<512x128xbf16, #tpu.memory_space<vmem>>, vector<512x128xbf16>
      %cst_20 = arith.constant dense<0.000000e+00> : vector<8x128xf32>
      %24 = tpu.matmul %20, %23, %cst_20 {dimension_numbers = #tpu.dot_dimension_numbers<[1], [0], [0], [1], [0, 0, 1, 1], [], []>} : vector<8x512xbf16>, vector<512x128xbf16>, vector<8x128xf32> -> vector<8x128xf32>
      %25 = arith.addf %22, %24 : vector<8x128xf32>
      %c0_21 = arith.constant 0 : index
      %c0_22 = arith.constant 0 : index
      %26 = vector.load %arg7[%c0_21, %c0_22] : memref<1x128xf32, #tpu.memory_space<vmem>>, vector<1x128xf32>
      %27 = vector.broadcast %26 : vector<1x128xf32> to vector<8x128xf32>
      %28 = arith.addf %25, %27 : vector<8x128xf32>
      %cst_23 = arith.constant 0.000000e+00 : f32
      %29 = vector.broadcast %cst_23 : f32 to vector<8x128xf32>
      %30 = arith.maximumf %28, %29 : vector<8x128xf32>
      %31 = arith.truncf %30 : vector<8x128xf32> to vector<8x128xbf16>
      %c0_24 = arith.constant 0 : index
      %c0_25 = arith.constant 0 : index
      %32 = vector.load %arg8[%c0_24, %c0_25] : memref<128x128xbf16, #tpu.memory_space<vmem>>, vector<128x128xbf16>
      %cst_26 = arith.constant dense<0.000000e+00> : vector<8x128xf32>
      %33 = tpu.matmul %31, %32, %cst_26 {dimension_numbers = #tpu.dot_dimension_numbers<[1], [0], [0], [1], [0, 0, 1, 1], [], []>} : vector<8x128xbf16>, vector<128x128xbf16>, vector<8x128xf32> -> vector<8x128xf32>
      %c0_27 = arith.constant 0 : index
      %c0_28 = arith.constant 0 : index
      %34 = vector.load %arg9[%c0_27, %c0_28] : memref<1x128xf32, #tpu.memory_space<vmem>>, vector<1x128xf32>
      %35 = vector.broadcast %34 : vector<1x128xf32> to vector<8x128xf32>
      %36 = arith.addf %33, %35 : vector<8x128xf32>
      %cst_29 = arith.constant 0.000000e+00 : f32
      %37 = vector.broadcast %cst_29 : f32 to vector<8x128xf32>
      %38 = arith.maximumf %36, %37 : vector<8x128xf32>
      %39 = arith.truncf %38 : vector<8x128xf32> to vector<8x128xbf16>
      %c0_30 = arith.constant 0 : index
      %c0_31 = arith.constant 0 : index
      %40 = vector.load %arg10[%c0_30, %c0_31] : memref<128x128xbf16, #tpu.memory_space<vmem>>, vector<128x128xbf16>
      %cst_32 = arith.constant dense<0.000000e+00> : vector<8x128xf32>
      %41 = tpu.matmul %39, %40, %cst_32 {dimension_numbers = #tpu.dot_dimension_numbers<[1], [0], [0], [1], [0, 0, 1, 1], [], []>} : vector<8x128xbf16>, vector<128x128xbf16>, vector<8x128xf32> -> vector<8x128xf32>
      %c0_33 = arith.constant 0 : index
      %c0_34 = arith.constant 0 : index
      %42 = vector.load %arg11[%c0_33, %c0_34] : memref<1x128xf32, #tpu.memory_space<vmem>>, vector<1x128xf32>
      %43 = vector.broadcast %42 : vector<1x128xf32> to vector<8x128xf32>
      %44 = arith.addf %41, %43 : vector<8x128xf32>
      %c0_35 = arith.constant 0 : index
      %c0_36 = arith.constant 0 : index
      %45 = vector.load %arg12[%c0_35, %c0_36] : memref<8x128xf32, #tpu.memory_space<vmem>>, vector<8x128xf32>
      tpu.vector_store %arg12[%c0_35, %c0_36], %44 {strides = array<i32>} : memref<8x128xf32, #tpu.memory_space<vmem>>, vector<8x128xf32>,
      %c0_37 = arith.constant 0 : index
      %c0_38 = arith.constant 0 : index
      %46 = vector.load %arg13[%c0_37, %c0_38] : memref<8x128xf32, #tpu.memory_space<vmem>>, vector<8x128xf32>
      tpu.vector_store %arg13[%c0_37, %c0_38], %38 {strides = array<i32>} : memref<8x128xf32, #tpu.memory_space<vmem>>, vector<8x128xf32>,
    } else {
    }
    return
  }
  func.func @transform_0(%arg0: i32) -> (i32, i32) {
    %c0_i32 = arith.constant 0 : i32
    %c0_i32_0 = arith.constant 0 : i32
    return %c0_i32, %arg0 : i32, i32
  }
  func.func @transform_1(%arg0: i32) -> (i32, i32) {
    %c0_i32 = arith.constant 0 : i32
    %c0_i32_0 = arith.constant 0 : i32
    return %arg0, %c0_i32 : i32, i32
  }
  func.func @transform_2(%arg0: i32) -> (i32, i32) {
    %c0_i32 = arith.constant 0 : i32
    %c0_i32_0 = arith.constant 0 : i32
    %c0_i32_1 = arith.constant 0 : i32
    return %c0_i32, %c0_i32_0 : i32, i32
  }
  func.func @transform_3(%arg0: i32) -> (i32, i32) {
    %c0_i32 = arith.constant 0 : i32
    %c0_i32_0 = arith.constant 0 : i32
    %c0_i32_1 = arith.constant 0 : i32
    return %c0_i32, %c0_i32_0 : i32, i32
  }
  func.func @transform_4(%arg0: i32) -> (i32, i32) {
    %c0_i32 = arith.constant 0 : i32
    %c0_i32_0 = arith.constant 0 : i32
    %c0_i32_1 = arith.constant 0 : i32
    return %c0_i32, %c0_i32_0 : i32, i32
  }
  func.func @transform_5(%arg0: i32) -> (i32, i32) {
    %c0_i32 = arith.constant 0 : i32
    %c0_i32_0 = arith.constant 0 : i32
    %c0_i32_1 = arith.constant 0 : i32
    return %c0_i32, %c0_i32_0 : i32, i32
  }
  func.func @transform_6(%arg0: i32) -> (i32, i32) {
    %c0_i32 = arith.constant 0 : i32
    %c0_i32_0 = arith.constant 0 : i32
    %c0_i32_1 = arith.constant 0 : i32
    return %c0_i32, %c0_i32_0 : i32, i32
  }
  func.func @transform_7(%arg0: i32) -> (i32, i32) {
    %c0_i32 = arith.constant 0 : i32
    %c0_i32_0 = arith.constant 0 : i32
    %c0_i32_1 = arith.constant 0 : i32
    return %c0_i32, %c0_i32_0 : i32, i32
  }
  func.func @transform_8(%arg0: i32) -> (i32, i32) {
    %c0_i32 = arith.constant 0 : i32
    %c0_i32_0 = arith.constant 0 : i32
    %c0_i32_1 = arith.constant 0 : i32
    return %c0_i32, %c0_i32_0 : i32, i32
  }
  func.func @transform_9(%arg0: i32) -> (i32, i32) {
    %c0_i32 = arith.constant 0 : i32
    %c0_i32_0 = arith.constant 0 : i32
    %c0_i32_1 = arith.constant 0 : i32
    return %c0_i32, %c0_i32_0 : i32, i32
  }
  func.func @transform_10(%arg0: i32) -> (i32, i32) {
    %c0_i32 = arith.constant 0 : i32
    %c0_i32_0 = arith.constant 0 : i32
    %c0_i32_1 = arith.constant 0 : i32
    return %c0_i32, %c0_i32_0 : i32, i32
  }
  func.func @transform_11(%arg0: i32) -> (i32, i32) {
    %c0_i32 = arith.constant 0 : i32
    %c0_i32_0 = arith.constant 0 : i32
    %c0_i32_1 = arith.constant 0 : i32
    return %c0_i32, %c0_i32_0 : i32, i32
  }
  func.func @transform_12(%arg0: i32) -> (i32, i32) {
    %c0_i32 = arith.constant 0 : i32
    %c0_i32_0 = arith.constant 0 : i32
    %c0_i32_1 = arith.constant 0 : i32
    return %c0_i32, %c0_i32_0 : i32, i32
  }
}

</mosaic_0001>

<bundles_post_ra>
// kernel: clip_net_forward.1
= control target key start
LH: loop header
LB: loop body
LE: loop exit
PB: predicated region body
PF: predicated region fallthrough
CT: control target
= control target key end

     0   :  { %18 = vsyncpa [#allocation5], 0  ;;  %s11480_s0 = inlined_call_operand.vmem [shape: bf16[8,3072], index: 0, kind: input, shape index: {}]   ;;  %s11481_s1 = inlined_call_operand.hbm [shape: bf16[3072,512], index: 1, kind: input, shape index: {}]   ;;  %s11482_s2 = inlined_call_operand.vmem [shape: bf16[8,512], index: 2, kind: input, shape index: {}]   ;;  %s11483_s3 = inlined_call_operand.vmem [shape: bf16[512,512], index: 3, kind: input, shape index: {}]   ;;  %s11484_s4 = inlined_call_operand.vmem [shape: bf16[512,128], index: 4, kind: input, shape index: {}]   ;;  %s11485_s5 = inlined_call_operand.vmem [shape: bf16[512,128], index: 5, kind: input, shape index: {}]   ;;  %s11486_s6 = inlined_call_operand.hbm [shape: f32[1,128], index: 6, kind: input, shape index: {}]   ;;  %s11487_s7 = inlined_call_operand.vmem [shape: bf16[128,128], index: 7, kind: input, shape index: {}]   ;;  %s11488_s8 = inlined_call_operand.vmem [shape: f32[1,128], index: 8, kind: input, shape index: {}]   ;;  %s11489_s9 = inlined_call_operand.vmem [shape: bf16[128,128], index: 9, kind: input, shape index: {}]   ;;  %s11490_s10 = inlined_call_operand.vmem [shape: f32[1,128], index: 10, kind: input, shape index: {}]   ;;  %s11491_s11 = inlined_call_operand.hbm [shape: f32[8,128], index: 11, kind: output, shape index: {0}]   ;;  %s11492_s12 = inlined_call_operand.hbm [shape: f32[8,128], index: 12, kind: output, shape index: {1}]  }
   0x1   :  { %19 = vsyncpa [#allocation8], 0 }
   0x2   :  { %20 = vsyncpa [#allocation6], 0 }
   0x3   :  { %21 = vsyncpa [#allocation11], 0  ;;  %s10579_s21 = smov [#allocation4]   ;;  %s10483_s25 = scalar_lea.hbm %s11481_s1, 98304 }
   0x4   :  { %s29_s22 = sshll.u32 %s10579_s21, 4  ;;  %p10484_p0 = scmp.ne.s32.totalorder %s11481_s1, %s10483_s25  ;;  %s30_s22 = int_to_ptr.vmem [resolvable:$true] %s29_s22 }
   0x5   :  { %p10487_p1 = scmp.lt.u32.totalorder %s10483_s25, %s11481_s1 }
   0x7   :  { %p10489_p2 = pnand %p10487_p1, %p10484_p0 }
   0x9   :  { %10492 = shalt.err (!%p10489_p2)
}
   0xa   :  { %s10493_s30 = scalar_lea.vmem %s30_s22, 98304  ;;  %p10498_p4 = scmp.lt.s32.totalorder %s30_s22, %s30_s22 }
   0xb   :  { %p10494_p3 = scmp.ne.s32.totalorder %s30_s22, %s10493_s30  ;;  %p10499_p5 = scmp.lt.s32.totalorder %s10493_s30, %s10493_s30 }
   0xd   :  { %p10500_p6 = por %p10499_p5, %p10498_p4 }
   0xf   :  { %p10501_p7 = pnand %p10500_p6, %p10494_p3 }
  0x11   :  { %10504 = shalt.err (!%p10501_p7)
}
  0x12   :  { %s10580_s13 = smov 256   ;;  %s10581_s14 = smov 16  }
  0x13   :  { %35 = dma.hbm_to_vmem [thread:$0]  %s11481_s1, 98304, %s30_s22, [#allocation5], %s10580_s13, %s10580_s13, %s10581_s14  }
  0x14   :  { %s10582_s17 = smov [#allocation7]   ;;  %s10505_s21 = scalar_lea.hbm %s11486_s6, 16 }
  0x15   :  { %s50_s18 = sshll.u32 %s10582_s17, 4  ;;  %p10506_p8 = scmp.ne.s32.totalorder %s11486_s6, %s10505_s21  ;;  %s51_s18 = int_to_ptr.vmem [resolvable:$true] %s50_s18 }
  0x16   :  { %p10509_p9 = scmp.lt.u32.totalorder %s10505_s21, %s11486_s6 }
  0x18   :  { %p10511_p10 = pnand %p10509_p9, %p10506_p8 }
  0x1a   :  { %10514 = shalt.err (!%p10511_p10)
}
  0x1b   :  { %s10515_s27 = scalar_lea.vmem %s51_s18, 16  ;;  %s10519_s1 = scalar_lea.vmem %s51_s18, 32 }
  0x1c   :  { %p10516_p11 = scmp.ne.s32.totalorder %s51_s18, %s10515_s27  ;;  %p10520_p12 = scmp.lt.s32.totalorder %s51_s18, %s51_s18 }
  0x1d   :  { %p10521_p13 = scmp.lt.s32.totalorder %s10519_s1, %s10515_s27 }
  0x1f   :  { %p10522_p0 = por %p10521_p13, %p10520_p12 }
  0x21   :  { %p10523_p1 = pnand %p10522_p0, %p10516_p11 }
  0x23   :  { %10526 = shalt.err (!%p10523_p1)
}
  0x24   :  { %53 = dma.hbm_to_vmem [thread:$0]  %s11486_s6, 16, %s51_s18, [#allocation8]  }
  0x25   :  { %10571 = dma.done.wait [#allocation5], 98304  }
  0x26   :  { %10572 = vsyncadd [#allocation5], 4294868992 }
  0x27   :  { %10573 = dma.done.wait [#allocation8], 16  }
  0x28   :  { %10574 = vsyncadd [#allocation8], 4294967280  ;;  %v8999_v0 = vld [vmem:[%s11483_s3 + $0x4] ss:$16 sps:$4 sm:$0xff]   ;;  %v9001_v1 = vld [vmem:[%s11483_s3 + $0xc] ss:$16 sps:$4 sm:$0xff]  }
  0x29   :  { %861 = vmatprep.subr.bf16.mxu0 %v8999_v0  ;;  %v9003_v2 = vld [vmem:[%s11483_s3] ss:$16 sps:$4 sm:$0xff]   ;;  %v9004_v3 = vld [vmem:[%s11483_s3 + $0x8] ss:$16 sps:$4 sm:$0xff]   ;;  %943 = vmatprep.subr.bf16.mxu1 %v9001_v1  ;;  %v9005_v4 = vld [vmem:[%s11483_s3 + $0x24] ss:$16 sps:$4 sm:$0xff]  }
  0x2a   :  { %862 = vmatpush1.bf16.msra.mxu0 %v9003_v2  ;;  %944 = vmatpush1.bf16.msra.mxu1 %v9004_v3  ;;  %v9007_v5 = vld [vmem:[%s11483_s3 + $0x2c] ss:$16 sps:$4 sm:$0xff]   ;;  %v9009_v6 = vld [vmem:[%s11483_s3 + $0x20] ss:$16 sps:$4 sm:$0xff]   ;;  %v9010_v7 = vld [vmem:[%s11483_s3 + $0x28] ss:$16 sps:$4 sm:$0xff]  }
  0x2b   :  { %863 = vmatprep.subr.bf16.mxu0 %v9005_v4  ;;  %945 = vmatprep.subr.bf16.mxu1 %v9007_v5  ;;  %v9011_v8 = vld [vmem:[%s11483_s3 + $0x44] ss:$16 sps:$4 sm:$0xff]   ;;  %v9013_v9 = vld [vmem:[%s11483_s3 + $0x4c] ss:$16 sps:$4 sm:$0xff]   ;;  %v9015_v10 = vld [vmem:[%s11483_s3 + $0x40] ss:$16 sps:$4 sm:$0xff]  }
  0x2c   :  { %v9016_v11 = vld [vmem:[%s11483_s3 + $0x48] ss:$16 sps:$4 sm:$0xff]   ;;  %v9017_v12 = vld [vmem:[%s11483_s3 + $0x64] ss:$16 sps:$4 sm:$0xff]   ;;  %v9019_v13 = vld [vmem:[%s11483_s3 + $0x6c] ss:$16 sps:$4 sm:$0xff]  }
  0x2d   :  { %v9021_v14 = vld [vmem:[%s11483_s3 + $0x60] ss:$16 sps:$4 sm:$0xff]   ;;  %v9022_v15 = vld [vmem:[%s11483_s3 + $0x68] ss:$16 sps:$4 sm:$0xff]   ;;  %v9023_v16 = vld [vmem:[%s11483_s3 + $0x84] ss:$16 sps:$4 sm:$0xff]  }
  0x2e   :  { %864 = vmatpush1.bf16.msra.mxu0 %v9009_v6  ;;  %946 = vmatpush1.bf16.msra.mxu1 %v9010_v7  ;;  %v9025_v17 = vld [vmem:[%s11483_s3 + $0x8c] ss:$16 sps:$4 sm:$0xff]   ;;  %v9027_v18 = vld [vmem:[%s11483_s3 + $0x80] ss:$16 sps:$4 sm:$0xff]   ;;  %v9028_v19 = vld [vmem:[%s11483_s3 + $0x88] ss:$16 sps:$4 sm:$0xff]  }
  0x2f   :  { %865 = vmatprep.subr.bf16.mxu0 %v9011_v8  ;;  %947 = vmatprep.subr.bf16.mxu1 %v9013_v9  ;;  %v9029_v20 = vld [vmem:[%s11483_s3 + $0xa4] ss:$16 sps:$4 sm:$0xff]   ;;  %v9031_v21 = vld [vmem:[%s11483_s3 + $0xac] ss:$16 sps:$4 sm:$0xff]   ;;  %v9033_v22 = vld [vmem:[%s11483_s3 + $0xa0] ss:$16 sps:$4 sm:$0xff]  }
  0x30   :  { %v9034_v23 = vld [vmem:[%s11483_s3 + $0xa8] ss:$16 sps:$4 sm:$0xff]   ;;  %v9035_v24 = vld [vmem:[%s11483_s3 + $0xc4] ss:$16 sps:$4 sm:$0xff]   ;;  %v9037_v25 = vld [vmem:[%s11483_s3 + $0xcc] ss:$16 sps:$4 sm:$0xff]  }
  0x31   :  { %v9039_v26 = vld [vmem:[%s11483_s3 + $0xc0] ss:$16 sps:$4 sm:$0xff]   ;;  %v9040_v27 = vld [vmem:[%s11483_s3 + $0xc8] ss:$16 sps:$4 sm:$0xff]   ;;  %v9041_v28 = vld [vmem:[%s11483_s3 + $0xe4] ss:$16 sps:$4 sm:$0xff]  }
  0x32   :  { %866 = vmatpush1.bf16.msra.mxu0 %v9015_v10  ;;  %948 = vmatpush1.bf16.msra.mxu1 %v9016_v11  ;;  %v9043_v29 = vld [vmem:[%s11483_s3 + $0xec] ss:$16 sps:$4 sm:$0xff]   ;;  %v9045_v30 = vld [vmem:[%s11483_s3 + $0xe0] ss:$16 sps:$4 sm:$0xff]   ;;  %v9046_v31 = vld [vmem:[%s11483_s3 + $0xe8] ss:$16 sps:$4 sm:$0xff]  }
  0x33   :  { %867 = vmatprep.subr.bf16.mxu0 %v9017_v12  ;;  %949 = vmatprep.subr.bf16.mxu1 %v9019_v13  ;;  %v9047_v32 = vld [vmem:[%s11483_s3 + $0x104] ss:$16 sps:$4 sm:$0xff]   ;;  %v9049_v33 = vld [vmem:[%s11483_s3 + $0x10c] ss:$16 sps:$4 sm:$0xff]   ;;  %v9051_v34 = vld [vmem:[%s11483_s3 + $0x100] ss:$16 sps:$4 sm:$0xff]  }
  0x34   :  { %v9052_v35 = vld [vmem:[%s11483_s3 + $0x108] ss:$16 sps:$4 sm:$0xff]   ;;  %v9053_v36 = vld [vmem:[%s11483_s3 + $0x124] ss:$16 sps:$4 sm:$0xff]   ;;  %v9055_v37 = vld [vmem:[%s11483_s3 + $0x12c] ss:$16 sps:$4 sm:$0xff]  }
  0x35   :  { %v9057_v38 = vld [vmem:[%s11483_s3 + $0x120] ss:$16 sps:$4 sm:$0xff]   ;;  %v9058_v39 = vld [vmem:[%s11483_s3 + $0x128] ss:$16 sps:$4 sm:$0xff]   ;;  %v9059_v40 = vld [vmem:[%s11483_s3 + $0x144] ss:$16 sps:$4 sm:$0xff]  }
  0x36   :  { %868 = vmatpush1.bf16.msra.mxu0 %v9021_v14  ;;  %950 = vmatpush1.bf16.msra.mxu1 %v9022_v15  ;;  %v9061_v41 = vld [vmem:[%s11483_s3 + $0x14c] ss:$16 sps:$4 sm:$0xff]   ;;  %v9063_v42 = vld [vmem:[%s11483_s3 + $0x140] ss:$16 sps:$4 sm:$0xff]   ;;  %v9064_v43 = vld [vmem:[%s11483_s3 + $0x148] ss:$16 sps:$4 sm:$0xff]  }
  0x37   :  { %869 = vmatprep.subr.bf16.mxu0 %v9023_v16  ;;  %951 = vmatprep.subr.bf16.mxu1 %v9025_v17  ;;  %v9065_v44 = vld [vmem:[%s11483_s3 + $0x164] ss:$16 sps:$4 sm:$0xff]   ;;  %v9067_v45 = vld [vmem:[%s11483_s3 + $0x16c] ss:$16 sps:$4 sm:$0xff]   ;;  %v9069_v47 = vld [vmem:[%s11483_s3 + $0x160] ss:$16 sps:$4 sm:$0xff]  }
  0x38   :  { %v77_v46 = vld [vmem:[%s11482_s2] sm:$0xff]  ;;  %v9070_v49 = vld [vmem:[%s11483_s3 + $0x168] ss:$16 sps:$4 sm:$0xff]   ;;  %v9073_v51 = vld [vmem:[%s11483_s3 + $0x18c] ss:$16 sps:$4 sm:$0xff]   ;;  %vm10584_vm0 = vmmov 0  }
  0x39   :  { %v7735_v48 = vcombine.high %v77_v46, %v77_v46  ;;  %v9071_v50 = vld [vmem:[%s11483_s3 + $0x184] ss:$16 sps:$4 sm:$0xff]   ;;  %v9075_v52 = vld [vmem:[%s11483_s3 + $0x180] ss:$16 sps:$4 sm:$0xff]   ;;  %v9076_v53 = vld [vmem:[%s11483_s3 + $0x188] ss:$16 sps:$4 sm:$0xff]   ;;  %v7734_v4 = vcombine.low %v77_v46, %v77_v46 }
  0x3a   :  { %870 = vmatpush1.bf16.msra.mxu0 %v9027_v18  ;;  %952 = vmatpush1.bf16.msra.mxu1 %v9028_v19  ;;  %v9077_v54 = vld [vmem:[%s11483_s3 + $0x1a4] ss:$16 sps:$4 sm:$0xff]   ;;  %v9079_v55 = vld [vmem:[%s11483_s3 + $0x1ac] ss:$16 sps:$4 sm:$0xff]   ;;  %v9081_v56 = vld [vmem:[%s11483_s3 + $0x1a0] ss:$16 sps:$4 sm:$0xff]  }
  0x3b   :  { %871 = vmatprep.subr.bf16.mxu0 %v9029_v20  ;;  %953 = vmatprep.subr.bf16.mxu1 %v9031_v21  ;;  %v9082_v57 = vld [vmem:[%s11483_s3 + $0x1a8] ss:$16 sps:$4 sm:$0xff]   ;;  %v9083_v58 = vld [vmem:[%s11483_s3 + $0x1c4] ss:$16 sps:$4 sm:$0xff]   ;;  %v9085_v59 = vld [vmem:[%s11483_s3 + $0x1cc] ss:$16 sps:$4 sm:$0xff]  }
  0x3c   :  { %893 = vmatprep.mubr.bf16.mxu0 %v7735_v48  ;;  %975 = vmatprep.mubr.bf16.mxu1 %v7735_v48  ;;  %v9087_v60 = vld [vmem:[%s11483_s3 + $0x1c0] ss:$16 sps:$4 sm:$0xff]   ;;  %v9088_v61 = vld [vmem:[%s11483_s3 + $0x1c8] ss:$16 sps:$4 sm:$0xff]   ;;  %v9089_v62 = vld [vmem:[%s11483_s3 + $0x1e4] ss:$16 sps:$4 sm:$0xff]  }
  0x3d   :  { %v9091_v63 = vld [vmem:[%s11483_s3 + $0x1ec] ss:$16 sps:$4 sm:$0xff]   ;;  %v9093_v0 = vld [vmem:[%s11483_s3 + $0x1e0] ss:$16 sps:$4 sm:$0xff]   ;;  %v9094_v1 = vld [vmem:[%s11483_s3 + $0x1e8] ss:$16 sps:$4 sm:$0xff]  }
  0x3e   :  { %872 = vmatpush1.bf16.msra.mxu0 %v9033_v22  ;;  %954 = vmatpush1.bf16.msra.mxu1 %v9034_v23  ;;  %v9099_v2 = vld [vmem:[%s11483_s3 + $0x204] ss:$16 sps:$4 sm:$0xff]   ;;  %v9102_v3 = vld [vmem:[%s11483_s3 + $0x20c] ss:$16 sps:$4 sm:$0xff]   ;;  %v9097_v5 = vld [vmem:[%s11483_s3 + $0x200] ss:$16 sps:$4 sm:$0xff]  }
  0x3f   :  { %873 = vmatprep.subr.bf16.mxu0 %v9035_v24  ;;  %955 = vmatprep.subr.bf16.mxu1 %v9037_v25  ;;  %v9100_v6 = vld [vmem:[%s11483_s3 + $0x208] ss:$16 sps:$4 sm:$0xff]   ;;  %v9105_v7 = vld [vmem:[%s11483_s3 + $0x224] ss:$16 sps:$4 sm:$0xff]   ;;  %v9108_v8 = vld [vmem:[%s11483_s3 + $0x22c] ss:$16 sps:$4 sm:$0xff]  }
  0x40   :  { %v9103_v9 = vld [vmem:[%s11483_s3 + $0x220] ss:$16 sps:$4 sm:$0xff]   ;;  %v9106_v10 = vld [vmem:[%s11483_s3 + $0x228] ss:$16 sps:$4 sm:$0xff]   ;;  %v9111_v11 = vld [vmem:[%s11483_s3 + $0x244] ss:$16 sps:$4 sm:$0xff]  }
  0x41   :  { %v9114_v12 = vld [vmem:[%s11483_s3 + $0x24c] ss:$16 sps:$4 sm:$0xff]   ;;  %v9109_v13 = vld [vmem:[%s11483_s3 + $0x240] ss:$16 sps:$4 sm:$0xff]   ;;  %v9112_v14 = vld [vmem:[%s11483_s3 + $0x248] ss:$16 sps:$4 sm:$0xff]  }
  0x42   :  { %874 = vmatpush1.bf16.msra.mxu0 %v9039_v26  ;;  %956 = vmatpush1.bf16.msra.mxu1 %v9040_v27  ;;  %v9117_v15 = vld [vmem:[%s11483_s3 + $0x264] ss:$16 sps:$4 sm:$0xff]   ;;  %v9120_v16 = vld [vmem:[%s11483_s3 + $0x26c] ss:$16 sps:$4 sm:$0xff]   ;;  %v9115_v17 = vld [vmem:[%s11483_s3 + $0x260] ss:$16 sps:$4 sm:$0xff]  }
  0x43   :  { %875 = vmatprep.subr.bf16.mxu0 %v9041_v28  ;;  %957 = vmatprep.subr.bf16.mxu1 %v9043_v29  ;;  %v9118_v18 = vld [vmem:[%s11483_s3 + $0x268] ss:$16 sps:$4 sm:$0xff]   ;;  %v9123_v19 = vld [vmem:[%s11483_s3 + $0x284] ss:$16 sps:$4 sm:$0xff]   ;;  %v9126_v20 = vld [vmem:[%s11483_s3 + $0x28c] ss:$16 sps:$4 sm:$0xff]  }
  0x44   :  { %v9121_v21 = vld [vmem:[%s11483_s3 + $0x280] ss:$16 sps:$4 sm:$0xff]   ;;  %v9124_v22 = vld [vmem:[%s11483_s3 + $0x288] ss:$16 sps:$4 sm:$0xff]   ;;  %v9129_v23 = vld [vmem:[%s11483_s3 + $0x2a4] ss:$16 sps:$4 sm:$0xff]  }
  0x45   :  { %v9132_v24 = vld [vmem:[%s11483_s3 + $0x2ac] ss:$16 sps:$4 sm:$0xff]   ;;  %v9127_v25 = vld [vmem:[%s11483_s3 + $0x2a0] ss:$16 sps:$4 sm:$0xff]   ;;  %v9130_v26 = vld [vmem:[%s11483_s3 + $0x2a8] ss:$16 sps:$4 sm:$0xff]  }
  0x46   :  { %876 = vmatpush1.bf16.msra.mxu0 %v9045_v30  ;;  %958 = vmatpush1.bf16.msra.mxu1 %v9046_v31  ;;  %v9135_v27 = vld [vmem:[%s11483_s3 + $0x2c4] ss:$16 sps:$4 sm:$0xff]   ;;  %v9138_v28 = vld [vmem:[%s11483_s3 + $0x2cc] ss:$16 sps:$4 sm:$0xff]   ;;  %v9133_v31 = vld [vmem:[%s11483_s3 + $0x2c0] ss:$16 sps:$4 sm:$0xff]  }
  0x47   :  { %877 = vmatprep.subr.bf16.mxu0 %v9047_v32  ;;  %959 = vmatprep.subr.bf16.mxu1 %v9049_v33  ;;  %v10952_v29 = vld [vmem:[%s11482_s2 + $0x8] sm:$0xff]  ;;  %v9141_v33 = vld [vmem:[%s11483_s3 + $0x2e4] ss:$16 sps:$4 sm:$0xff]   ;;  %s10585_s23 = smov [#allocation10]  }
  0x48   :  { %v7737_v30 = vcombine.high %v10952_v29, %v10952_v29  ;;  %v9136_v32 = vld [vmem:[%s11483_s3 + $0x2c8] ss:$16 sps:$4 sm:$0xff]   ;;  %v9162_v46 = vld [vmem:[%s11483_s3 + $0x34c] ss:$16 sps:$4 sm:$0xff]   ;;  %s7720_s24 = sshll.u32 %s10585_s23, 4  ;;  %s7721_s24 = int_to_ptr.vmem [resolvable:$true] %s7720_s24 }
  0x49   :  { %v9160_v48 = vld [vmem:[%s11483_s3 + $0x348] ss:$16 sps:$4 sm:$0xff]   ;;  %s10527_s25 = scalar_lea.vmem %s7721_s24, 128  ;;  %p10532_p3 = scmp.lt.s32.totalorder %s7721_s24, %s7721_s24 }
  0x4a   :  { %878 = vmatpush1.bf16.msra.mxu0 %v9051_v34  ;;  %960 = vmatpush1.bf16.msra.mxu1 %v9052_v35  ;;  %v9144_v34 = vld [vmem:[%s11483_s3 + $0x2ec] ss:$16 sps:$4 sm:$0xff]   ;;  %v9139_v35 = vld [vmem:[%s11483_s3 + $0x2e0] ss:$16 sps:$4 sm:$0xff]   ;;  %p10528_p2 = scmp.ne.s32.totalorder %s7721_s24, %s10527_s25  ;;  %p10533_p4 = scmp.lt.s32.totalorder %s10527_s25, %s10527_s25 }
  0x4b   :  { %879 = vmatprep.subr.bf16.mxu0 %v9053_v36  ;;  %961 = vmatprep.subr.bf16.mxu1 %v9055_v37  ;;  %v9142_v36 = vld [vmem:[%s11483_s3 + $0x2e8] ss:$16 sps:$4 sm:$0xff]   ;;  %v9147_v37 = vld [vmem:[%s11483_s3 + $0x304] ss:$16 sps:$4 sm:$0xff]  }
  0x4c   :  { %p10534_p5 = por %p10533_p4, %p10532_p3 }
  0x4e   :  { %880 = vmatpush1.bf16.msra.mxu0 %v9057_v38  ;;  %962 = vmatpush1.bf16.msra.mxu1 %v9058_v39  ;;  %v9150_v38 = vld [vmem:[%s11483_s3 + $0x30c] ss:$16 sps:$4 sm:$0xff]   ;;  %v9145_v39 = vld [vmem:[%s11483_s3 + $0x300] ss:$16 sps:$4 sm:$0xff]   ;;  %p10535_p6 = pnand %p10534_p5, %p10528_p2 }
  0x4f   :  { %881 = vmatprep.subr.bf16.mxu0 %v9059_v40  ;;  %963 = vmatprep.subr.bf16.mxu1 %v9061_v41  ;;  %v9148_v40 = vld [vmem:[%s11483_s3 + $0x308] ss:$16 sps:$4 sm:$0xff]   ;;  %v9153_v41 = vld [vmem:[%s11483_s3 + $0x324] ss:$16 sps:$4 sm:$0xff]  }
  0x52   :  { %882 = vmatpush1.bf16.msra.mxu0 %v9063_v42  ;;  %964 = vmatpush1.bf16.msra.mxu1 %v9064_v43  ;;  %v9156_v42 = vld [vmem:[%s11483_s3 + $0x32c] ss:$16 sps:$4 sm:$0xff]   ;;  %v9151_v43 = vld [vmem:[%s11483_s3 + $0x320] ss:$16 sps:$4 sm:$0xff]  }
  0x53   :  { %883 = vmatprep.subr.bf16.mxu0 %v9065_v44  ;;  %965 = vmatprep.subr.bf16.mxu1 %v9067_v45  ;;  %v9154_v44 = vld [vmem:[%s11483_s3 + $0x328] ss:$16 sps:$4 sm:$0xff]   ;;  %v9159_v45 = vld [vmem:[%s11483_s3 + $0x344] ss:$16 sps:$4 sm:$0xff]  }
  0x56   :  { %884 = vmatpush1.bf16.msra.mxu0 %v9069_v47  ;;  %966 = vmatpush1.bf16.msra.mxu1 %v9070_v49  ;;  %v9157_v47 = vld [vmem:[%s11483_s3 + $0x340] ss:$16 sps:$4 sm:$0xff]   ;;  %v9165_v49 = vld [vmem:[%s11483_s3 + $0x364] ss:$16 sps:$4 sm:$0xff]  }
  0x57   :  { %885 = vmatprep.subr.bf16.mxu0 %v9071_v50  ;;  %967 = vmatprep.subr.bf16.mxu1 %v9073_v51  ;;  %v9168_v50 = vld [vmem:[%s11483_s3 + $0x36c] ss:$16 sps:$4 sm:$0xff]   ;;  %v9163_v51 = vld [vmem:[%s11483_s3 + $0x360] ss:$16 sps:$4 sm:$0xff]  }
  0x5a   :  { %886 = vmatpush1.bf16.msra.mxu0 %v9075_v52  ;;  %968 = vmatpush1.bf16.msra.mxu1 %v9076_v53  ;;  %v9166_v52 = vld [vmem:[%s11483_s3 + $0x368] ss:$16 sps:$4 sm:$0xff]   ;;  %v9171_v53 = vld [vmem:[%s11483_s3 + $0x384] ss:$16 sps:$4 sm:$0xff]  }
  0x5b   :  { %887 = vmatprep.subr.bf16.mxu0 %v9077_v54  ;;  %969 = vmatprep.subr.bf16.mxu1 %v9079_v55  ;;  %v9174_v54 = vld [vmem:[%s11483_s3 + $0x38c] ss:$16 sps:$4 sm:$0xff]   ;;  %v9169_v55 = vld [vmem:[%s11483_s3 + $0x380] ss:$16 sps:$4 sm:$0xff]  }
  0x5e   :  { %888 = vmatpush1.bf16.msra.mxu0 %v9081_v56  ;;  %970 = vmatpush1.bf16.msra.mxu1 %v9082_v57  ;;  %v9172_v56 = vld [vmem:[%s11483_s3 + $0x388] ss:$16 sps:$4 sm:$0xff]   ;;  %v9177_v57 = vld [vmem:[%s11483_s3 + $0x3a4] ss:$16 sps:$4 sm:$0xff]  }
  0x5f   :  { %889 = vmatprep.subr.bf16.mxu0 %v9083_v58  ;;  %971 = vmatprep.subr.bf16.mxu1 %v9085_v59  ;;  %v9180_v58 = vld [vmem:[%s11483_s3 + $0x3ac] ss:$16 sps:$4 sm:$0xff]   ;;  %v9175_v59 = vld [vmem:[%s11483_s3 + $0x3a0] ss:$16 sps:$4 sm:$0xff]  }
  0x62   :  { %890 = vmatpush1.bf16.msra.mxu0 %v9087_v60  ;;  %972 = vmatpush1.bf16.msra.mxu1 %v9088_v61  ;;  %v9178_v60 = vld [vmem:[%s11483_s3 + $0x3a8] ss:$16 sps:$4 sm:$0xff]   ;;  %v9183_v61 = vld [vmem:[%s11483_s3 + $0x3c4] ss:$16 sps:$4 sm:$0xff]  }
  0x63   :  { %891 = vmatprep.subr.bf16.mxu0 %v9089_v62  ;;  %973 = vmatprep.subr.bf16.mxu1 %v9091_v63  ;;  %v9186_v62 = vld [vmem:[%s11483_s3 + $0x3cc] ss:$16 sps:$4 sm:$0xff]   ;;  %v9181_v63 = vld [vmem:[%s11483_s3 + $0x3c0] ss:$16 sps:$4 sm:$0xff]  }
  0x66   :  { %892 = vmatpush1.bf16.msra.mxu0 %v9093_v0  ;;  %974 = vmatpush1.bf16.msra.mxu1 %v9094_v1  ;;  %v9184_v0 = vld [vmem:[%s11483_s3 + $0x3c8] ss:$16 sps:$4 sm:$0xff]   ;;  %v9189_v1 = vld [vmem:[%s11483_s3 + $0x3e4] ss:$16 sps:$4 sm:$0xff]  }
  0x67   :  { %902 = vmatprep.subr.bf16.mxu0 %v9099_v2  ;;  %984 = vmatprep.subr.bf16.mxu1 %v9102_v3  ;;  %v9192_v2 = vld [vmem:[%s11483_s3 + $0x3ec] ss:$16 sps:$4 sm:$0xff]   ;;  %v9187_v3 = vld [vmem:[%s11483_s3 + $0x3e0] ss:$16 sps:$4 sm:$0xff]  }
  0x69   :  { %894 = vmatmul.mubr.bf16.vlgmr.msra.gmra.mrb[0].mxu0 %v7734_v4  ;;  %976 = vmatmul.mubr.bf16.vlgmr.msra.gmra.mrb[0].mxu1 %v7734_v4  ;;  %v9190_v4 = vld [vmem:[%s11483_s3 + $0x3e8] ss:$16 sps:$4 sm:$0xff]  }
  0x6a   :  { %903 = vmatpush1.bf16.msra.mxu0 %v9097_v5  ;;  %985 = vmatpush1.bf16.msra.mxu1 %v9100_v6  ;;  %v9197_v5 = vld [vmem:[#allocation4 + $0x4] ss:$16 sps:$4 sm:$0xff]   ;;  %v9200_v6 = vld [vmem:[#allocation4 + $0xc] ss:$16 sps:$4 sm:$0xff]  }
  0x6b   :  { %904 = vmatprep.subr.bf16.mxu0 %v9105_v7  ;;  %986 = vmatprep.subr.bf16.mxu1 %v9108_v8  ;;  %v7736_v7 = vcombine.low %v10952_v29, %v10952_v29  ;;  %v9195_v8 = vld [vmem:[#allocation4] ss:$16 sps:$4 sm:$0xff]   ;;  %v9230_v29 = vld [vmem:[#allocation4 + $0xac] ss:$16 sps:$4 sm:$0xff]  }
  0x6c   :  { %934 = vmatprep.mubr.bf16.mxu0 %v7737_v30  ;;  %1016 = vmatprep.mubr.bf16.mxu1 %v7737_v30  ;;  %v9225_v30 = vld [vmem:[#allocation4 + $0xa0] ss:$16 sps:$4 sm:$0xff]  }
  0x6e   :  { %905 = vmatpush1.bf16.msra.mxu0 %v9103_v9  ;;  %987 = vmatpush1.bf16.msra.mxu1 %v9106_v10  ;;  %v9198_v9 = vld [vmem:[#allocation4 + $0x8] ss:$16 sps:$4 sm:$0xff]   ;;  %v9203_v10 = vld [vmem:[#allocation4 + $0x24] ss:$16 sps:$4 sm:$0xff]  }
  0x6f   :  { %906 = vmatprep.subr.bf16.mxu0 %v9111_v11  ;;  %988 = vmatprep.subr.bf16.mxu1 %v9114_v12  ;;  %v11075_v11 = vld [vmem:[%s11480_s0] sm:$0xff]  ;;  %v9206_v12 = vld [vmem:[#allocation4 + $0x2c] ss:$16 sps:$4 sm:$0xff]  }
  0x72   :  { %907 = vmatpush1.bf16.msra.mxu0 %v9109_v13  ;;  %989 = vmatpush1.bf16.msra.mxu1 %v9112_v14  ;;  %v7871_v13 = vcombine.high %v11075_v11, %v11075_v11  ;;  %v9201_v14 = vld [vmem:[#allocation4 + $0x20] ss:$16 sps:$4 sm:$0xff]  }
  0x73   :  { %908 = vmatprep.subr.bf16.mxu0 %v9117_v15  ;;  %990 = vmatprep.subr.bf16.mxu1 %v9120_v16  ;;  %v9204_v15 = vld [vmem:[#allocation4 + $0x28] ss:$16 sps:$4 sm:$0xff]   ;;  %v9209_v16 = vld [vmem:[#allocation4 + $0x44] ss:$16 sps:$4 sm:$0xff]  }
  0x76   :  { %909 = vmatpush1.bf16.msra.mxu0 %v9115_v17  ;;  %991 = vmatpush1.bf16.msra.mxu1 %v9118_v18  ;;  %v9212_v17 = vld [vmem:[#allocation4 + $0x4c] ss:$16 sps:$4 sm:$0xff]   ;;  %v9207_v18 = vld [vmem:[#allocation4 + $0x40] ss:$16 sps:$4 sm:$0xff]  }
  0x77   :  { %910 = vmatprep.subr.bf16.mxu0 %v9123_v19  ;;  %992 = vmatprep.subr.bf16.mxu1 %v9126_v20  ;;  %v9210_v19 = vld [vmem:[#allocation4 + $0x48] ss:$16 sps:$4 sm:$0xff]   ;;  %v9215_v20 = vld [vmem:[#allocation4 + $0x64] ss:$16 sps:$4 sm:$0xff]  }
  0x7a   :  { %911 = vmatpush1.bf16.msra.mxu0 %v9121_v21  ;;  %993 = vmatpush1.bf16.msra.mxu1 %v9124_v22  ;;  %v9218_v21 = vld [vmem:[#allocation4 + $0x6c] ss:$16 sps:$4 sm:$0xff]   ;;  %v9213_v22 = vld [vmem:[#allocation4 + $0x60] ss:$16 sps:$4 sm:$0xff]  }
  0x7b   :  { %912 = vmatprep.subr.bf16.mxu0 %v9129_v23  ;;  %994 = vmatprep.subr.bf16.mxu1 %v9132_v24  ;;  %v9216_v23 = vld [vmem:[#allocation4 + $0x68] ss:$16 sps:$4 sm:$0xff]   ;;  %v9221_v24 = vld [vmem:[#allocation4 + $0x84] ss:$16 sps:$4 sm:$0xff]  }
  0x7e   :  { %913 = vmatpush1.bf16.msra.mxu0 %v9127_v25  ;;  %995 = vmatpush1.bf16.msra.mxu1 %v9130_v26  ;;  %v9224_v25 = vld [vmem:[#allocation4 + $0x8c] ss:$16 sps:$4 sm:$0xff]   ;;  %v9219_v26 = vld [vmem:[#allocation4 + $0x80] ss:$16 sps:$4 sm:$0xff]  }
  0x7f   :  { %914 = vmatprep.subr.bf16.mxu0 %v9135_v27  ;;  %996 = vmatprep.subr.bf16.mxu1 %v9138_v28  ;;  %v9222_v27 = vld [vmem:[#allocation4 + $0x88] ss:$16 sps:$4 sm:$0xff]   ;;  %v9227_v28 = vld [vmem:[#allocation4 + $0xa4] ss:$16 sps:$4 sm:$0xff]  }
  0x82   :  { %915 = vmatpush1.bf16.msra.mxu0 %v9133_v31  ;;  %997 = vmatpush1.bf16.msra.mxu1 %v9136_v32  ;;  %v9228_v31 = vld [vmem:[#allocation4 + $0xa8] ss:$16 sps:$4 sm:$0xff]   ;;  %v9233_v32 = vld [vmem:[#allocation4 + $0xc4] ss:$16 sps:$4 sm:$0xff]  }
  0x83   :  { %916 = vmatprep.subr.bf16.mxu0 %v9141_v33  ;;  %998 = vmatprep.subr.bf16.mxu1 %v9144_v34  ;;  %v9236_v33 = vld [vmem:[#allocation4 + $0xcc] ss:$16 sps:$4 sm:$0xff]   ;;  %v9231_v34 = vld [vmem:[#allocation4 + $0xc0] ss:$16 sps:$4 sm:$0xff]  }
  0x86   :  { %917 = vmatpush1.bf16.msra.mxu0 %v9139_v35  ;;  %999 = vmatpush1.bf16.msra.mxu1 %v9142_v36  ;;  %v9234_v35 = vld [vmem:[#allocation4 + $0xc8] ss:$16 sps:$4 sm:$0xff]   ;;  %v9239_v36 = vld [vmem:[#allocation4 + $0xe4] ss:$16 sps:$4 sm:$0xff]  }
  0x87   :  { %918 = vmatprep.subr.bf16.mxu0 %v9147_v37  ;;  %1000 = vmatprep.subr.bf16.mxu1 %v9150_v38  ;;  %v9242_v37 = vld [vmem:[#allocation4 + $0xec] ss:$16 sps:$4 sm:$0xff]   ;;  %v9237_v38 = vld [vmem:[#allocation4 + $0xe0] ss:$16 sps:$4 sm:$0xff]  }
  0x8a   :  { %919 = vmatpush1.bf16.msra.mxu0 %v9145_v39  ;;  %1001 = vmatpush1.bf16.msra.mxu1 %v9148_v40  ;;  %v9240_v39 = vld [vmem:[#allocation4 + $0xe8] ss:$16 sps:$4 sm:$0xff]   ;;  %v9245_v40 = vld [vmem:[#allocation4 + $0x104] ss:$16 sps:$4 sm:$0xff]  }
  0x8b   :  { %920 = vmatprep.subr.bf16.mxu0 %v9153_v41  ;;  %1002 = vmatprep.subr.bf16.mxu1 %v9156_v42  ;;  %v9248_v41 = vld [vmem:[#allocation4 + $0x10c] ss:$16 sps:$4 sm:$0xff]   ;;  %v9243_v42 = vld [vmem:[#allocation4 + $0x100] ss:$16 sps:$4 sm:$0xff]  }
  0x8e   :  { %921 = vmatpush1.bf16.msra.mxu0 %v9151_v43  ;;  %1003 = vmatpush1.bf16.msra.mxu1 %v9154_v44  ;;  %v9246_v43 = vld [vmem:[#allocation4 + $0x108] ss:$16 sps:$4 sm:$0xff]   ;;  %v9251_v44 = vld [vmem:[#allocation4 + $0x124] ss:$16 sps:$4 sm:$0xff]  }
  0x8f   :  { %922 = vmatprep.subr.bf16.mxu0 %v9159_v45  ;;  %1004 = vmatprep.subr.bf16.mxu1 %v9162_v46  ;;  %v9254_v45 = vld [vmem:[#allocation4 + $0x12c] ss:$16 sps:$4 sm:$0xff]   ;;  %v9249_v46 = vld [vmem:[#allocation4 + $0x120] ss:$16 sps:$4 sm:$0xff]  }
  0x92   :  { %923 = vmatpush1.bf16.msra.mxu0 %v9157_v47  ;;  %1005 = vmatpush1.bf16.msra.mxu1 %v9160_v48  ;;  %v9252_v47 = vld [vmem:[#allocation4 + $0x128] ss:$16 sps:$4 sm:$0xff]   ;;  %v9257_v48 = vld [vmem:[#allocation4 + $0x144] ss:$16 sps:$4 sm:$0xff]  }
  0x93   :  { %924 = vmatprep.subr.bf16.mxu0 %v9165_v49  ;;  %1006 = vmatprep.subr.bf16.mxu1 %v9168_v50  ;;  %v9260_v49 = vld [vmem:[#allocation4 + $0x14c] ss:$16 sps:$4 sm:$0xff]   ;;  %v9255_v50 = vld [vmem:[#allocation4 + $0x140] ss:$16 sps:$4 sm:$0xff]  }
  0x96   :  { %925 = vmatpush1.bf16.msra.mxu0 %v9163_v51  ;;  %1007 = vmatpush1.bf16.msra.mxu1 %v9166_v52  ;;  %v9258_v51 = vld [vmem:[#allocation4 + $0x148] ss:$16 sps:$4 sm:$0xff]   ;;  %v9263_v52 = vld [vmem:[#allocation4 + $0x164] ss:$16 sps:$4 sm:$0xff]  }
  0x97   :  { %926 = vmatprep.subr.bf16.mxu0 %v9171_v53  ;;  %1008 = vmatprep.subr.bf16.mxu1 %v9174_v54  ;;  %v9266_v53 = vld [vmem:[#allocation4 + $0x16c] ss:$16 sps:$4 sm:$0xff]   ;;  %v9261_v54 = vld [vmem:[#allocation4 + $0x160] ss:$16 sps:$4 sm:$0xff]  }
  0x9a   :  { %927 = vmatpush1.bf16.msra.mxu0 %v9169_v55  ;;  %1009 = vmatpush1.bf16.msra.mxu1 %v9172_v56  ;;  %v9264_v55 = vld [vmem:[#allocation4 + $0x168] ss:$16 sps:$4 sm:$0xff]   ;;  %v9269_v56 = vld [vmem:[#allocation4 + $0x184] ss:$16 sps:$4 sm:$0xff]  }
  0x9b   :  { %928 = vmatprep.subr.bf16.mxu0 %v9177_v57  ;;  %1010 = vmatprep.subr.bf16.mxu1 %v9180_v58  ;;  %v9272_v57 = vld [vmem:[#allocation4 + $0x18c] ss:$16 sps:$4 sm:$0xff]   ;;  %v9267_v58 = vld [vmem:[#allocation4 + $0x180] ss:$16 sps:$4 sm:$0xff]  }
  0x9e   :  { %929 = vmatpush1.bf16.msra.mxu0 %v9175_v59  ;;  %1011 = vmatpush1.bf16.msra.mxu1 %v9178_v60  ;;  %v9270_v59 = vld [vmem:[#allocation4 + $0x188] ss:$16 sps:$4 sm:$0xff]   ;;  %v9275_v60 = vld [vmem:[#allocation4 + $0x1a4] ss:$16 sps:$4 sm:$0xff]  }
  0x9f   :  { %930 = vmatprep.subr.bf16.mxu0 %v9183_v61  ;;  %1012 = vmatprep.subr.bf16.mxu1 %v9186_v62  ;;  %v9278_v61 = vld [vmem:[#allocation4 + $0x1ac] ss:$16 sps:$4 sm:$0xff]   ;;  %v9273_v62 = vld [vmem:[#allocation4 + $0x1a0] ss:$16 sps:$4 sm:$0xff]  }
  0xa2   :  { %931 = vmatpush1.bf16.msra.mxu0 %v9181_v63  ;;  %1013 = vmatpush1.bf16.msra.mxu1 %v9184_v0  ;;  %v9276_v63 = vld [vmem:[#allocation4 + $0x1a8] ss:$16 sps:$4 sm:$0xff]   ;;  %v9281_v0 = vld [vmem:[#allocation4 + $0x1c4] ss:$16 sps:$4 sm:$0xff]  }
  0xa3   :  { %932 = vmatprep.subr.bf16.mxu0 %v9189_v1  ;;  %1014 = vmatprep.subr.bf16.mxu1 %v9192_v2  ;;  %v9284_v1 = vld [vmem:[#allocation4 + $0x1cc] ss:$16 sps:$4 sm:$0xff]   ;;  %v9279_v2 = vld [vmem:[#allocation4 + $0x1c0] ss:$16 sps:$4 sm:$0xff]  }
  0xa6   :  { %933 = vmatpush1.bf16.msra.mxu0 %v9187_v3  ;;  %1015 = vmatpush1.bf16.msra.mxu1 %v9190_v4  ;;  %v9282_v3 = vld [vmem:[#allocation4 + $0x1c8] ss:$16 sps:$4 sm:$0xff]   ;;  %v9287_v4 = vld [vmem:[#allocation4 + $0x1e4] ss:$16 sps:$4 sm:$0xff]  }
  0xa7   :  { %5761 = vmatprep.subr.bf16.mxu0 %v9197_v5  ;;  %6253 = vmatprep.subr.bf16.mxu1 %v9200_v6  ;;  %v9290_v5 = vld [vmem:[#allocation4 + $0x1ec] ss:$16 sps:$4 sm:$0xff]   ;;  %v9285_v6 = vld [vmem:[#allocation4 + $0x1e0] ss:$16 sps:$4 sm:$0xff]  }
  0xa9   :  { %935 = vmatmul.mubr.bf16.vlgmr.msra.gmra.mrb[0].mxu0 %v7736_v7  ;;  %1017 = vmatmul.mubr.bf16.vlgmr.msra.gmra.mrb[0].mxu1 %v7736_v7  ;;  %v9288_v7 = vld [vmem:[#allocation4 + $0x1e8] ss:$16 sps:$4 sm:$0xff]  }
  0xaa   :  { %5762 = vmatpush1.bf16.msra.mxu0 %v9195_v8  ;;  %6254 = vmatpush1.bf16.msra.mxu1 %v9198_v9  ;;  %v9295_v8 = vld [vmem:[#allocation4 + $0x204] ss:$16 sps:$4 sm:$0xff]   ;;  %v9298_v9 = vld [vmem:[#allocation4 + $0x20c] ss:$16 sps:$4 sm:$0xff]  }
  0xab   :  { %5763 = vmatprep.subr.bf16.mxu0 %v9203_v10  ;;  %6255 = vmatprep.subr.bf16.mxu1 %v9206_v12  ;;  %v9293_v10 = vld [vmem:[#allocation4 + $0x200] ss:$16 sps:$4 sm:$0xff]   ;;  %v7870_v12 = vcombine.low %v11075_v11, %v11075_v11  ;;  %v9307_v11 = vld [vmem:[#allocation4 + $0x244] ss:$16 sps:$4 sm:$0xff]  }
  0xac   :  { %5793 = vmatprep.mubr.bf16.mxu0 %v7871_v13  ;;  %6285 = vmatprep.mubr.bf16.mxu1 %v7871_v13  ;;  %v9296_v13 = vld [vmem:[#allocation4 + $0x208] ss:$16 sps:$4 sm:$0xff]  }
  0xae   :  { %5764 = vmatpush1.bf16.msra.mxu0 %v9201_v14  ;;  %6256 = vmatpush1.bf16.msra.mxu1 %v9204_v15  ;;  %v11084_v14 = vld [vmem:[%s11480_s0 + $0x8] sm:$0xff]  ;;  %v9301_v15 = vld [vmem:[#allocation4 + $0x224] ss:$16 sps:$4 sm:$0xff]  }
  0xaf   :  { %5765 = vmatprep.subr.bf16.mxu0 %v9209_v16  ;;  %6257 = vmatprep.subr.bf16.mxu1 %v9212_v17  ;;  %v9304_v16 = vld [vmem:[#allocation4 + $0x22c] ss:$16 sps:$4 sm:$0xff]   ;;  %v7873_v17 = vcombine.high %v11084_v14, %v11084_v14 }
  0xb2   :  { %5766 = vmatpush1.bf16.msra.mxu0 %v9207_v18  ;;  %6258 = vmatpush1.bf16.msra.mxu1 %v9210_v19  ;;  %v9299_v18 = vld [vmem:[#allocation4 + $0x220] ss:$16 sps:$4 sm:$0xff]   ;;  %v9302_v19 = vld [vmem:[#allocation4 + $0x228] ss:$16 sps:$4 sm:$0xff]  }
  0xb3   :  { %5767 = vmatprep.subr.bf16.mxu0 %v9215_v20  ;;  %6259 = vmatprep.subr.bf16.mxu1 %v9218_v21  ;;  %v9310_v20 = vld [vmem:[#allocation4 + $0x24c] ss:$16 sps:$4 sm:$0xff]   ;;  %v9305_v21 = vld [vmem:[#allocation4 + $0x240] ss:$16 sps:$4 sm:$0xff]  }
  0xb6   :  { %5768 = vmatpush1.bf16.msra.mxu0 %v9213_v22  ;;  %6260 = vmatpush1.bf16.msra.mxu1 %v9216_v23  ;;  %v9308_v22 = vld [vmem:[#allocation4 + $0x248] ss:$16 sps:$4 sm:$0xff]   ;;  %v9313_v23 = vld [vmem:[#allocation4 + $0x264] ss:$16 sps:$4 sm:$0xff]  }
  0xb7   :  { %5769 = vmatprep.subr.bf16.mxu0 %v9221_v24  ;;  %6261 = vmatprep.subr.bf16.mxu1 %v9224_v25  ;;  %v9316_v24 = vld [vmem:[#allocation4 + $0x26c] ss:$16 sps:$4 sm:$0xff]   ;;  %v9311_v25 = vld [vmem:[#allocation4 + $0x260] ss:$16 sps:$4 sm:$0xff]  }
  0xba   :  { %5770 = vmatpush1.bf16.msra.mxu0 %v9219_v26  ;;  %6262 = vmatpush1.bf16.msra.mxu1 %v9222_v27  ;;  %v9314_v26 = vld [vmem:[#allocation4 + $0x268] ss:$16 sps:$4 sm:$0xff]   ;;  %v9319_v27 = vld [vmem:[#allocation4 + $0x284] ss:$16 sps:$4 sm:$0xff]  }
  0xbb   :  { %5771 = vmatprep.subr.bf16.mxu0 %v9227_v28  ;;  %6263 = vmatprep.subr.bf16.mxu1 %v9230_v29  ;;  %v9322_v28 = vld [vmem:[#allocation4 + $0x28c] ss:$16 sps:$4 sm:$0xff]   ;;  %v9317_v29 = vld [vmem:[#allocation4 + $0x280] ss:$16 sps:$4 sm:$0xff]  }
  0xbe   :  { %5772 = vmatpush1.bf16.msra.mxu0 %v9225_v30  ;;  %6264 = vmatpush1.bf16.msra.mxu1 %v9228_v31  ;;  %v9320_v30 = vld [vmem:[#allocation4 + $0x288] ss:$16 sps:$4 sm:$0xff]   ;;  %v9325_v31 = vld [vmem:[#allocation4 + $0x2a4] ss:$16 sps:$4 sm:$0xff]  }
  0xbf   :  { %5773 = vmatprep.subr.bf16.mxu0 %v9233_v32  ;;  %6265 = vmatprep.subr.bf16.mxu1 %v9236_v33  ;;  %v9328_v32 = vld [vmem:[#allocation4 + $0x2ac] ss:$16 sps:$4 sm:$0xff]   ;;  %v9323_v33 = vld [vmem:[#allocation4 + $0x2a0] ss:$16 sps:$4 sm:$0xff]  }
  0xc2   :  { %5774 = vmatpush1.bf16.msra.mxu0 %v9231_v34  ;;  %6266 = vmatpush1.bf16.msra.mxu1 %v9234_v35  ;;  %v9326_v34 = vld [vmem:[#allocation4 + $0x2a8] ss:$16 sps:$4 sm:$0xff]   ;;  %v9331_v35 = vld [vmem:[#allocation4 + $0x2c4] ss:$16 sps:$4 sm:$0xff]  }
  0xc3   :  { %5775 = vmatprep.subr.bf16.mxu0 %v9239_v36  ;;  %6267 = vmatprep.subr.bf16.mxu1 %v9242_v37  ;;  %v9334_v36 = vld [vmem:[#allocation4 + $0x2cc] ss:$16 sps:$4 sm:$0xff]   ;;  %v9329_v37 = vld [vmem:[#allocation4 + $0x2c0] ss:$16 sps:$4 sm:$0xff]  }
  0xc6   :  { %5776 = vmatpush1.bf16.msra.mxu0 %v9237_v38  ;;  %6268 = vmatpush1.bf16.msra.mxu1 %v9240_v39  ;;  %v9332_v38 = vld [vmem:[#allocation4 + $0x2c8] ss:$16 sps:$4 sm:$0xff]   ;;  %v9337_v39 = vld [vmem:[#allocation4 + $0x2e4] ss:$16 sps:$4 sm:$0xff]  }
  0xc7   :  { %5777 = vmatprep.subr.bf16.mxu0 %v9245_v40  ;;  %6269 = vmatprep.subr.bf16.mxu1 %v9248_v41  ;;  %v9340_v40 = vld [vmem:[#allocation4 + $0x2ec] ss:$16 sps:$4 sm:$0xff]   ;;  %v9335_v41 = vld [vmem:[#allocation4 + $0x2e0] ss:$16 sps:$4 sm:$0xff]  }
  0xca   :  { %5778 = vmatpush1.bf16.msra.mxu0 %v9243_v42  ;;  %6270 = vmatpush1.bf16.msra.mxu1 %v9246_v43  ;;  %v9338_v42 = vld [vmem:[#allocation4 + $0x2e8] ss:$16 sps:$4 sm:$0xff]   ;;  %v9343_v43 = vld [vmem:[#allocation4 + $0x304] ss:$16 sps:$4 sm:$0xff]  }
  0xcb   :  { %5779 = vmatprep.subr.bf16.mxu0 %v9251_v44  ;;  %6271 = vmatprep.subr.bf16.mxu1 %v9254_v45  ;;  %v9346_v44 = vld [vmem:[#allocation4 + $0x30c] ss:$16 sps:$4 sm:$0xff]   ;;  %v9341_v45 = vld [vmem:[#allocation4 + $0x300] ss:$16 sps:$4 sm:$0xff]  }
  0xce   :  { %5780 = vmatpush1.bf16.msra.mxu0 %v9249_v46  ;;  %6272 = vmatpush1.bf16.msra.mxu1 %v9252_v47  ;;  %v9344_v46 = vld [vmem:[#allocation4 + $0x308] ss:$16 sps:$4 sm:$0xff]   ;;  %v9349_v47 = vld [vmem:[#allocation4 + $0x324] ss:$16 sps:$4 sm:$0xff]  }
  0xcf   :  { %5781 = vmatprep.subr.bf16.mxu0 %v9257_v48  ;;  %6273 = vmatprep.subr.bf16.mxu1 %v9260_v49  ;;  %v9352_v48 = vld [vmem:[#allocation4 + $0x32c] ss:$16 sps:$4 sm:$0xff]   ;;  %v9347_v49 = vld [vmem:[#allocation4 + $0x320] ss:$16 sps:$4 sm:$0xff]  }
  0xd2   :  { %5782 = vmatpush1.bf16.msra.mxu0 %v9255_v50  ;;  %6274 = vmatpush1.bf16.msra.mxu1 %v9258_v51  ;;  %v9350_v50 = vld [vmem:[#allocation4 + $0x328] ss:$16 sps:$4 sm:$0xff]   ;;  %v9355_v51 = vld [vmem:[#allocation4 + $0x344] ss:$16 sps:$4 sm:$0xff]  }
  0xd3   :  { %5783 = vmatprep.subr.bf16.mxu0 %v9263_v52  ;;  %6275 = vmatprep.subr.bf16.mxu1 %v9266_v53  ;;  %v9358_v52 = vld [vmem:[#allocation4 + $0x34c] ss:$16 sps:$4 sm:$0xff]   ;;  %v9353_v53 = vld [vmem:[#allocation4 + $0x340] ss:$16 sps:$4 sm:$0xff]  }
  0xd6   :  { %5784 = vmatpush1.bf16.msra.mxu0 %v9261_v54  ;;  %6276 = vmatpush1.bf16.msra.mxu1 %v9264_v55  ;;  %v9356_v54 = vld [vmem:[#allocation4 + $0x348] ss:$16 sps:$4 sm:$0xff]   ;;  %v9361_v55 = vld [vmem:[#allocation4 + $0x364] ss:$16 sps:$4 sm:$0xff]  }
  0xd7   :  { %5785 = vmatprep.subr.bf16.mxu0 %v9269_v56  ;;  %6277 = vmatprep.subr.bf16.mxu1 %v9272_v57  ;;  %v9364_v56 = vld [vmem:[#allocation4 + $0x36c] ss:$16 sps:$4 sm:$0xff]   ;;  %v9359_v57 = vld [vmem:[#allocation4 + $0x360] ss:$16 sps:$4 sm:$0xff]  }
  0xda   :  { %5786 = vmatpush1.bf16.msra.mxu0 %v9267_v58  ;;  %6278 = vmatpush1.bf16.msra.mxu1 %v9270_v59  ;;  %v9362_v58 = vld [vmem:[#allocation4 + $0x368] ss:$16 sps:$4 sm:$0xff]   ;;  %v9367_v59 = vld [vmem:[#allocation4 + $0x384] ss:$16 sps:$4 sm:$0xff]  }
  0xdb   :  { %5787 = vmatprep.subr.bf16.mxu0 %v9275_v60  ;;  %6279 = vmatprep.subr.bf16.mxu1 %v9278_v61  ;;  %v9370_v60 = vld [vmem:[#allocation4 + $0x38c] ss:$16 sps:$4 sm:$0xff]   ;;  %v9365_v61 = vld [vmem:[#allocation4 + $0x380] ss:$16 sps:$4 sm:$0xff]  }
  0xde   :  { %5788 = vmatpush1.bf16.msra.mxu0 %v9273_v62  ;;  %6280 = vmatpush1.bf16.msra.mxu1 %v9276_v63  ;;  %v9368_v62 = vld [vmem:[#allocation4 + $0x388] ss:$16 sps:$4 sm:$0xff]   ;;  %v9373_v63 = vld [vmem:[#allocation4 + $0x3a4] ss:$16 sps:$4 sm:$0xff]  }
  0xdf   :  { %5789 = vmatprep.subr.bf16.mxu0 %v9281_v0  ;;  %6281 = vmatprep.subr.bf16.mxu1 %v9284_v1  ;;  %v9376_v0 = vld [vmem:[#allocation4 + $0x3ac] ss:$16 sps:$4 sm:$0xff]   ;;  %v9371_v1 = vld [vmem:[#allocation4 + $0x3a0] ss:$16 sps:$4 sm:$0xff]  }
  0xe2   :  { %5790 = vmatpush1.bf16.msra.mxu0 %v9279_v2  ;;  %6282 = vmatpush1.bf16.msra.mxu1 %v9282_v3  ;;  %v9374_v2 = vld [vmem:[#allocation4 + $0x3a8] ss:$16 sps:$4 sm:$0xff]   ;;  %v9379_v3 = vld [vmem:[#allocation4 + $0x3c4] ss:$16 sps:$4 sm:$0xff]  }
  0xe3   :  { %5791 = vmatprep.subr.bf16.mxu0 %v9287_v4  ;;  %6283 = vmatprep.subr.bf16.mxu1 %v9290_v5  ;;  %v9382_v4 = vld [vmem:[#allocation4 + $0x3cc] ss:$16 sps:$4 sm:$0xff]   ;;  %v9377_v5 = vld [vmem:[#allocation4 + $0x3c0] ss:$16 sps:$4 sm:$0xff]  }
  0xe6   :  { %5792 = vmatpush1.bf16.msra.mxu0 %v9285_v6  ;;  %6284 = vmatpush1.bf16.msra.mxu1 %v9288_v7  ;;  %v9380_v6 = vld [vmem:[#allocation4 + $0x3c8] ss:$16 sps:$4 sm:$0xff]   ;;  %v9385_v7 = vld [vmem:[#allocation4 + $0x3e4] ss:$16 sps:$4 sm:$0xff]  }
  0xe7   :  { %5802 = vmatprep.subr.bf16.mxu0 %v9295_v8  ;;  %6294 = vmatprep.subr.bf16.mxu1 %v9298_v9  ;;  %v9388_v8 = vld [vmem:[#allocation4 + $0x3ec] ss:$16 sps:$4 sm:$0xff]   ;;  %v9383_v9 = vld [vmem:[#allocation4 + $0x3e0] ss:$16 sps:$4 sm:$0xff]  }
  0xe9   :  { %5794 = vmatmul.mubr.bf16.vlgmr.msra.gmra.mrb[4].mxu0 %v7870_v12  ;;  %6286 = vmatmul.mubr.bf16.vlgmr.msra.gmra.mrb[4].mxu1 %v7870_v12  ;;  %v9393_v12 = vld [vmem:[#allocation4 + $0x404] ss:$16 sps:$4 sm:$0xff]  }
  0xea   :  { %5803 = vmatpush1.bf16.msra.mxu0 %v9293_v10  ;;  %6295 = vmatpush1.bf16.msra.mxu1 %v9296_v13  ;;  %v9386_v10 = vld [vmem:[#allocation4 + $0x3e8] ss:$16 sps:$4 sm:$0xff]   ;;  %v9396_v13 = vld [vmem:[#allocation4 + $0x40c] ss:$16 sps:$4 sm:$0xff]  }
  0xeb   :  { %5804 = vmatprep.subr.bf16.mxu0 %v9301_v15  ;;  %6296 = vmatprep.subr.bf16.mxu1 %v9304_v16  ;;  %v9391_v15 = vld [vmem:[#allocation4 + $0x400] ss:$16 sps:$4 sm:$0xff]   ;;  %v7872_v16 = vcombine.low %v11084_v14, %v11084_v14 }
  0xec   :  { %5834 = vmatprep.mubr.bf16.mxu0 %v7873_v17  ;;  %6326 = vmatprep.mubr.bf16.mxu1 %v7873_v17  ;;  %v11093_v17 = vld [vmem:[%s11480_s0 + $0x10] sm:$0xff] }
  0xed   :  { %v9397_v14 = vld [vmem:[#allocation4 + $0x420] ss:$16 sps:$4 sm:$0xff]  }
  0xee   :  { %5805 = vmatpush1.bf16.msra.mxu0 %v9299_v18  ;;  %6297 = vmatpush1.bf16.msra.mxu1 %v9302_v19  ;;  %v9394_v18 = vld [vmem:[#allocation4 + $0x408] ss:$16 sps:$4 sm:$0xff]   ;;  %v9399_v19 = vld [vmem:[#allocation4 + $0x424] ss:$16 sps:$4 sm:$0xff]  }
  0xef   :  { %5806 = vmatprep.subr.bf16.mxu0 %v9307_v11  ;;  %6298 = vmatprep.subr.bf16.mxu1 %v9310_v20  ;;  %v9402_v11 = vld [vmem:[#allocation4 + $0x42c] ss:$16 sps:$4 sm:$0xff]   ;;  %v7875_v20 = vcombine.high %v11093_v17, %v11093_v17 }
  0xf2   :  { %5807 = vmatpush1.bf16.msra.mxu0 %v9305_v21  ;;  %6299 = vmatpush1.bf16.msra.mxu1 %v9308_v22  ;;  %v9400_v21 = vld [vmem:[#allocation4 + $0x428] ss:$16 sps:$4 sm:$0xff]   ;;  %v9405_v22 = vld [vmem:[#allocation4 + $0x444] ss:$16 sps:$4 sm:$0xff]  }
  0xf3   :  { %5808 = vmatprep.subr.bf16.mxu0 %v9313_v23  ;;  %6300 = vmatprep.subr.bf16.mxu1 %v9316_v24  ;;  %v9408_v23 = vld [vmem:[#allocation4 + $0x44c] ss:$16 sps:$4 sm:$0xff]   ;;  %v9403_v24 = vld [vmem:[#allocation4 + $0x440] ss:$16 sps:$4 sm:$0xff]  }
  0xf6   :  { %5809 = vmatpush1.bf16.msra.mxu0 %v9311_v25  ;;  %6301 = vmatpush1.bf16.msra.mxu1 %v9314_v26  ;;  %v9406_v25 = vld [vmem:[#allocation4 + $0x448] ss:$16 sps:$4 sm:$0xff]   ;;  %v9411_v26 = vld [vmem:[#allocation4 + $0x464] ss:$16 sps:$4 sm:$0xff]  }
  0xf7   :  { %5810 = vmatprep.subr.bf16.mxu0 %v9319_v27  ;;  %6302 = vmatprep.subr.bf16.mxu1 %v9322_v28  ;;  %v9414_v27 = vld [vmem:[#allocation4 + $0x46c] ss:$16 sps:$4 sm:$0xff]   ;;  %v9409_v28 = vld [vmem:[#allocation4 + $0x460] ss:$16 sps:$4 sm:$0xff]  }
  0xfa   :  { %5811 = vmatpush1.bf16.msra.mxu0 %v9317_v29  ;;  %6303 = vmatpush1.bf16.msra.mxu1 %v9320_v30  ;;  %v9412_v29 = vld [vmem:[#allocation4 + $0x468] ss:$16 sps:$4 sm:$0xff]   ;;  %v9417_v30 = vld [vmem:[#allocation4 + $0x484] ss:$16 sps:$4 sm:$0xff]  }
  0xfb   :  { %5812 = vmatprep.subr.bf16.mxu0 %v9325_v31  ;;  %6304 = vmatprep.subr.bf16.mxu1 %v9328_v32  ;;  %v9420_v31 = vld [vmem:[#allocation4 + $0x48c] ss:$16 sps:$4 sm:$0xff]   ;;  %v9415_v32 = vld [vmem:[#allocation4 + $0x480] ss:$16 sps:$4 sm:$0xff]  }
  0xfe   :  { %5813 = vmatpush1.bf16.msra.mxu0 %v9323_v33  ;;  %6305 = vmatpush1.bf16.msra.mxu1 %v9326_v34  ;;  %v9418_v33 = vld [vmem:[#allocation4 + $0x488] ss:$16 sps:$4 sm:$0xff]   ;;  %v9423_v34 = vld [vmem:[#allocation4 + $0x4a4] ss:$16 sps:$4 sm:$0xff]  }
  0xff   :  { %5814 = vmatprep.subr.bf16.mxu0 %v9331_v35  ;;  %6306 = vmatprep.subr.bf16.mxu1 %v9334_v36  ;;  %v9426_v35 = vld [vmem:[#allocation4 + $0x4ac] ss:$16 sps:$4 sm:$0xff]   ;;  %v9421_v36 = vld [vmem:[#allocation4 + $0x4a0] ss:$16 sps:$4 sm:$0xff]  }
 0x102   :  { %5815 = vmatpush1.bf16.msra.mxu0 %v9329_v37  ;;  %6307 = vmatpush1.bf16.msra.mxu1 %v9332_v38  ;;  %v9424_v37 = vld [vmem:[#allocation4 + $0x4a8] ss:$16 sps:$4 sm:$0xff]   ;;  %v9429_v38 = vld [vmem:[#allocation4 + $0x4c4] ss:$16 sps:$4 sm:$0xff]  }
 0x103   :  { %5816 = vmatprep.subr.bf16.mxu0 %v9337_v39  ;;  %6308 = vmatprep.subr.bf16.mxu1 %v9340_v40  ;;  %v9432_v39 = vld [vmem:[#allocation4 + $0x4cc] ss:$16 sps:$4 sm:$0xff]   ;;  %v9427_v40 = vld [vmem:[#allocation4 + $0x4c0] ss:$16 sps:$4 sm:$0xff]  }
 0x106   :  { %5817 = vmatpush1.bf16.msra.mxu0 %v9335_v41  ;;  %6309 = vmatpush1.bf16.msra.mxu1 %v9338_v42  ;;  %v9430_v41 = vld [vmem:[#allocation4 + $0x4c8] ss:$16 sps:$4 sm:$0xff]   ;;  %v9435_v42 = vld [vmem:[#allocation4 + $0x4e4] ss:$16 sps:$4 sm:$0xff]  }
 0x107   :  { %5818 = vmatprep.subr.bf16.mxu0 %v9343_v43  ;;  %6310 = vmatprep.subr.bf16.mxu1 %v9346_v44  ;;  %v9438_v43 = vld [vmem:[#allocation4 + $0x4ec] ss:$16 sps:$4 sm:$0xff]   ;;  %v9433_v44 = vld [vmem:[#allocation4 + $0x4e0] ss:$16 sps:$4 sm:$0xff]  }
 0x10a   :  { %5819 = vmatpush1.bf16.msra.mxu0 %v9341_v45  ;;  %6311 = vmatpush1.bf16.msra.mxu1 %v9344_v46  ;;  %v9436_v45 = vld [vmem:[#allocation4 + $0x4e8] ss:$16 sps:$4 sm:$0xff]   ;;  %v9441_v46 = vld [vmem:[#allocation4 + $0x504] ss:$16 sps:$4 sm:$0xff]  }
 0x10b   :  { %5820 = vmatprep.subr.bf16.mxu0 %v9349_v47  ;;  %6312 = vmatprep.subr.bf16.mxu1 %v9352_v48  ;;  %v9444_v47 = vld [vmem:[#allocation4 + $0x50c] ss:$16 sps:$4 sm:$0xff]   ;;  %v9439_v48 = vld [vmem:[#allocation4 + $0x500] ss:$16 sps:$4 sm:$0xff]  }
 0x10e   :  { %5821 = vmatpush1.bf16.msra.mxu0 %v9347_v49  ;;  %6313 = vmatpush1.bf16.msra.mxu1 %v9350_v50  ;;  %v9442_v49 = vld [vmem:[#allocation4 + $0x508] ss:$16 sps:$4 sm:$0xff]   ;;  %v9447_v50 = vld [vmem:[#allocation4 + $0x524] ss:$16 sps:$4 sm:$0xff]  }
 0x10f   :  { %5822 = vmatprep.subr.bf16.mxu0 %v9355_v51  ;;  %6314 = vmatprep.subr.bf16.mxu1 %v9358_v52  ;;  %v9450_v51 = vld [vmem:[#allocation4 + $0x52c] ss:$16 sps:$4 sm:$0xff]   ;;  %v9445_v52 = vld [vmem:[#allocation4 + $0x520] ss:$16 sps:$4 sm:$0xff]  }
 0x112   :  { %5823 = vmatpush1.bf16.msra.mxu0 %v9353_v53  ;;  %6315 = vmatpush1.bf16.msra.mxu1 %v9356_v54  ;;  %v9448_v53 = vld [vmem:[#allocation4 + $0x528] ss:$16 sps:$4 sm:$0xff]   ;;  %v9453_v54 = vld [vmem:[#allocation4 + $0x544] ss:$16 sps:$4 sm:$0xff]  }
 0x113   :  { %5824 = vmatprep.subr.bf16.mxu0 %v9361_v55  ;;  %6316 = vmatprep.subr.bf16.mxu1 %v9364_v56  ;;  %v9456_v55 = vld [vmem:[#allocation4 + $0x54c] ss:$16 sps:$4 sm:$0xff]   ;;  %v9451_v56 = vld [vmem:[#allocation4 + $0x540] ss:$16 sps:$4 sm:$0xff]  }
 0x116   :  { %5825 = vmatpush1.bf16.msra.mxu0 %v9359_v57  ;;  %6317 = vmatpush1.bf16.msra.mxu1 %v9362_v58  ;;  %v9454_v57 = vld [vmem:[#allocation4 + $0x548] ss:$16 sps:$4 sm:$0xff]   ;;  %v9459_v58 = vld [vmem:[#allocation4 + $0x564] ss:$16 sps:$4 sm:$0xff]  }
 0x117   :  { %5826 = vmatprep.subr.bf16.mxu0 %v9367_v59  ;;  %6318 = vmatprep.subr.bf16.mxu1 %v9370_v60  ;;  %v9462_v59 = vld [vmem:[#allocation4 + $0x56c] ss:$16 sps:$4 sm:$0xff]   ;;  %v9457_v60 = vld [vmem:[#allocation4 + $0x560] ss:$16 sps:$4 sm:$0xff]  }
 0x11a   :  { %5827 = vmatpush1.bf16.msra.mxu0 %v9365_v61  ;;  %6319 = vmatpush1.bf16.msra.mxu1 %v9368_v62  ;;  %v9460_v61 = vld [vmem:[#allocation4 + $0x568] ss:$16 sps:$4 sm:$0xff]   ;;  %v9465_v62 = vld [vmem:[#allocation4 + $0x584] ss:$16 sps:$4 sm:$0xff]  }
 0x11b   :  { %5828 = vmatprep.subr.bf16.mxu0 %v9373_v63  ;;  %6320 = vmatprep.subr.bf16.mxu1 %v9376_v0  ;;  %v9468_v63 = vld [vmem:[#allocation4 + $0x58c] ss:$16 sps:$4 sm:$0xff]   ;;  %v9463_v0 = vld [vmem:[#allocation4 + $0x580] ss:$16 sps:$4 sm:$0xff]  }
 0x11e   :  { %5829 = vmatpush1.bf16.msra.mxu0 %v9371_v1  ;;  %6321 = vmatpush1.bf16.msra.mxu1 %v9374_v2  ;;  %v9466_v1 = vld [vmem:[#allocation4 + $0x588] ss:$16 sps:$4 sm:$0xff]   ;;  %v9471_v2 = vld [vmem:[#allocation4 + $0x5a4] ss:$16 sps:$4 sm:$0xff]  }
 0x11f   :  { %5830 = vmatprep.subr.bf16.mxu0 %v9379_v3  ;;  %6322 = vmatprep.subr.bf16.mxu1 %v9382_v4  ;;  %v9474_v3 = vld [vmem:[#allocation4 + $0x5ac] ss:$16 sps:$4 sm:$0xff]   ;;  %v9469_v4 = vld [vmem:[#allocation4 + $0x5a0] ss:$16 sps:$4 sm:$0xff]  }
 0x122   :  { %5831 = vmatpush1.bf16.msra.mxu0 %v9377_v5  ;;  %6323 = vmatpush1.bf16.msra.mxu1 %v9380_v6  ;;  %v9472_v5 = vld [vmem:[#allocation4 + $0x5a8] ss:$16 sps:$4 sm:$0xff]   ;;  %v9477_v6 = vld [vmem:[#allocation4 + $0x5c4] ss:$16 sps:$4 sm:$0xff]  }
 0x123   :  { %5832 = vmatprep.subr.bf16.mxu0 %v9385_v7  ;;  %6324 = vmatprep.subr.bf16.mxu1 %v9388_v8  ;;  %v9480_v7 = vld [vmem:[#allocation4 + $0x5cc] ss:$16 sps:$4 sm:$0xff]   ;;  %v9475_v8 = vld [vmem:[#allocation4 + $0x5c0] ss:$16 sps:$4 sm:$0xff]  }
 0x126   :  { %5833 = vmatpush1.bf16.msra.mxu0 %v9383_v9  ;;  %6325 = vmatpush1.bf16.msra.mxu1 %v9386_v10  ;;  %v9478_v9 = vld [vmem:[#allocation4 + $0x5c8] ss:$16 sps:$4 sm:$0xff]   ;;  %v9483_v10 = vld [vmem:[#allocation4 + $0x5e4] ss:$16 sps:$4 sm:$0xff]  }
 0x127   :  { %5843 = vmatprep.subr.bf16.mxu0 %v9393_v12  ;;  %6335 = vmatprep.subr.bf16.mxu1 %v9396_v13  ;;  %v9486_v12 = vld [vmem:[#allocation4 + $0x5ec] ss:$16 sps:$4 sm:$0xff]   ;;  %v9481_v13 = vld [vmem:[#allocation4 + $0x5e0] ss:$16 sps:$4 sm:$0xff]  }
 0x129   :  { %5835 = vmatmul.mubr.bf16.vlgmr.msra.gmra.mrb[4].mxu0 %v7872_v16  ;;  %6327 = vmatmul.mubr.bf16.vlgmr.msra.gmra.mrb[4].mxu1 %v7872_v16  ;;  %v9491_v16 = vld [vmem:[#allocation4 + $0x604] ss:$16 sps:$4 sm:$0xff]  }
 0x12a   :  { %5844 = vmatpush1.bf16.msra.mxu0 %v9391_v15  ;;  %6336 = vmatpush1.bf16.msra.mxu1 %v9394_v18  ;;  %v9484_v15 = vld [vmem:[#allocation4 + $0x5e8] ss:$16 sps:$4 sm:$0xff]   ;;  %v9494_v18 = vld [vmem:[#allocation4 + $0x60c] ss:$16 sps:$4 sm:$0xff]  }
 0x12b   :  { %5845 = vmatprep.subr.bf16.mxu0 %v9399_v19  ;;  %6337 = vmatprep.subr.bf16.mxu1 %v9402_v11  ;;  %v11100_v19 = vld [vmem:[%s11480_s0 + $0x18] sm:$0xff]  ;;  %v7874_v11 = vcombine.low %v11093_v17, %v11093_v17  ;;  %v9503_v17 = vld [vmem:[#allocation4 + $0x644] ss:$16 sps:$4 sm:$0xff]  }
 0x12c   :  { %5875 = vmatprep.mubr.bf16.mxu0 %v7875_v20  ;;  %6367 = vmatprep.mubr.bf16.mxu1 %v7875_v20  ;;  %v9489_v20 = vld [vmem:[#allocation4 + $0x600] ss:$16 sps:$4 sm:$0xff]  }
 0x12e   :  { %5846 = vmatpush1.bf16.msra.mxu0 %v9397_v14  ;;  %6338 = vmatpush1.bf16.msra.mxu1 %v9400_v21  ;;  %v9492_v14 = vld [vmem:[#allocation4 + $0x608] ss:$16 sps:$4 sm:$0xff]   ;;  %v9497_v21 = vld [vmem:[#allocation4 + $0x624] ss:$16 sps:$4 sm:$0xff]  }
 0x12f   :  { %5847 = vmatprep.subr.bf16.mxu0 %v9405_v22  ;;  %6339 = vmatprep.subr.bf16.mxu1 %v9408_v23  ;;  %v9500_v22 = vld [vmem:[#allocation4 + $0x62c] ss:$16 sps:$4 sm:$0xff]   ;;  %v7877_v23 = vcombine.high %v11100_v19, %v11100_v19 }
 0x132   :  { %5848 = vmatpush1.bf16.msra.mxu0 %v9403_v24  ;;  %6340 = vmatpush1.bf16.msra.mxu1 %v9406_v25  ;;  %v9495_v24 = vld [vmem:[#allocation4 + $0x620] ss:$16 sps:$4 sm:$0xff]   ;;  %v9498_v25 = vld [vmem:[#allocation4 + $0x628] ss:$16 sps:$4 sm:$0xff]  }
 0x133   :  { %5849 = vmatprep.subr.bf16.mxu0 %v9411_v26  ;;  %6341 = vmatprep.subr.bf16.mxu1 %v9414_v27  ;;  %v9506_v26 = vld [vmem:[#allocation4 + $0x64c] ss:$16 sps:$4 sm:$0xff]   ;;  %v9501_v27 = vld [vmem:[#allocation4 + $0x640] ss:$16 sps:$4 sm:$0xff]  }
 0x136   :  { %5850 = vmatpush1.bf16.msra.mxu0 %v9409_v28  ;;  %6342 = vmatpush1.bf16.msra.mxu1 %v9412_v29  ;;  %v9504_v28 = vld [vmem:[#allocation4 + $0x648] ss:$16 sps:$4 sm:$0xff]   ;;  %v9509_v29 = vld [vmem:[#allocation4 + $0x664] ss:$16 sps:$4 sm:$0xff]  }
 0x137   :  { %5851 = vmatprep.subr.bf16.mxu0 %v9417_v30  ;;  %6343 = vmatprep.subr.bf16.mxu1 %v9420_v31  ;;  %v9512_v30 = vld [vmem:[#allocation4 + $0x66c] ss:$16 sps:$4 sm:$0xff]   ;;  %v9507_v31 = vld [vmem:[#allocation4 + $0x660] ss:$16 sps:$4 sm:$0xff]  }
 0x13a   :  { %5852 = vmatpush1.bf16.msra.mxu0 %v9415_v32  ;;  %6344 = vmatpush1.bf16.msra.mxu1 %v9418_v33  ;;  %v9510_v32 = vld [vmem:[#allocation4 + $0x668] ss:$16 sps:$4 sm:$0xff]   ;;  %v9515_v33 = vld [vmem:[#allocation4 + $0x684] ss:$16 sps:$4 sm:$0xff]  }
 0x13b   :  { %5853 = vmatprep.subr.bf16.mxu0 %v9423_v34  ;;  %6345 = vmatprep.subr.bf16.mxu1 %v9426_v35  ;;  %v9518_v34 = vld [vmem:[#allocation4 + $0x68c] ss:$16 sps:$4 sm:$0xff]   ;;  %v9513_v35 = vld [vmem:[#allocation4 + $0x680] ss:$16 sps:$4 sm:$0xff]  }
 0x13e   :  { %5854 = vmatpush1.bf16.msra.mxu0 %v9421_v36  ;;  %6346 = vmatpush1.bf16.msra.mxu1 %v9424_v37  ;;  %v9516_v36 = vld [vmem:[#allocation4 + $0x688] ss:$16 sps:$4 sm:$0xff]   ;;  %v9521_v37 = vld [vmem:[#allocation4 + $0x6a4] ss:$16 sps:$4 sm:$0xff]  }
 0x13f   :  { %5855 = vmatprep.subr.bf16.mxu0 %v9429_v38  ;;  %6347 = vmatprep.subr.bf16.mxu1 %v9432_v39  ;;  %v9524_v38 = vld [vmem:[#allocation4 + $0x6ac] ss:$16 sps:$4 sm:$0xff]   ;;  %v9519_v39 = vld [vmem:[#allocation4 + $0x6a0] ss:$16 sps:$4 sm:$0xff]  }
 0x142   :  { %5856 = vmatpush1.bf16.msra.mxu0 %v9427_v40  ;;  %6348 = vmatpush1.bf16.msra.mxu1 %v9430_v41  ;;  %v9522_v40 = vld [vmem:[#allocation4 + $0x6a8] ss:$16 sps:$4 sm:$0xff]   ;;  %v9527_v41 = vld [vmem:[#allocation4 + $0x6c4] ss:$16 sps:$4 sm:$0xff]  }
 0x143   :  { %5857 = vmatprep.subr.bf16.mxu0 %v9435_v42  ;;  %6349 = vmatprep.subr.bf16.mxu1 %v9438_v43  ;;  %v9530_v42 = vld [vmem:[#allocation4 + $0x6cc] ss:$16 sps:$4 sm:$0xff]  }
 0x146   :  { %5858 = vmatpush1.bf16.msra.mxu0 %v9433_v44  ;;  %6350 = vmatpush1.bf16.msra.mxu1 %v9436_v45 }
 0x147   :  { %5859 = vmatprep.subr.bf16.mxu0 %v9441_v46  ;;  %6351 = vmatprep.subr.bf16.mxu1 %v9444_v47 }
 0x14a   :  { %5860 = vmatpush1.bf16.msra.mxu0 %v9439_v48  ;;  %6352 = vmatpush1.bf16.msra.mxu1 %v9442_v49  ;;  %v9525_v49 = vld [vmem:[#allocation4 + $0x6c0] ss:$16 sps:$4 sm:$0xff]  }
 0x14b   :  { %5861 = vmatprep.subr.bf16.mxu0 %v9447_v50  ;;  %6353 = vmatprep.subr.bf16.mxu1 %v9450_v51  ;;  %v9528_v50 = vld [vmem:[#allocation4 + $0x6c8] ss:$16 sps:$4 sm:$0xff]  }
 0x14e   :  { %5862 = vmatpush1.bf16.msra.mxu0 %v9445_v52  ;;  %6354 = vmatpush1.bf16.msra.mxu1 %v9448_v53  ;;  %v9533_v53 = vld [vmem:[#allocation4 + $0x6e4] ss:$16 sps:$4 sm:$0xff]  }
 0x14f   :  { %5863 = vmatprep.subr.bf16.mxu0 %v9453_v54  ;;  %6355 = vmatprep.subr.bf16.mxu1 %v9456_v55  ;;  %v9536_v54 = vld [vmem:[#allocation4 + $0x6ec] ss:$16 sps:$4 sm:$0xff]   ;;  %v9531_v55 = vld [vmem:[#allocation4 + $0x6e0] ss:$16 sps:$4 sm:$0xff]  }
 0x152   :  { %5864 = vmatpush1.bf16.msra.mxu0 %v9451_v56  ;;  %6356 = vmatpush1.bf16.msra.mxu1 %v9454_v57  ;;  %v9534_v56 = vld [vmem:[#allocation4 + $0x6e8] ss:$16 sps:$4 sm:$0xff]   ;;  %v9539_v57 = vld [vmem:[#allocation4 + $0x704] ss:$16 sps:$4 sm:$0xff]  }
 0x153   :  { %5865 = vmatprep.subr.bf16.mxu0 %v9459_v58  ;;  %6357 = vmatprep.subr.bf16.mxu1 %v9462_v59  ;;  %v9542_v58 = vld [vmem:[#allocation4 + $0x70c] ss:$16 sps:$4 sm:$0xff]   ;;  %v9537_v59 = vld [vmem:[#allocation4 + $0x700] ss:$16 sps:$4 sm:$0xff]  }
 0x156   :  { %5866 = vmatpush1.bf16.msra.mxu0 %v9457_v60  ;;  %6358 = vmatpush1.bf16.msra.mxu1 %v9460_v61  ;;  %v9540_v60 = vld [vmem:[#allocation4 + $0x708] ss:$16 sps:$4 sm:$0xff]   ;;  %v9545_v61 = vld [vmem:[#allocation4 + $0x724] ss:$16 sps:$4 sm:$0xff]  }
 0x157   :  { %5867 = vmatprep.subr.bf16.mxu0 %v9465_v62  ;;  %6359 = vmatprep.subr.bf16.mxu1 %v9468_v63  ;;  %v9548_v62 = vld [vmem:[#allocation4 + $0x72c] ss:$16 sps:$4 sm:$0xff]   ;;  %v9543_v63 = vld [vmem:[#allocation4 + $0x720] ss:$16 sps:$4 sm:$0xff]  }
 0x15a   :  { %5868 = vmatpush1.bf16.msra.mxu0 %v9463_v0  ;;  %6360 = vmatpush1.bf16.msra.mxu1 %v9466_v1  ;;  %v9546_v0 = vld [vmem:[#allocation4 + $0x728] ss:$16 sps:$4 sm:$0xff]   ;;  %v9551_v1 = vld [vmem:[#allocation4 + $0x744] ss:$16 sps:$4 sm:$0xff]  }
 0x15b   :  { %5869 = vmatprep.subr.bf16.mxu0 %v9471_v2  ;;  %6361 = vmatprep.subr.bf16.mxu1 %v9474_v3  ;;  %v9554_v2 = vld [vmem:[#allocation4 + $0x74c] ss:$16 sps:$4 sm:$0xff]   ;;  %v9549_v3 = vld [vmem:[#allocation4 + $0x740] ss:$16 sps:$4 sm:$0xff]  }
 0x15e   :  { %5870 = vmatpush1.bf16.msra.mxu0 %v9469_v4  ;;  %6362 = vmatpush1.bf16.msra.mxu1 %v9472_v5  ;;  %v9552_v4 = vld [vmem:[#allocation4 + $0x748] ss:$16 sps:$4 sm:$0xff]   ;;  %v9557_v5 = vld [vmem:[#allocation4 + $0x764] ss:$16 sps:$4 sm:$0xff]  }
 0x15f   :  { %5871 = vmatprep.subr.bf16.mxu0 %v9477_v6  ;;  %6363 = vmatprep.subr.bf16.mxu1 %v9480_v7  ;;  %v9560_v6 = vld [vmem:[#allocation4 + $0x76c] ss:$16 sps:$4 sm:$0xff]   ;;  %v9555_v7 = vld [vmem:[#allocation4 + $0x760] ss:$16 sps:$4 sm:$0xff]  }
 0x162   :  { %5872 = vmatpush1.bf16.msra.mxu0 %v9475_v8  ;;  %6364 = vmatpush1.bf16.msra.mxu1 %v9478_v9  ;;  %v9558_v8 = vld [vmem:[#allocation4 + $0x768] ss:$16 sps:$4 sm:$0xff]   ;;  %v9563_v9 = vld [vmem:[#allocation4 + $0x784] ss:$16 sps:$4 sm:$0xff]  }
 0x163   :  { %5873 = vmatprep.subr.bf16.mxu0 %v9483_v10  ;;  %6365 = vmatprep.subr.bf16.mxu1 %v9486_v12  ;;  %v9566_v10 = vld [vmem:[#allocation4 + $0x78c] ss:$16 sps:$4 sm:$0xff]   ;;  %v9561_v12 = vld [vmem:[#allocation4 + $0x780] ss:$16 sps:$4 sm:$0xff]  }
 0x166   :  { %5874 = vmatpush1.bf16.msra.mxu0 %v9481_v13  ;;  %6366 = vmatpush1.bf16.msra.mxu1 %v9484_v15  ;;  %v9564_v13 = vld [vmem:[#allocation4 + $0x788] ss:$16 sps:$4 sm:$0xff]   ;;  %v9569_v15 = vld [vmem:[#allocation4 + $0x7a4] ss:$16 sps:$4 sm:$0xff]  }
 0x167   :  { %5884 = vmatprep.subr.bf16.mxu0 %v9491_v16  ;;  %6376 = vmatprep.subr.bf16.mxu1 %v9494_v18  ;;  %v9572_v16 = vld [vmem:[#allocation4 + $0x7ac] ss:$16 sps:$4 sm:$0xff]   ;;  %v9567_v18 = vld [vmem:[#allocation4 + $0x7a0] ss:$16 sps:$4 sm:$0xff]  }
 0x169   :  { %5876 = vmatmul.mubr.bf16.vlgmr.msra.gmra.mrb[4].mxu0 %v7874_v11  ;;  %6368 = vmatmul.mubr.bf16.vlgmr.msra.gmra.mrb[4].mxu1 %v7874_v11  ;;  %v9570_v11 = vld [vmem:[#allocation4 + $0x7a8] ss:$16 sps:$4 sm:$0xff]  }
 0x16a   :  { %5885 = vmatpush1.bf16.msra.mxu0 %v9489_v20  ;;  %6377 = vmatpush1.bf16.msra.mxu1 %v9492_v14  ;;  %v9575_v20 = vld [vmem:[#allocation4 + $0x7c4] ss:$16 sps:$4 sm:$0xff]   ;;  %v9578_v14 = vld [vmem:[#allocation4 + $0x7cc] ss:$16 sps:$4 sm:$0xff]  }
 0x16b   :  { %5886 = vmatprep.subr.bf16.mxu0 %v9497_v21  ;;  %6378 = vmatprep.subr.bf16.mxu1 %v9500_v22  ;;  %v9573_v21 = vld [vmem:[#allocation4 + $0x7c0] ss:$16 sps:$4 sm:$0xff]   ;;  %v9576_v22 = vld [vmem:[#allocation4 + $0x7c8] ss:$16 sps:$4 sm:$0xff]  }
 0x16c   :  { %5916 = vmatprep.mubr.bf16.mxu0 %v7877_v23  ;;  %6408 = vmatprep.mubr.bf16.mxu1 %v7877_v23  ;;  %v9581_v23 = vld [vmem:[#allocation4 + $0x7e4] ss:$16 sps:$4 sm:$0xff]  }
 0x16e   :  { %5887 = vmatpush1.bf16.msra.mxu0 %v9495_v24  ;;  %6379 = vmatpush1.bf16.msra.mxu1 %v9498_v25  ;;  %v9584_v24 = vld [vmem:[#allocation4 + $0x7ec] ss:$16 sps:$4 sm:$0xff]   ;;  %v9579_v25 = vld [vmem:[#allocation4 + $0x7e0] ss:$16 sps:$4 sm:$0xff]  }
 0x16f   :  { %5888 = vmatprep.subr.bf16.mxu0 %v9503_v17  ;;  %6380 = vmatprep.subr.bf16.mxu1 %v9506_v26  ;;  %v9582_v17 = vld [vmem:[#allocation4 + $0x7e8] ss:$16 sps:$4 sm:$0xff]   ;;  %v9589_v26 = vld [vmem:[#allocation4 + $0x804] ss:$16 sps:$4 sm:$0xff]  }
 0x172   :  { %5889 = vmatpush1.bf16.msra.mxu0 %v9501_v27  ;;  %6381 = vmatpush1.bf16.msra.mxu1 %v9504_v28  ;;  %v9592_v27 = vld [vmem:[#allocation4 + $0x80c] ss:$16 sps:$4 sm:$0xff]   ;;  %v11117_v28 = vld [vmem:[%s11480_s0 + $0x20] sm:$0xff] }
 0x173   :  { %5890 = vmatprep.subr.bf16.mxu0 %v9509_v29  ;;  %6382 = vmatprep.subr.bf16.mxu1 %v9512_v30  ;;  %v7876_v29 = vcombine.low %v11100_v19, %v11100_v19  ;;  %v9587_v30 = vld [vmem:[#allocation4 + $0x800] ss:$16 sps:$4 sm:$0xff]   ;;  %v9601_v19 = vld [vmem:[#allocation4 + $0x844] ss:$16 sps:$4 sm:$0xff]  }
 0x176   :  { %5891 = vmatpush1.bf16.msra.mxu0 %v9507_v31  ;;  %6383 = vmatpush1.bf16.msra.mxu1 %v9510_v32  ;;  %v9590_v31 = vld [vmem:[#allocation4 + $0x808] ss:$16 sps:$4 sm:$0xff]   ;;  %v9595_v32 = vld [vmem:[#allocation4 + $0x824] ss:$16 sps:$4 sm:$0xff]  }
 0x177   :  { %5892 = vmatprep.subr.bf16.mxu0 %v9515_v33  ;;  %6384 = vmatprep.subr.bf16.mxu1 %v9518_v34  ;;  %v9598_v33 = vld [vmem:[#allocation4 + $0x82c] ss:$16 sps:$4 sm:$0xff]   ;;  %v7879_v34 = vcombine.high %v11117_v28, %v11117_v28 }
 0x17a   :  { %5893 = vmatpush1.bf16.msra.mxu0 %v9513_v35  ;;  %6385 = vmatpush1.bf16.msra.mxu1 %v9516_v36  ;;  %v9593_v35 = vld [vmem:[#allocation4 + $0x820] ss:$16 sps:$4 sm:$0xff]   ;;  %v9596_v36 = vld [vmem:[#allocation4 + $0x828] ss:$16 sps:$4 sm:$0xff]  }
 0x17b   :  { %5894 = vmatprep.subr.bf16.mxu0 %v9521_v37  ;;  %6386 = vmatprep.subr.bf16.mxu1 %v9524_v38  ;;  %v9604_v37 = vld [vmem:[#allocation4 + $0x84c] ss:$16 sps:$4 sm:$0xff]   ;;  %v9599_v38 = vld [vmem:[#allocation4 + $0x840] ss:$16 sps:$4 sm:$0xff]  }
 0x17c   :  { %v11106_v43 = vpop.f32.mrb[0].mxu0  ;;  %v11108_v44 = vpop.f32.mrb[0].mxu1 }
 0x17d   :  { %v11110_v45 = vpop.f32.mrb[1].mxu0  ;;  %v11112_v46 = vpop.f32.mrb[1].mxu1 }
 0x17e   :  { %v940_v47 = vpop.f32.mrb[2].mxu0  ;;  %v1022_v48 = vpop.f32.mrb[2].mxu1  ;;  %5895 = vmatpush1.bf16.msra.mxu0 %v9519_v39  ;;  %6387 = vmatpush1.bf16.msra.mxu1 %v9522_v40  ;;  %v9602_v39 = vld [vmem:[#allocation4 + $0x848] ss:$16 sps:$4 sm:$0xff]   ;;  %v9607_v40 = vld [vmem:[#allocation4 + $0x864] ss:$16 sps:$4 sm:$0xff]  }
 0x17f   :  { %v941_v51 = vpop.f32.mrb[3].mxu0  ;;  %v1023_v52 = vpop.f32.mrb[3].mxu1  ;;  %5896 = vmatprep.subr.bf16.mxu0 %v9527_v41  ;;  %6388 = vmatprep.subr.bf16.mxu1 %v9530_v42  ;;  %v9610_v41 = vld [vmem:[#allocation4 + $0x86c] ss:$16 sps:$4 sm:$0xff]   ;;  %v9605_v42 = vld [vmem:[#allocation4 + $0x860] ss:$16 sps:$4 sm:$0xff]  }
 0x180   :  { %v9608_v47 = vld [vmem:[#allocation4 + $0x868] ss:$16 sps:$4 sm:$0xff]   ;;  %v9613_v48 = vld [vmem:[#allocation4 + $0x884] ss:$16 sps:$4 sm:$0xff]  }
 0x181   :  { %v9614_v51 = vld [vmem:[#allocation4 + $0x888] ss:$16 sps:$4 sm:$0xff]   ;;  %v9619_v52 = vld [vmem:[#allocation4 + $0x8a4] ss:$16 sps:$4 sm:$0xff]  }
 0x182   :  { %5897 = vmatpush1.bf16.msra.mxu0 %v9525_v49  ;;  %6389 = vmatpush1.bf16.msra.mxu1 %v9528_v50  ;;  %v9616_v49 = vld [vmem:[#allocation4 + $0x88c] ss:$16 sps:$4 sm:$0xff]   ;;  %v9611_v50 = vld [vmem:[#allocation4 + $0x880] ss:$16 sps:$4 sm:$0xff]  }
 0x183   :  { %5898 = vmatprep.subr.bf16.mxu0 %v9533_v53  ;;  %6390 = vmatprep.subr.bf16.mxu1 %v9536_v54  ;;  %v9622_v53 = vld [vmem:[#allocation4 + $0x8ac] ss:$16 sps:$4 sm:$0xff]   ;;  %v9617_v54 = vld [vmem:[#allocation4 + $0x8a0] ss:$16 sps:$4 sm:$0xff]  }
 0x186   :  { %5899 = vmatpush1.bf16.msra.mxu0 %v9531_v55  ;;  %6391 = vmatpush1.bf16.msra.mxu1 %v9534_v56  ;;  %v9620_v55 = vld [vmem:[#allocation4 + $0x8a8] ss:$16 sps:$4 sm:$0xff]   ;;  %v9625_v56 = vld [vmem:[#allocation4 + $0x8c4] ss:$16 sps:$4 sm:$0xff]  }
 0x187   :  { %5900 = vmatprep.subr.bf16.mxu0 %v9539_v57  ;;  %6392 = vmatprep.subr.bf16.mxu1 %v9542_v58  ;;  %v9628_v57 = vld [vmem:[#allocation4 + $0x8cc] ss:$16 sps:$4 sm:$0xff]   ;;  %v9623_v58 = vld [vmem:[#allocation4 + $0x8c0] ss:$16 sps:$4 sm:$0xff]  }
 0x18a   :  { %5901 = vmatpush1.bf16.msra.mxu0 %v9537_v59  ;;  %6393 = vmatpush1.bf16.msra.mxu1 %v9540_v60  ;;  %v9626_v59 = vld [vmem:[#allocation4 + $0x8c8] ss:$16 sps:$4 sm:$0xff]   ;;  %v9631_v60 = vld [vmem:[#allocation4 + $0x8e4] ss:$16 sps:$4 sm:$0xff]  }
 0x18b   :  { %5902 = vmatprep.subr.bf16.mxu0 %v9545_v61  ;;  %6394 = vmatprep.subr.bf16.mxu1 %v9548_v62  ;;  %v9634_v61 = vld [vmem:[#allocation4 + $0x8ec] ss:$16 sps:$4 sm:$0xff]   ;;  %v9629_v62 = vld [vmem:[#allocation4 + $0x8e0] ss:$16 sps:$4 sm:$0xff]  }
 0x18e   :  { %5903 = vmatpush1.bf16.msra.mxu0 %v9543_v63  ;;  %6395 = vmatpush1.bf16.msra.mxu1 %v9546_v0  ;;  %v9632_v63 = vld [vmem:[#allocation4 + $0x8e8] ss:$16 sps:$4 sm:$0xff]   ;;  %v9637_v0 = vld [vmem:[#allocation4 + $0x904] ss:$16 sps:$4 sm:$0xff]  }
 0x18f   :  { %5904 = vmatprep.subr.bf16.mxu0 %v9551_v1  ;;  %6396 = vmatprep.subr.bf16.mxu1 %v9554_v2  ;;  %v9640_v1 = vld [vmem:[#allocation4 + $0x90c] ss:$16 sps:$4 sm:$0xff]   ;;  %v9635_v2 = vld [vmem:[#allocation4 + $0x900] ss:$16 sps:$4 sm:$0xff]  }
 0x192   :  { %5905 = vmatpush1.bf16.msra.mxu0 %v9549_v3  ;;  %6397 = vmatpush1.bf16.msra.mxu1 %v9552_v4  ;;  %v9638_v3 = vld [vmem:[#allocation4 + $0x908] ss:$16 sps:$4 sm:$0xff]   ;;  %v9643_v4 = vld [vmem:[#allocation4 + $0x924] ss:$16 sps:$4 sm:$0xff]  }
 0x193   :  { %5906 = vmatprep.subr.bf16.mxu0 %v9557_v5  ;;  %6398 = vmatprep.subr.bf16.mxu1 %v9560_v6  ;;  %v9646_v5 = vld [vmem:[#allocation4 + $0x92c] ss:$16 sps:$4 sm:$0xff]   ;;  %v9641_v6 = vld [vmem:[#allocation4 + $0x920] ss:$16 sps:$4 sm:$0xff]  }
 0x196   :  { %5907 = vmatpush1.bf16.msra.mxu0 %v9555_v7  ;;  %6399 = vmatpush1.bf16.msra.mxu1 %v9558_v8  ;;  %v9644_v7 = vld [vmem:[#allocation4 + $0x928] ss:$16 sps:$4 sm:$0xff]   ;;  %v9649_v8 = vld [vmem:[#allocation4 + $0x944] ss:$16 sps:$4 sm:$0xff]  }
 0x197   :  { %5908 = vmatprep.subr.bf16.mxu0 %v9563_v9  ;;  %6400 = vmatprep.subr.bf16.mxu1 %v9566_v10  ;;  %v9652_v9 = vld [vmem:[#allocation4 + $0x94c] ss:$16 sps:$4 sm:$0xff]   ;;  %v9647_v10 = vld [vmem:[#allocation4 + $0x940] ss:$16 sps:$4 sm:$0xff]  }
 0x19a   :  { %5909 = vmatpush1.bf16.msra.mxu0 %v9561_v12  ;;  %6401 = vmatpush1.bf16.msra.mxu1 %v9564_v13  ;;  %v9650_v12 = vld [vmem:[#allocation4 + $0x948] ss:$16 sps:$4 sm:$0xff]   ;;  %v9655_v13 = vld [vmem:[#allocation4 + $0x964] ss:$16 sps:$4 sm:$0xff]  }
 0x19b   :  { %5910 = vmatprep.subr.bf16.mxu0 %v9569_v15  ;;  %6402 = vmatprep.subr.bf16.mxu1 %v9572_v16  ;;  %v9658_v15 = vld [vmem:[#allocation4 + $0x96c] ss:$16 sps:$4 sm:$0xff]   ;;  %v9653_v16 = vld [vmem:[#allocation4 + $0x960] ss:$16 sps:$4 sm:$0xff]  }
 0x19e   :  { %5911 = vmatpush1.bf16.msra.mxu0 %v9567_v18  ;;  %6403 = vmatpush1.bf16.msra.mxu1 %v9570_v11  ;;  %v9656_v18 = vld [vmem:[#allocation4 + $0x968] ss:$16 sps:$4 sm:$0xff]   ;;  %v9661_v11 = vld [vmem:[#allocation4 + $0x984] ss:$16 sps:$4 sm:$0xff]  }
 0x19f   :  { %5912 = vmatprep.subr.bf16.mxu0 %v9575_v20  ;;  %6404 = vmatprep.subr.bf16.mxu1 %v9578_v14  ;;  %v9664_v20 = vld [vmem:[#allocation4 + $0x98c] ss:$16 sps:$4 sm:$0xff]   ;;  %v9659_v14 = vld [vmem:[#allocation4 + $0x980] ss:$16 sps:$4 sm:$0xff]  }
 0x1a2   :  { %5913 = vmatpush1.bf16.msra.mxu0 %v9573_v21  ;;  %6405 = vmatpush1.bf16.msra.mxu1 %v9576_v22  ;;  %v9662_v21 = vld [vmem:[#allocation4 + $0x988] ss:$16 sps:$4 sm:$0xff]   ;;  %v9667_v22 = vld [vmem:[#allocation4 + $0x9a4] ss:$16 sps:$4 sm:$0xff]  }
 0x1a3   :  { %5914 = vmatprep.subr.bf16.mxu0 %v9581_v23  ;;  %6406 = vmatprep.subr.bf16.mxu1 %v9584_v24  ;;  %v9670_v23 = vld [vmem:[#allocation4 + $0x9ac] ss:$16 sps:$4 sm:$0xff]   ;;  %v9665_v24 = vld [vmem:[#allocation4 + $0x9a0] ss:$16 sps:$4 sm:$0xff]  }
 0x1a6   :  { %5915 = vmatpush1.bf16.msra.mxu0 %v9579_v25  ;;  %6407 = vmatpush1.bf16.msra.mxu1 %v9582_v17  ;;  %v9668_v25 = vld [vmem:[#allocation4 + $0x9a8] ss:$16 sps:$4 sm:$0xff]   ;;  %v9673_v17 = vld [vmem:[#allocation4 + $0x9c4] ss:$16 sps:$4 sm:$0xff]  }
 0x1a7   :  { %5925 = vmatprep.subr.bf16.mxu0 %v9589_v26  ;;  %6417 = vmatprep.subr.bf16.mxu1 %v9592_v27  ;;  %v9676_v26 = vld [vmem:[#allocation4 + $0x9cc] ss:$16 sps:$4 sm:$0xff]   ;;  %v9671_v27 = vld [vmem:[#allocation4 + $0x9c0] ss:$16 sps:$4 sm:$0xff]  }
 0x1a9   :  { %5917 = vmatmul.mubr.bf16.vlgmr.msra.gmra.mrb[4].mxu0 %v7876_v29  ;;  %6409 = vmatmul.mubr.bf16.vlgmr.msra.gmra.mrb[4].mxu1 %v7876_v29  ;;  %v9674_v29 = vld [vmem:[#allocation4 + $0x9c8] ss:$16 sps:$4 sm:$0xff]  }
 0x1aa   :  { %5926 = vmatpush1.bf16.msra.mxu0 %v9587_v30  ;;  %6418 = vmatpush1.bf16.msra.mxu1 %v9590_v31  ;;  %v9679_v30 = vld [vmem:[#allocation4 + $0x9e4] ss:$16 sps:$4 sm:$0xff]   ;;  %v9682_v31 = vld [vmem:[#allocation4 + $0x9ec] ss:$16 sps:$4 sm:$0xff]  }
 0x1ab   :  { %5927 = vmatprep.subr.bf16.mxu0 %v9595_v32  ;;  %6419 = vmatprep.subr.bf16.mxu1 %v9598_v33  ;;  %v9677_v32 = vld [vmem:[#allocation4 + $0x9e0] ss:$16 sps:$4 sm:$0xff]   ;;  %v9680_v33 = vld [vmem:[#allocation4 + $0x9e8] ss:$16 sps:$4 sm:$0xff]  }
 0x1ac   :  { %5957 = vmatprep.mubr.bf16.mxu0 %v7879_v34  ;;  %6449 = vmatprep.mubr.bf16.mxu1 %v7879_v34  ;;  %v9687_v34 = vld [vmem:[#allocation4 + $0xa04] ss:$16 sps:$4 sm:$0xff]  }
 0x1ae   :  { %5928 = vmatpush1.bf16.msra.mxu0 %v9593_v35  ;;  %6420 = vmatpush1.bf16.msra.mxu1 %v9596_v36  ;;  %v9690_v35 = vld [vmem:[#allocation4 + $0xa0c] ss:$16 sps:$4 sm:$0xff]  }
 0x1af   :  { %5929 = vmatprep.subr.bf16.mxu0 %v9601_v19  ;;  %6421 = vmatprep.subr.bf16.mxu1 %v9604_v37  ;;  %v11126_v36 = vld [vmem:[%s11480_s0 + $0x28] sm:$0xff]  ;;  %v7878_v19 = vcombine.low %v11117_v28, %v11117_v28  ;;  %v9685_v37 = vld [vmem:[#allocation4 + $0xa00] ss:$16 sps:$4 sm:$0xff]   ;;  %v9699_v28 = vld [vmem:[#allocation4 + $0xa44] ss:$16 sps:$4 sm:$0xff]  }
 0x1b2   :  { %5930 = vmatpush1.bf16.msra.mxu0 %v9599_v38  ;;  %6422 = vmatpush1.bf16.msra.mxu1 %v9602_v39  ;;  %v9688_v38 = vld [vmem:[#allocation4 + $0xa08] ss:$16 sps:$4 sm:$0xff]   ;;  %v9693_v39 = vld [vmem:[#allocation4 + $0xa24] ss:$16 sps:$4 sm:$0xff]  }
 0x1b3   :  { %5931 = vmatprep.subr.bf16.mxu0 %v9607_v40  ;;  %6423 = vmatprep.subr.bf16.mxu1 %v9610_v41  ;;  %v9696_v40 = vld [vmem:[#allocation4 + $0xa2c] ss:$16 sps:$4 sm:$0xff]   ;;  %v7881_v41 = vcombine.high %v11126_v36, %v11126_v36 }
 0x1b6   :  { %5932 = vmatpush1.bf16.msra.mxu0 %v9605_v42  ;;  %6424 = vmatpush1.bf16.msra.mxu1 %v9608_v47  ;;  %v9691_v42 = vld [vmem:[#allocation4 + $0xa20] ss:$16 sps:$4 sm:$0xff]   ;;  %v9694_v47 = vld [vmem:[#allocation4 + $0xa28] ss:$16 sps:$4 sm:$0xff]  }
 0x1b7   :  { %5933 = vmatprep.subr.bf16.mxu0 %v9613_v48  ;;  %6425 = vmatprep.subr.bf16.mxu1 %v9616_v49  ;;  %v9702_v48 = vld [vmem:[#allocation4 + $0xa4c] ss:$16 sps:$4 sm:$0xff]   ;;  %v9697_v49 = vld [vmem:[#allocation4 + $0xa40] ss:$16 sps:$4 sm:$0xff]  }
 0x1ba   :  { %5934 = vmatpush1.bf16.msra.mxu0 %v9611_v50  ;;  %6426 = vmatpush1.bf16.msra.mxu1 %v9614_v51  ;;  %v9700_v50 = vld [vmem:[#allocation4 + $0xa48] ss:$16 sps:$4 sm:$0xff]   ;;  %v9705_v51 = vld [vmem:[#allocation4 + $0xa64] ss:$16 sps:$4 sm:$0xff]  }
 0x1bb   :  { %5935 = vmatprep.subr.bf16.mxu0 %v9619_v52  ;;  %6427 = vmatprep.subr.bf16.mxu1 %v9622_v53  ;;  %v9708_v52 = vld [vmem:[#allocation4 + $0xa6c] ss:$16 sps:$4 sm:$0xff]   ;;  %v9703_v53 = vld [vmem:[#allocation4 + $0xa60] ss:$16 sps:$4 sm:$0xff]  }
 0x1be   :  { %5936 = vmatpush1.bf16.msra.mxu0 %v9617_v54  ;;  %6428 = vmatpush1.bf16.msra.mxu1 %v9620_v55  ;;  %v9706_v54 = vld [vmem:[#allocation4 + $0xa68] ss:$16 sps:$4 sm:$0xff]   ;;  %v9711_v55 = vld [vmem:[#allocation4 + $0xa84] ss:$16 sps:$4 sm:$0xff]  }
 0x1bf   :  { %5937 = vmatprep.subr.bf16.mxu0 %v9625_v56  ;;  %6429 = vmatprep.subr.bf16.mxu1 %v9628_v57  ;;  %v9714_v56 = vld [vmem:[#allocation4 + $0xa8c] ss:$16 sps:$4 sm:$0xff]   ;;  %v9709_v57 = vld [vmem:[#allocation4 + $0xa80] ss:$16 sps:$4 sm:$0xff]  }
 0x1c2   :  { %5938 = vmatpush1.bf16.msra.mxu0 %v9623_v58  ;;  %6430 = vmatpush1.bf16.msra.mxu1 %v9626_v59  ;;  %v9712_v58 = vld [vmem:[#allocation4 + $0xa88] ss:$16 sps:$4 sm:$0xff]   ;;  %v9717_v59 = vld [vmem:[#allocation4 + $0xaa4] ss:$16 sps:$4 sm:$0xff]  }
 0x1c3   :  { %5939 = vmatprep.subr.bf16.mxu0 %v9631_v60  ;;  %6431 = vmatprep.subr.bf16.mxu1 %v9634_v61  ;;  %v9720_v60 = vld [vmem:[#allocation4 + $0xaac] ss:$16 sps:$4 sm:$0xff]   ;;  %v9715_v61 = vld [vmem:[#allocation4 + $0xaa0] ss:$16 sps:$4 sm:$0xff]  }
 0x1c6   :  { %5940 = vmatpush1.bf16.msra.mxu0 %v9629_v62  ;;  %6432 = vmatpush1.bf16.msra.mxu1 %v9632_v63  ;;  %v9718_v62 = vld [vmem:[#allocation4 + $0xaa8] ss:$16 sps:$4 sm:$0xff]   ;;  %v9723_v63 = vld [vmem:[#allocation4 + $0xac4] ss:$16 sps:$4 sm:$0xff]  }
 0x1c7   :  { %5941 = vmatprep.subr.bf16.mxu0 %v9637_v0  ;;  %6433 = vmatprep.subr.bf16.mxu1 %v9640_v1  ;;  %v9726_v0 = vld [vmem:[#allocation4 + $0xacc] ss:$16 sps:$4 sm:$0xff]   ;;  %v9721_v1 = vld [vmem:[#allocation4 + $0xac0] ss:$16 sps:$4 sm:$0xff]  }
 0x1ca   :  { %5942 = vmatpush1.bf16.msra.mxu0 %v9635_v2  ;;  %6434 = vmatpush1.bf16.msra.mxu1 %v9638_v3  ;;  %v9724_v2 = vld [vmem:[#allocation4 + $0xac8] ss:$16 sps:$4 sm:$0xff]   ;;  %v9729_v3 = vld [vmem:[#allocation4 + $0xae4] ss:$16 sps:$4 sm:$0xff]  }
 0x1cb   :  { %5943 = vmatprep.subr.bf16.mxu0 %v9643_v4  ;;  %6435 = vmatprep.subr.bf16.mxu1 %v9646_v5  ;;  %v9732_v4 = vld [vmem:[#allocation4 + $0xaec] ss:$16 sps:$4 sm:$0xff]   ;;  %v9727_v5 = vld [vmem:[#allocation4 + $0xae0] ss:$16 sps:$4 sm:$0xff]  }
 0x1ce   :  { %5944 = vmatpush1.bf16.msra.mxu0 %v9641_v6  ;;  %6436 = vmatpush1.bf16.msra.mxu1 %v9644_v7  ;;  %v9730_v6 = vld [vmem:[#allocation4 + $0xae8] ss:$16 sps:$4 sm:$0xff]   ;;  %v9735_v7 = vld [vmem:[#allocation4 + $0xb04] ss:$16 sps:$4 sm:$0xff]  }
 0x1cf   :  { %5945 = vmatprep.subr.bf16.mxu0 %v9649_v8  ;;  %6437 = vmatprep.subr.bf16.mxu1 %v9652_v9  ;;  %v9738_v8 = vld [vmem:[#allocation4 + $0xb0c] ss:$16 sps:$4 sm:$0xff]   ;;  %v9733_v9 = vld [vmem:[#allocation4 + $0xb00] ss:$16 sps:$4 sm:$0xff]  }
 0x1d2   :  { %5946 = vmatpush1.bf16.msra.mxu0 %v9647_v10  ;;  %6438 = vmatpush1.bf16.msra.mxu1 %v9650_v12  ;;  %v9736_v10 = vld [vmem:[#allocation4 + $0xb08] ss:$16 sps:$4 sm:$0xff]   ;;  %v9741_v12 = vld [vmem:[#allocation4 + $0xb24] ss:$16 sps:$4 sm:$0xff]  }
 0x1d3   :  { %5947 = vmatprep.subr.bf16.mxu0 %v9655_v13  ;;  %6439 = vmatprep.subr.bf16.mxu1 %v9658_v15  ;;  %v9744_v13 = vld [vmem:[#allocation4 + $0xb2c] ss:$16 sps:$4 sm:$0xff]   ;;  %v9739_v15 = vld [vmem:[#allocation4 + $0xb20] ss:$16 sps:$4 sm:$0xff]  }
 0x1d6   :  { %5948 = vmatpush1.bf16.msra.mxu0 %v9653_v16  ;;  %6440 = vmatpush1.bf16.msra.mxu1 %v9656_v18  ;;  %v9742_v16 = vld [vmem:[#allocation4 + $0xb28] ss:$16 sps:$4 sm:$0xff]   ;;  %v9747_v18 = vld [vmem:[#allocation4 + $0xb44] ss:$16 sps:$4 sm:$0xff]  }
 0x1d7   :  { %5949 = vmatprep.subr.bf16.mxu0 %v9661_v11  ;;  %6441 = vmatprep.subr.bf16.mxu1 %v9664_v20  ;;  %v9750_v11 = vld [vmem:[#allocation4 + $0xb4c] ss:$16 sps:$4 sm:$0xff]   ;;  %v9745_v20 = vld [vmem:[#allocation4 + $0xb40] ss:$16 sps:$4 sm:$0xff]  }
 0x1da   :  { %5950 = vmatpush1.bf16.msra.mxu0 %v9659_v14  ;;  %6442 = vmatpush1.bf16.msra.mxu1 %v9662_v21  ;;  %v9748_v14 = vld [vmem:[#allocation4 + $0xb48] ss:$16 sps:$4 sm:$0xff]   ;;  %v9753_v21 = vld [vmem:[#allocation4 + $0xb64] ss:$16 sps:$4 sm:$0xff]  }
 0x1db   :  { %5951 = vmatprep.subr.bf16.mxu0 %v9667_v22  ;;  %6443 = vmatprep.subr.bf16.mxu1 %v9670_v23  ;;  %v9756_v22 = vld [vmem:[#allocation4 + $0xb6c] ss:$16 sps:$4 sm:$0xff]   ;;  %v9751_v23 = vld [vmem:[#allocation4 + $0xb60] ss:$16 sps:$4 sm:$0xff]  }
 0x1de   :  { %5952 = vmatpush1.bf16.msra.mxu0 %v9665_v24  ;;  %6444 = vmatpush1.bf16.msra.mxu1 %v9668_v25  ;;  %v9754_v24 = vld [vmem:[#allocation4 + $0xb68] ss:$16 sps:$4 sm:$0xff]   ;;  %v9759_v25 = vld [vmem:[#allocation4 + $0xb84] ss:$16 sps:$4 sm:$0xff]  }
 0x1df   :  { %5953 = vmatprep.subr.bf16.mxu0 %v9673_v17  ;;  %6445 = vmatprep.subr.bf16.mxu1 %v9676_v26  ;;  %v9762_v17 = vld [vmem:[#allocation4 + $0xb8c] ss:$16 sps:$4 sm:$0xff]   ;;  %v9757_v26 = vld [vmem:[#allocation4 + $0xb80] ss:$16 sps:$4 sm:$0xff]  }
 0x1e2   :  { %5954 = vmatpush1.bf16.msra.mxu0 %v9671_v27  ;;  %6446 = vmatpush1.bf16.msra.mxu1 %v9674_v29  ;;  %v9760_v27 = vld [vmem:[#allocation4 + $0xb88] ss:$16 sps:$4 sm:$0xff]   ;;  %v9765_v29 = vld [vmem:[#allocation4 + $0xba4] ss:$16 sps:$4 sm:$0xff]  }
 0x1e3   :  { %5955 = vmatprep.subr.bf16.mxu0 %v9679_v30  ;;  %6447 = vmatprep.subr.bf16.mxu1 %v9682_v31  ;;  %v9768_v30 = vld [vmem:[#allocation4 + $0xbac] ss:$16 sps:$4 sm:$0xff]   ;;  %v9763_v31 = vld [vmem:[#allocation4 + $0xba0] ss:$16 sps:$4 sm:$0xff]  }
 0x1e6   :  { %5956 = vmatpush1.bf16.msra.mxu0 %v9677_v32  ;;  %6448 = vmatpush1.bf16.msra.mxu1 %v9680_v33  ;;  %v9766_v32 = vld [vmem:[#allocation4 + $0xba8] ss:$16 sps:$4 sm:$0xff]   ;;  %v9771_v33 = vld [vmem:[#allocation4 + $0xbc4] ss:$16 sps:$4 sm:$0xff]  }
 0x1e7   :  { %5966 = vmatprep.subr.bf16.mxu0 %v9687_v34  ;;  %6458 = vmatprep.subr.bf16.mxu1 %v9690_v35  ;;  %v9774_v34 = vld [vmem:[#allocation4 + $0xbcc] ss:$16 sps:$4 sm:$0xff]   ;;  %v9769_v35 = vld [vmem:[#allocation4 + $0xbc0] ss:$16 sps:$4 sm:$0xff]  }
 0x1e9   :  { %5958 = vmatmul.mubr.bf16.vlgmr.msra.gmra.mrb[4].mxu0 %v7878_v19  ;;  %6450 = vmatmul.mubr.bf16.vlgmr.msra.gmra.mrb[4].mxu1 %v7878_v19  ;;  %v9772_v19 = vld [vmem:[#allocation4 + $0xbc8] ss:$16 sps:$4 sm:$0xff]  }
 0x1ea   :  { %5967 = vmatpush1.bf16.msra.mxu0 %v9685_v37  ;;  %6459 = vmatpush1.bf16.msra.mxu1 %v9688_v38  ;;  %v9777_v37 = vld [vmem:[#allocation4 + $0xbe4] ss:$16 sps:$4 sm:$0xff]   ;;  %v9780_v38 = vld [vmem:[#allocation4 + $0xbec] ss:$16 sps:$4 sm:$0xff]  }
 0x1eb   :  { %5968 = vmatprep.subr.bf16.mxu0 %v9693_v39  ;;  %6460 = vmatprep.subr.bf16.mxu1 %v9696_v40  ;;  %v9775_v39 = vld [vmem:[#allocation4 + $0xbe0] ss:$16 sps:$4 sm:$0xff]   ;;  %v9778_v40 = vld [vmem:[#allocation4 + $0xbe8] ss:$16 sps:$4 sm:$0xff]  }
 0x1ec   :  { %5998 = vmatprep.mubr.bf16.mxu0 %v7881_v41  ;;  %6490 = vmatprep.mubr.bf16.mxu1 %v7881_v41  ;;  %v9785_v41 = vld [vmem:[#allocation4 + $0xc04] ss:$16 sps:$4 sm:$0xff]  }
 0x1ee   :  { %5969 = vmatpush1.bf16.msra.mxu0 %v9691_v42  ;;  %6461 = vmatpush1.bf16.msra.mxu1 %v9694_v47  ;;  %v9788_v42 = vld [vmem:[#allocation4 + $0xc0c] ss:$16 sps:$4 sm:$0xff]   ;;  %v11135_v47 = vld [vmem:[%s11480_s0 + $0x30] sm:$0xff] }
 0x1ef   :  { %5970 = vmatprep.subr.bf16.mxu0 %v9699_v28  ;;  %6462 = vmatprep.subr.bf16.mxu1 %v9702_v48  ;;  %v7880_v28 = vcombine.low %v11126_v36, %v11126_v36  ;;  %v9783_v48 = vld [vmem:[#allocation4 + $0xc00] ss:$16 sps:$4 sm:$0xff]   ;;  %v9797_v36 = vld [vmem:[#allocation4 + $0xc44] ss:$16 sps:$4 sm:$0xff]  }
 0x1f2   :  { %5971 = vmatpush1.bf16.msra.mxu0 %v9697_v49  ;;  %6463 = vmatpush1.bf16.msra.mxu1 %v9700_v50  ;;  %v9786_v49 = vld [vmem:[#allocation4 + $0xc08] ss:$16 sps:$4 sm:$0xff]   ;;  %v9791_v50 = vld [vmem:[#allocation4 + $0xc24] ss:$16 sps:$4 sm:$0xff]  }
 0x1f3   :  { %5972 = vmatprep.subr.bf16.mxu0 %v9705_v51  ;;  %6464 = vmatprep.subr.bf16.mxu1 %v9708_v52  ;;  %v9794_v51 = vld [vmem:[#allocation4 + $0xc2c] ss:$16 sps:$4 sm:$0xff]   ;;  %v7883_v52 = vcombine.high %v11135_v47, %v11135_v47 }
 0x1f6   :  { %5973 = vmatpush1.bf16.msra.mxu0 %v9703_v53  ;;  %6465 = vmatpush1.bf16.msra.mxu1 %v9706_v54  ;;  %v9789_v53 = vld [vmem:[#allocation4 + $0xc20] ss:$16 sps:$4 sm:$0xff]   ;;  %v9792_v54 = vld [vmem:[#allocation4 + $0xc28] ss:$16 sps:$4 sm:$0xff]  }
 0x1f7   :  { %5974 = vmatprep.subr.bf16.mxu0 %v9711_v55  ;;  %6466 = vmatprep.subr.bf16.mxu1 %v9714_v56  ;;  %v9800_v55 = vld [vmem:[#allocation4 + $0xc4c] ss:$16 sps:$4 sm:$0xff]   ;;  %v9795_v56 = vld [vmem:[#allocation4 + $0xc40] ss:$16 sps:$4 sm:$0xff]  }
 0x1fa   :  { %5975 = vmatpush1.bf16.msra.mxu0 %v9709_v57  ;;  %6467 = vmatpush1.bf16.msra.mxu1 %v9712_v58  ;;  %v9798_v57 = vld [vmem:[#allocation4 + $0xc48] ss:$16 sps:$4 sm:$0xff]   ;;  %v9803_v58 = vld [vmem:[#allocation4 + $0xc64] ss:$16 sps:$4 sm:$0xff]  }
 0x1fb   :  { %5976 = vmatprep.subr.bf16.mxu0 %v9717_v59  ;;  %6468 = vmatprep.subr.bf16.mxu1 %v9720_v60  ;;  %v9806_v59 = vld [vmem:[#allocation4 + $0xc6c] ss:$16 sps:$4 sm:$0xff]   ;;  %v9801_v60 = vld [vmem:[#allocation4 + $0xc60] ss:$16 sps:$4 sm:$0xff]  }
 0x1fe   :  { %5977 = vmatpush1.bf16.msra.mxu0 %v9715_v61  ;;  %6469 = vmatpush1.bf16.msra.mxu1 %v9718_v62  ;;  %v9804_v61 = vld [vmem:[#allocation4 + $0xc68] ss:$16 sps:$4 sm:$0xff]   ;;  %v9809_v62 = vld [vmem:[#allocation4 + $0xc84] ss:$16 sps:$4 sm:$0xff]  }
 0x1ff   :  { %5978 = vmatprep.subr.bf16.mxu0 %v9723_v63  ;;  %6470 = vmatprep.subr.bf16.mxu1 %v9726_v0  ;;  %v9812_v63 = vld [vmem:[#allocation4 + $0xc8c] ss:$16 sps:$4 sm:$0xff]   ;;  %v9807_v0 = vld [vmem:[#allocation4 + $0xc80] ss:$16 sps:$4 sm:$0xff]  }
 0x202   :  { %5979 = vmatpush1.bf16.msra.mxu0 %v9721_v1  ;;  %6471 = vmatpush1.bf16.msra.mxu1 %v9724_v2  ;;  %v9810_v1 = vld [vmem:[#allocation4 + $0xc88] ss:$16 sps:$4 sm:$0xff]   ;;  %v9815_v2 = vld [vmem:[#allocation4 + $0xca4] ss:$16 sps:$4 sm:$0xff]  }
 0x203   :  { %5980 = vmatprep.subr.bf16.mxu0 %v9729_v3  ;;  %6472 = vmatprep.subr.bf16.mxu1 %v9732_v4  ;;  %v9818_v3 = vld [vmem:[#allocation4 + $0xcac] ss:$16 sps:$4 sm:$0xff]   ;;  %v9813_v4 = vld [vmem:[#allocation4 + $0xca0] ss:$16 sps:$4 sm:$0xff]  }
 0x206   :  { %5981 = vmatpush1.bf16.msra.mxu0 %v9727_v5  ;;  %6473 = vmatpush1.bf16.msra.mxu1 %v9730_v6  ;;  %v9816_v5 = vld [vmem:[#allocation4 + $0xca8] ss:$16 sps:$4 sm:$0xff]   ;;  %v9821_v6 = vld [vmem:[#allocation4 + $0xcc4] ss:$16 sps:$4 sm:$0xff]  }
 0x207   :  { %5982 = vmatprep.subr.bf16.mxu0 %v9735_v7  ;;  %6474 = vmatprep.subr.bf16.mxu1 %v9738_v8  ;;  %v9824_v7 = vld [vmem:[#allocation4 + $0xccc] ss:$16 sps:$4 sm:$0xff]   ;;  %v9819_v8 = vld [vmem:[#allocation4 + $0xcc0] ss:$16 sps:$4 sm:$0xff]  }
 0x20a   :  { %5983 = vmatpush1.bf16.msra.mxu0 %v9733_v9  ;;  %6475 = vmatpush1.bf16.msra.mxu1 %v9736_v10  ;;  %v9822_v9 = vld [vmem:[#allocation4 + $0xcc8] ss:$16 sps:$4 sm:$0xff]   ;;  %v9827_v10 = vld [vmem:[#allocation4 + $0xce4] ss:$16 sps:$4 sm:$0xff]  }
 0x20b   :  { %5984 = vmatprep.subr.bf16.mxu0 %v9741_v12  ;;  %6476 = vmatprep.subr.bf16.mxu1 %v9744_v13  ;;  %v9830_v12 = vld [vmem:[#allocation4 + $0xcec] ss:$16 sps:$4 sm:$0xff]   ;;  %v9825_v13 = vld [vmem:[#allocation4 + $0xce0] ss:$16 sps:$4 sm:$0xff]  }
 0x20e   :  { %5985 = vmatpush1.bf16.msra.mxu0 %v9739_v15  ;;  %6477 = vmatpush1.bf16.msra.mxu1 %v9742_v16  ;;  %v9828_v15 = vld [vmem:[#allocation4 + $0xce8] ss:$16 sps:$4 sm:$0xff]   ;;  %v9833_v16 = vld [vmem:[#allocation4 + $0xd04] ss:$16 sps:$4 sm:$0xff]  }
 0x20f   :  { %5986 = vmatprep.subr.bf16.mxu0 %v9747_v18  ;;  %6478 = vmatprep.subr.bf16.mxu1 %v9750_v11  ;;  %v9836_v18 = vld [vmem:[#allocation4 + $0xd0c] ss:$16 sps:$4 sm:$0xff]   ;;  %v9831_v11 = vld [vmem:[#allocation4 + $0xd00] ss:$16 sps:$4 sm:$0xff]  }
 0x212   :  { %5987 = vmatpush1.bf16.msra.mxu0 %v9745_v20  ;;  %6479 = vmatpush1.bf16.msra.mxu1 %v9748_v14  ;;  %v9834_v20 = vld [vmem:[#allocation4 + $0xd08] ss:$16 sps:$4 sm:$0xff]   ;;  %v9839_v14 = vld [vmem:[#allocation4 + $0xd24] ss:$16 sps:$4 sm:$0xff]  }
 0x213   :  { %5988 = vmatprep.subr.bf16.mxu0 %v9753_v21  ;;  %6480 = vmatprep.subr.bf16.mxu1 %v9756_v22  ;;  %v9842_v21 = vld [vmem:[#allocation4 + $0xd2c] ss:$16 sps:$4 sm:$0xff]   ;;  %v9837_v22 = vld [vmem:[#allocation4 + $0xd20] ss:$16 sps:$4 sm:$0xff]  }
 0x216   :  { %5989 = vmatpush1.bf16.msra.mxu0 %v9751_v23  ;;  %6481 = vmatpush1.bf16.msra.mxu1 %v9754_v24  ;;  %v9840_v23 = vld [vmem:[#allocation4 + $0xd28] ss:$16 sps:$4 sm:$0xff]   ;;  %v9845_v24 = vld [vmem:[#allocation4 + $0xd44] ss:$16 sps:$4 sm:$0xff]  }
 0x217   :  { %5990 = vmatprep.subr.bf16.mxu0 %v9759_v25  ;;  %6482 = vmatprep.subr.bf16.mxu1 %v9762_v17  ;;  %v9848_v25 = vld [vmem:[#allocation4 + $0xd4c] ss:$16 sps:$4 sm:$0xff]   ;;  %v9843_v17 = vld [vmem:[#allocation4 + $0xd40] ss:$16 sps:$4 sm:$0xff]  }
 0x21a   :  { %5991 = vmatpush1.bf16.msra.mxu0 %v9757_v26  ;;  %6483 = vmatpush1.bf16.msra.mxu1 %v9760_v27  ;;  %v9846_v26 = vld [vmem:[#allocation4 + $0xd48] ss:$16 sps:$4 sm:$0xff]   ;;  %v9851_v27 = vld [vmem:[#allocation4 + $0xd64] ss:$16 sps:$4 sm:$0xff]  }
 0x21b   :  { %5992 = vmatprep.subr.bf16.mxu0 %v9765_v29  ;;  %6484 = vmatprep.subr.bf16.mxu1 %v9768_v30  ;;  %v9854_v29 = vld [vmem:[#allocation4 + $0xd6c] ss:$16 sps:$4 sm:$0xff]   ;;  %v9849_v30 = vld [vmem:[#allocation4 + $0xd60] ss:$16 sps:$4 sm:$0xff]  }
 0x21e   :  { %5993 = vmatpush1.bf16.msra.mxu0 %v9763_v31  ;;  %6485 = vmatpush1.bf16.msra.mxu1 %v9766_v32  ;;  %v9852_v31 = vld [vmem:[#allocation4 + $0xd68] ss:$16 sps:$4 sm:$0xff]   ;;  %v9857_v32 = vld [vmem:[#allocation4 + $0xd84] ss:$16 sps:$4 sm:$0xff]  }
 0x21f   :  { %5994 = vmatprep.subr.bf16.mxu0 %v9771_v33  ;;  %6486 = vmatprep.subr.bf16.mxu1 %v9774_v34  ;;  %v9860_v33 = vld [vmem:[#allocation4 + $0xd8c] ss:$16 sps:$4 sm:$0xff]   ;;  %v9855_v34 = vld [vmem:[#allocation4 + $0xd80] ss:$16 sps:$4 sm:$0xff]  }
 0x222   :  { %5995 = vmatpush1.bf16.msra.mxu0 %v9769_v35  ;;  %6487 = vmatpush1.bf16.msra.mxu1 %v9772_v19  ;;  %v9858_v35 = vld [vmem:[#allocation4 + $0xd88] ss:$16 sps:$4 sm:$0xff]   ;;  %v9863_v19 = vld [vmem:[#allocation4 + $0xda4] ss:$16 sps:$4 sm:$0xff]  }
 0x223   :  { %5996 = vmatprep.subr.bf16.mxu0 %v9777_v37  ;;  %6488 = vmatprep.subr.bf16.mxu1 %v9780_v38  ;;  %v9866_v37 = vld [vmem:[#allocation4 + $0xdac] ss:$16 sps:$4 sm:$0xff]   ;;  %v9861_v38 = vld [vmem:[#allocation4 + $0xda0] ss:$16 sps:$4 sm:$0xff]  }
 0x226   :  { %5997 = vmatpush1.bf16.msra.mxu0 %v9775_v39  ;;  %6489 = vmatpush1.bf16.msra.mxu1 %v9778_v40  ;;  %v9864_v39 = vld [vmem:[#allocation4 + $0xda8] ss:$16 sps:$4 sm:$0xff]   ;;  %v9869_v40 = vld [vmem:[#allocation4 + $0xdc4] ss:$16 sps:$4 sm:$0xff]  }
 0x227   :  { %6007 = vmatprep.subr.bf16.mxu0 %v9785_v41  ;;  %6499 = vmatprep.subr.bf16.mxu1 %v9788_v42  ;;  %v9872_v41 = vld [vmem:[#allocation4 + $0xdcc] ss:$16 sps:$4 sm:$0xff]   ;;  %v9867_v42 = vld [vmem:[#allocation4 + $0xdc0] ss:$16 sps:$4 sm:$0xff]  }
 0x229   :  { %5999 = vmatmul.mubr.bf16.vlgmr.msra.gmra.mrb[4].mxu0 %v7880_v28  ;;  %6491 = vmatmul.mubr.bf16.vlgmr.msra.gmra.mrb[4].mxu1 %v7880_v28  ;;  %v9870_v28 = vld [vmem:[#allocation4 + $0xdc8] ss:$16 sps:$4 sm:$0xff]  }
 0x22a   :  { %6008 = vmatpush1.bf16.msra.mxu0 %v9783_v48  ;;  %6500 = vmatpush1.bf16.msra.mxu1 %v9786_v49  ;;  %v9875_v48 = vld [vmem:[#allocation4 + $0xde4] ss:$16 sps:$4 sm:$0xff]   ;;  %v9878_v49 = vld [vmem:[#allocation4 + $0xdec] ss:$16 sps:$4 sm:$0xff]  }
 0x22b   :  { %6009 = vmatprep.subr.bf16.mxu0 %v9791_v50  ;;  %6501 = vmatprep.subr.bf16.mxu1 %v9794_v51  ;;  %v9873_v50 = vld [vmem:[#allocation4 + $0xde0] ss:$16 sps:$4 sm:$0xff]   ;;  %v9876_v51 = vld [vmem:[#allocation4 + $0xde8] ss:$16 sps:$4 sm:$0xff]  }
 0x22c   :  { %6039 = vmatprep.mubr.bf16.mxu0 %v7883_v52  ;;  %6531 = vmatprep.mubr.bf16.mxu1 %v7883_v52  ;;  %v9883_v52 = vld [vmem:[#allocation4 + $0xe04] ss:$16 sps:$4 sm:$0xff]  }
 0x22e   :  { %6010 = vmatpush1.bf16.msra.mxu0 %v9789_v53  ;;  %6502 = vmatpush1.bf16.msra.mxu1 %v9792_v54  ;;  %v9886_v53 = vld [vmem:[#allocation4 + $0xe0c] ss:$16 sps:$4 sm:$0xff]  }
 0x22f   :  { %6011 = vmatprep.subr.bf16.mxu0 %v9797_v36  ;;  %6503 = vmatprep.subr.bf16.mxu1 %v9800_v55  ;;  %v11144_v54 = vld [vmem:[%s11480_s0 + $0x38] sm:$0xff]  ;;  %v7882_v36 = vcombine.low %v11135_v47, %v11135_v47  ;;  %v9881_v55 = vld [vmem:[#allocation4 + $0xe00] ss:$16 sps:$4 sm:$0xff]   ;;  %v9895_v47 = vld [vmem:[#allocation4 + $0xe44] ss:$16 sps:$4 sm:$0xff]  }
 0x232   :  { %6012 = vmatpush1.bf16.msra.mxu0 %v9795_v56  ;;  %6504 = vmatpush1.bf16.msra.mxu1 %v9798_v57  ;;  %v9884_v56 = vld [vmem:[#allocation4 + $0xe08] ss:$16 sps:$4 sm:$0xff]   ;;  %v9889_v57 = vld [vmem:[#allocation4 + $0xe24] ss:$16 sps:$4 sm:$0xff]  }
 0x233   :  { %6013 = vmatprep.subr.bf16.mxu0 %v9803_v58  ;;  %6505 = vmatprep.subr.bf16.mxu1 %v9806_v59  ;;  %v9892_v58 = vld [vmem:[#allocation4 + $0xe2c] ss:$16 sps:$4 sm:$0xff]   ;;  %v7885_v59 = vcombine.high %v11144_v54, %v11144_v54 }
 0x236   :  { %6014 = vmatpush1.bf16.msra.mxu0 %v9801_v60  ;;  %6506 = vmatpush1.bf16.msra.mxu1 %v9804_v61  ;;  %v9887_v60 = vld [vmem:[#allocation4 + $0xe20] ss:$16 sps:$4 sm:$0xff]   ;;  %v9890_v61 = vld [vmem:[#allocation4 + $0xe28] ss:$16 sps:$4 sm:$0xff]  }
 0x237   :  { %6015 = vmatprep.subr.bf16.mxu0 %v9809_v62  ;;  %6507 = vmatprep.subr.bf16.mxu1 %v9812_v63  ;;  %v9898_v62 = vld [vmem:[#allocation4 + $0xe4c] ss:$16 sps:$4 sm:$0xff]   ;;  %v9893_v63 = vld [vmem:[#allocation4 + $0xe40] ss:$16 sps:$4 sm:$0xff]  }
 0x23a   :  { %6016 = vmatpush1.bf16.msra.mxu0 %v9807_v0  ;;  %6508 = vmatpush1.bf16.msra.mxu1 %v9810_v1  ;;  %v9896_v0 = vld [vmem:[#allocation4 + $0xe48] ss:$16 sps:$4 sm:$0xff]   ;;  %v9901_v1 = vld [vmem:[#allocation4 + $0xe64] ss:$16 sps:$4 sm:$0xff]  }
 0x23b   :  { %6017 = vmatprep.subr.bf16.mxu0 %v9815_v2  ;;  %6509 = vmatprep.subr.bf16.mxu1 %v9818_v3  ;;  %v9904_v2 = vld [vmem:[#allocation4 + $0xe6c] ss:$16 sps:$4 sm:$0xff]   ;;  %v9899_v3 = vld [vmem:[#allocation4 + $0xe60] ss:$16 sps:$4 sm:$0xff]  }
 0x23e   :  { %6018 = vmatpush1.bf16.msra.mxu0 %v9813_v4  ;;  %6510 = vmatpush1.bf16.msra.mxu1 %v9816_v5  ;;  %v9902_v4 = vld [vmem:[#allocation4 + $0xe68] ss:$16 sps:$4 sm:$0xff]   ;;  %v9907_v5 = vld [vmem:[#allocation4 + $0xe84] ss:$16 sps:$4 sm:$0xff]  }
 0x23f   :  { %6019 = vmatprep.subr.bf16.mxu0 %v9821_v6  ;;  %6511 = vmatprep.subr.bf16.mxu1 %v9824_v7  ;;  %v9910_v6 = vld [vmem:[#allocation4 + $0xe8c] ss:$16 sps:$4 sm:$0xff]   ;;  %v9905_v7 = vld [vmem:[#allocation4 + $0xe80] ss:$16 sps:$4 sm:$0xff]  }
 0x242   :  { %6020 = vmatpush1.bf16.msra.mxu0 %v9819_v8  ;;  %6512 = vmatpush1.bf16.msra.mxu1 %v9822_v9  ;;  %v9908_v8 = vld [vmem:[#allocation4 + $0xe88] ss:$16 sps:$4 sm:$0xff]   ;;  %v9913_v9 = vld [vmem:[#allocation4 + $0xea4] ss:$16 sps:$4 sm:$0xff]  }
 0x243   :  { %6021 = vmatprep.subr.bf16.mxu0 %v9827_v10  ;;  %6513 = vmatprep.subr.bf16.mxu1 %v9830_v12  ;;  %v9916_v10 = vld [vmem:[#allocation4 + $0xeac] ss:$16 sps:$4 sm:$0xff]   ;;  %v9911_v12 = vld [vmem:[#allocation4 + $0xea0] ss:$16 sps:$4 sm:$0xff]  }
 0x246   :  { %6022 = vmatpush1.bf16.msra.mxu0 %v9825_v13  ;;  %6514 = vmatpush1.bf16.msra.mxu1 %v9828_v15  ;;  %v9914_v13 = vld [vmem:[#allocation4 + $0xea8] ss:$16 sps:$4 sm:$0xff]   ;;  %v9919_v15 = vld [vmem:[#allocation4 + $0xec4] ss:$16 sps:$4 sm:$0xff]  }
 0x247   :  { %6023 = vmatprep.subr.bf16.mxu0 %v9833_v16  ;;  %6515 = vmatprep.subr.bf16.mxu1 %v9836_v18  ;;  %v9922_v16 = vld [vmem:[#allocation4 + $0xecc] ss:$16 sps:$4 sm:$0xff]   ;;  %v9917_v18 = vld [vmem:[#allocation4 + $0xec0] ss:$16 sps:$4 sm:$0xff]  }
 0x24a   :  { %6024 = vmatpush1.bf16.msra.mxu0 %v9831_v11  ;;  %6516 = vmatpush1.bf16.msra.mxu1 %v9834_v20  ;;  %v9920_v11 = vld [vmem:[#allocation4 + $0xec8] ss:$16 sps:$4 sm:$0xff]   ;;  %v9925_v20 = vld [vmem:[#allocation4 + $0xee4] ss:$16 sps:$4 sm:$0xff]  }
 0x24b   :  { %6025 = vmatprep.subr.bf16.mxu0 %v9839_v14  ;;  %6517 = vmatprep.subr.bf16.mxu1 %v9842_v21  ;;  %v9928_v14 = vld [vmem:[#allocation4 + $0xeec] ss:$16 sps:$4 sm:$0xff]   ;;  %v9923_v21 = vld [vmem:[#allocation4 + $0xee0] ss:$16 sps:$4 sm:$0xff]  }
 0x24e   :  { %6026 = vmatpush1.bf16.msra.mxu0 %v9837_v22  ;;  %6518 = vmatpush1.bf16.msra.mxu1 %v9840_v23  ;;  %v9926_v22 = vld [vmem:[#allocation4 + $0xee8] ss:$16 sps:$4 sm:$0xff]   ;;  %v9931_v23 = vld [vmem:[#allocation4 + $0xf04] ss:$16 sps:$4 sm:$0xff]  }
 0x24f   :  { %6027 = vmatprep.subr.bf16.mxu0 %v9845_v24  ;;  %6519 = vmatprep.subr.bf16.mxu1 %v9848_v25  ;;  %v9934_v24 = vld [vmem:[#allocation4 + $0xf0c] ss:$16 sps:$4 sm:$0xff]   ;;  %v9929_v25 = vld [vmem:[#allocation4 + $0xf00] ss:$16 sps:$4 sm:$0xff]  }
 0x252   :  { %6028 = vmatpush1.bf16.msra.mxu0 %v9843_v17  ;;  %6520 = vmatpush1.bf16.msra.mxu1 %v9846_v26  ;;  %v9932_v17 = vld [vmem:[#allocation4 + $0xf08] ss:$16 sps:$4 sm:$0xff]   ;;  %v9937_v26 = vld [vmem:[#allocation4 + $0xf24] ss:$16 sps:$4 sm:$0xff]  }
 0x253   :  { %6029 = vmatprep.subr.bf16.mxu0 %v9851_v27  ;;  %6521 = vmatprep.subr.bf16.mxu1 %v9854_v29  ;;  %v9940_v27 = vld [vmem:[#allocation4 + $0xf2c] ss:$16 sps:$4 sm:$0xff]   ;;  %v9935_v29 = vld [vmem:[#allocation4 + $0xf20] ss:$16 sps:$4 sm:$0xff]  }
 0x256   :  { %6030 = vmatpush1.bf16.msra.mxu0 %v9849_v30  ;;  %6522 = vmatpush1.bf16.msra.mxu1 %v9852_v31  ;;  %v9938_v30 = vld [vmem:[#allocation4 + $0xf28] ss:$16 sps:$4 sm:$0xff]   ;;  %v9943_v31 = vld [vmem:[#allocation4 + $0xf44] ss:$16 sps:$4 sm:$0xff]  }
 0x257   :  { %6031 = vmatprep.subr.bf16.mxu0 %v9857_v32  ;;  %6523 = vmatprep.subr.bf16.mxu1 %v9860_v33  ;;  %v9946_v32 = vld [vmem:[#allocation4 + $0xf4c] ss:$16 sps:$4 sm:$0xff]   ;;  %v9941_v33 = vld [vmem:[#allocation4 + $0xf40] ss:$16 sps:$4 sm:$0xff]  }
 0x25a   :  { %6032 = vmatpush1.bf16.msra.mxu0 %v9855_v34  ;;  %6524 = vmatpush1.bf16.msra.mxu1 %v9858_v35  ;;  %v9944_v34 = vld [vmem:[#allocation4 + $0xf48] ss:$16 sps:$4 sm:$0xff]   ;;  %v9949_v35 = vld [vmem:[#allocation4 + $0xf64] ss:$16 sps:$4 sm:$0xff]  }
 0x25b   :  { %6033 = vmatprep.subr.bf16.mxu0 %v9863_v19  ;;  %6525 = vmatprep.subr.bf16.mxu1 %v9866_v37  ;;  %v9952_v19 = vld [vmem:[#allocation4 + $0xf6c] ss:$16 sps:$4 sm:$0xff]   ;;  %v9947_v37 = vld [vmem:[#allocation4 + $0xf60] ss:$16 sps:$4 sm:$0xff]  }
 0x25e   :  { %6034 = vmatpush1.bf16.msra.mxu0 %v9861_v38  ;;  %6526 = vmatpush1.bf16.msra.mxu1 %v9864_v39  ;;  %v9950_v38 = vld [vmem:[#allocation4 + $0xf68] ss:$16 sps:$4 sm:$0xff]   ;;  %v9955_v39 = vld [vmem:[#allocation4 + $0xf84] ss:$16 sps:$4 sm:$0xff]  }
 0x25f   :  { %6035 = vmatprep.subr.bf16.mxu0 %v9869_v40  ;;  %6527 = vmatprep.subr.bf16.mxu1 %v9872_v41  ;;  %v9958_v40 = vld [vmem:[#allocation4 + $0xf8c] ss:$16 sps:$4 sm:$0xff]   ;;  %v9953_v41 = vld [vmem:[#allocation4 + $0xf80] ss:$16 sps:$4 sm:$0xff]  }
 0x262   :  { %6036 = vmatpush1.bf16.msra.mxu0 %v9867_v42  ;;  %6528 = vmatpush1.bf16.msra.mxu1 %v9870_v28  ;;  %v9956_v42 = vld [vmem:[#allocation4 + $0xf88] ss:$16 sps:$4 sm:$0xff]   ;;  %v9961_v28 = vld [vmem:[#allocation4 + $0xfa4] ss:$16 sps:$4 sm:$0xff]  }
 0x263   :  { %6037 = vmatprep.subr.bf16.mxu0 %v9875_v48  ;;  %6529 = vmatprep.subr.bf16.mxu1 %v9878_v49  ;;  %v9964_v48 = vld [vmem:[#allocation4 + $0xfac] ss:$16 sps:$4 sm:$0xff]   ;;  %v9959_v49 = vld [vmem:[#allocation4 + $0xfa0] ss:$16 sps:$4 sm:$0xff]  }
 0x266   :  { %6038 = vmatpush1.bf16.msra.mxu0 %v9873_v50  ;;  %6530 = vmatpush1.bf16.msra.mxu1 %v9876_v51  ;;  %v9962_v50 = vld [vmem:[#allocation4 + $0xfa8] ss:$16 sps:$4 sm:$0xff]   ;;  %v9967_v51 = vld [vmem:[#allocation4 + $0xfc4] ss:$16 sps:$4 sm:$0xff]  }
 0x267   :  { %6048 = vmatprep.subr.bf16.mxu0 %v9883_v52  ;;  %6540 = vmatprep.subr.bf16.mxu1 %v9886_v53  ;;  %v9970_v52 = vld [vmem:[#allocation4 + $0xfcc] ss:$16 sps:$4 sm:$0xff]   ;;  %v9965_v53 = vld [vmem:[#allocation4 + $0xfc0] ss:$16 sps:$4 sm:$0xff]  }
 0x269   :  { %6040 = vmatmul.mubr.bf16.vlgmr.msra.gmra.mrb[4].mxu0 %v7882_v36  ;;  %6532 = vmatmul.mubr.bf16.vlgmr.msra.gmra.mrb[4].mxu1 %v7882_v36  ;;  %v9968_v36 = vld [vmem:[#allocation4 + $0xfc8] ss:$16 sps:$4 sm:$0xff]  }
 0x26a   :  { %6049 = vmatpush1.bf16.msra.mxu0 %v9881_v55  ;;  %6541 = vmatpush1.bf16.msra.mxu1 %v9884_v56  ;;  %v9973_v55 = vld [vmem:[#allocation4 + $0xfe4] ss:$16 sps:$4 sm:$0xff]   ;;  %v9976_v56 = vld [vmem:[#allocation4 + $0xfec] ss:$16 sps:$4 sm:$0xff]  }
 0x26b   :  { %6050 = vmatprep.subr.bf16.mxu0 %v9889_v57  ;;  %6542 = vmatprep.subr.bf16.mxu1 %v9892_v58  ;;  %v9971_v57 = vld [vmem:[#allocation4 + $0xfe0] ss:$16 sps:$4 sm:$0xff]   ;;  %v9974_v58 = vld [vmem:[#allocation4 + $0xfe8] ss:$16 sps:$4 sm:$0xff]  }
 0x26c   :  { %6080 = vmatprep.mubr.bf16.mxu0 %v7885_v59  ;;  %6572 = vmatprep.mubr.bf16.mxu1 %v7885_v59  ;;  %v9981_v59 = vld [vmem:[#allocation4 + $0x1004] ss:$16 sps:$4 sm:$0xff]  }
 0x26e   :  { %6051 = vmatpush1.bf16.msra.mxu0 %v9887_v60  ;;  %6543 = vmatpush1.bf16.msra.mxu1 %v9890_v61  ;;  %v9984_v60 = vld [vmem:[#allocation4 + $0x100c] ss:$16 sps:$4 sm:$0xff]   ;;  %v7884_v61 = vcombine.low %v11144_v54, %v11144_v54  ;;  %v9985_v54 = vld [vmem:[#allocation4 + $0x1020] ss:$16 sps:$4 sm:$0xff]  }
 0x26f   :  { %6052 = vmatprep.subr.bf16.mxu0 %v9895_v47  ;;  %6544 = vmatprep.subr.bf16.mxu1 %v9898_v62  ;;  %v11155_v47 = vld [vmem:[%s11480_s0 + $0x40] sm:$0xff] }
 0x270   :  { %v9979_v62 = vld [vmem:[#allocation4 + $0x1000] ss:$16 sps:$4 sm:$0xff]  }
 0x272   :  { %6053 = vmatpush1.bf16.msra.mxu0 %v9893_v63  ;;  %6545 = vmatpush1.bf16.msra.mxu1 %v9896_v0  ;;  %v9982_v63 = vld [vmem:[#allocation4 + $0x1008] ss:$16 sps:$4 sm:$0xff]   ;;  %v9987_v0 = vld [vmem:[#allocation4 + $0x1024] ss:$16 sps:$4 sm:$0xff]  }
 0x273   :  { %6054 = vmatprep.subr.bf16.mxu0 %v9901_v1  ;;  %6546 = vmatprep.subr.bf16.mxu1 %v9904_v2  ;;  %v9990_v1 = vld [vmem:[#allocation4 + $0x102c] ss:$16 sps:$4 sm:$0xff]   ;;  %v7887_v2 = vcombine.high %v11155_v47, %v11155_v47 }
 0x276   :  { %6055 = vmatpush1.bf16.msra.mxu0 %v9899_v3  ;;  %6547 = vmatpush1.bf16.msra.mxu1 %v9902_v4  ;;  %v9988_v3 = vld [vmem:[#allocation4 + $0x1028] ss:$16 sps:$4 sm:$0xff]   ;;  %v9993_v4 = vld [vmem:[#allocation4 + $0x1044] ss:$16 sps:$4 sm:$0xff]  }
 0x277   :  { %6056 = vmatprep.subr.bf16.mxu0 %v9907_v5  ;;  %6548 = vmatprep.subr.bf16.mxu1 %v9910_v6  ;;  %v9996_v5 = vld [vmem:[#allocation4 + $0x104c] ss:$16 sps:$4 sm:$0xff]   ;;  %v9991_v6 = vld [vmem:[#allocation4 + $0x1040] ss:$16 sps:$4 sm:$0xff]  }
 0x27a   :  { %6057 = vmatpush1.bf16.msra.mxu0 %v9905_v7  ;;  %6549 = vmatpush1.bf16.msra.mxu1 %v9908_v8  ;;  %v9994_v7 = vld [vmem:[#allocation4 + $0x1048] ss:$16 sps:$4 sm:$0xff]   ;;  %v9999_v8 = vld [vmem:[#allocation4 + $0x1064] ss:$16 sps:$4 sm:$0xff]  }
 0x27b   :  { %6058 = vmatprep.subr.bf16.mxu0 %v9913_v9  ;;  %6550 = vmatprep.subr.bf16.mxu1 %v9916_v10  ;;  %v10002_v9 = vld [vmem:[#allocation4 + $0x106c] ss:$16 sps:$4 sm:$0xff]   ;;  %v9997_v10 = vld [vmem:[#allocation4 + $0x1060] ss:$16 sps:$4 sm:$0xff]  }
 0x27e   :  { %6059 = vmatpush1.bf16.msra.mxu0 %v9911_v12  ;;  %6551 = vmatpush1.bf16.msra.mxu1 %v9914_v13  ;;  %v10000_v12 = vld [vmem:[#allocation4 + $0x1068] ss:$16 sps:$4 sm:$0xff]   ;;  %v10005_v13 = vld [vmem:[#allocation4 + $0x1084] ss:$16 sps:$4 sm:$0xff]  }
 0x27f   :  { %6060 = vmatprep.subr.bf16.mxu0 %v9919_v15  ;;  %6552 = vmatprep.subr.bf16.mxu1 %v9922_v16  ;;  %v10008_v15 = vld [vmem:[#allocation4 + $0x108c] ss:$16 sps:$4 sm:$0xff]   ;;  %v10003_v16 = vld [vmem:[#allocation4 + $0x1080] ss:$16 sps:$4 sm:$0xff]  }
 0x282   :  { %6061 = vmatpush1.bf16.msra.mxu0 %v9917_v18  ;;  %6553 = vmatpush1.bf16.msra.mxu1 %v9920_v11  ;;  %v10006_v18 = vld [vmem:[#allocation4 + $0x1088] ss:$16 sps:$4 sm:$0xff]   ;;  %v10011_v11 = vld [vmem:[#allocation4 + $0x10a4] ss:$16 sps:$4 sm:$0xff]  }
 0x283   :  { %6062 = vmatprep.subr.bf16.mxu0 %v9925_v20  ;;  %6554 = vmatprep.subr.bf16.mxu1 %v9928_v14  ;;  %v10014_v20 = vld [vmem:[#allocation4 + $0x10ac] ss:$16 sps:$4 sm:$0xff]   ;;  %v10009_v14 = vld [vmem:[#allocation4 + $0x10a0] ss:$16 sps:$4 sm:$0xff]  }
 0x286   :  { %6063 = vmatpush1.bf16.msra.mxu0 %v9923_v21  ;;  %6555 = vmatpush1.bf16.msra.mxu1 %v9926_v22  ;;  %v10012_v21 = vld [vmem:[#allocation4 + $0x10a8] ss:$16 sps:$4 sm:$0xff]   ;;  %v10017_v22 = vld [vmem:[#allocation4 + $0x10c4] ss:$16 sps:$4 sm:$0xff]  }
 0x287   :  { %6064 = vmatprep.subr.bf16.mxu0 %v9931_v23  ;;  %6556 = vmatprep.subr.bf16.mxu1 %v9934_v24  ;;  %v10020_v23 = vld [vmem:[#allocation4 + $0x10cc] ss:$16 sps:$4 sm:$0xff]   ;;  %v10015_v24 = vld [vmem:[#allocation4 + $0x10c0] ss:$16 sps:$4 sm:$0xff]  }
 0x28a   :  { %6065 = vmatpush1.bf16.msra.mxu0 %v9929_v25  ;;  %6557 = vmatpush1.bf16.msra.mxu1 %v9932_v17  ;;  %v10018_v25 = vld [vmem:[#allocation4 + $0x10c8] ss:$16 sps:$4 sm:$0xff]   ;;  %v10023_v17 = vld [vmem:[#allocation4 + $0x10e4] ss:$16 sps:$4 sm:$0xff]  }
 0x28b   :  { %6066 = vmatprep.subr.bf16.mxu0 %v9937_v26  ;;  %6558 = vmatprep.subr.bf16.mxu1 %v9940_v27  ;;  %v10026_v26 = vld [vmem:[#allocation4 + $0x10ec] ss:$16 sps:$4 sm:$0xff]   ;;  %v10021_v27 = vld [vmem:[#allocation4 + $0x10e0] ss:$16 sps:$4 sm:$0xff]  }
 0x28e   :  { %6067 = vmatpush1.bf16.msra.mxu0 %v9935_v29  ;;  %6559 = vmatpush1.bf16.msra.mxu1 %v9938_v30  ;;  %v10024_v29 = vld [vmem:[#allocation4 + $0x10e8] ss:$16 sps:$4 sm:$0xff]   ;;  %v10029_v30 = vld [vmem:[#allocation4 + $0x1104] ss:$16 sps:$4 sm:$0xff]  }
 0x28f   :  { %6068 = vmatprep.subr.bf16.mxu0 %v9943_v31  ;;  %6560 = vmatprep.subr.bf16.mxu1 %v9946_v32  ;;  %v10032_v31 = vld [vmem:[#allocation4 + $0x110c] ss:$16 sps:$4 sm:$0xff]   ;;  %v10027_v32 = vld [vmem:[#allocation4 + $0x1100] ss:$16 sps:$4 sm:$0xff]  }
 0x292   :  { %6069 = vmatpush1.bf16.msra.mxu0 %v9941_v33  ;;  %6561 = vmatpush1.bf16.msra.mxu1 %v9944_v34  ;;  %v10030_v33 = vld [vmem:[#allocation4 + $0x1108] ss:$16 sps:$4 sm:$0xff]   ;;  %v10035_v34 = vld [vmem:[#allocation4 + $0x1124] ss:$16 sps:$4 sm:$0xff]  }
 0x293   :  { %6070 = vmatprep.subr.bf16.mxu0 %v9949_v35  ;;  %6562 = vmatprep.subr.bf16.mxu1 %v9952_v19  ;;  %v10038_v35 = vld [vmem:[#allocation4 + $0x112c] ss:$16 sps:$4 sm:$0xff]   ;;  %v10033_v19 = vld [vmem:[#allocation4 + $0x1120] ss:$16 sps:$4 sm:$0xff]  }
 0x296   :  { %6071 = vmatpush1.bf16.msra.mxu0 %v9947_v37  ;;  %6563 = vmatpush1.bf16.msra.mxu1 %v9950_v38  ;;  %v10036_v37 = vld [vmem:[#allocation4 + $0x1128] ss:$16 sps:$4 sm:$0xff]   ;;  %v10041_v38 = vld [vmem:[#allocation4 + $0x1144] ss:$16 sps:$4 sm:$0xff]  }
 0x297   :  { %6072 = vmatprep.subr.bf16.mxu0 %v9955_v39  ;;  %6564 = vmatprep.subr.bf16.mxu1 %v9958_v40  ;;  %v10044_v39 = vld [vmem:[#allocation4 + $0x114c] ss:$16 sps:$4 sm:$0xff]   ;;  %v10039_v40 = vld [vmem:[#allocation4 + $0x1140] ss:$16 sps:$4 sm:$0xff]  }
 0x29a   :  { %6073 = vmatpush1.bf16.msra.mxu0 %v9953_v41  ;;  %6565 = vmatpush1.bf16.msra.mxu1 %v9956_v42  ;;  %v10042_v41 = vld [vmem:[#allocation4 + $0x1148] ss:$16 sps:$4 sm:$0xff]   ;;  %v10047_v42 = vld [vmem:[#allocation4 + $0x1164] ss:$16 sps:$4 sm:$0xff]  }
 0x29b   :  { %6074 = vmatprep.subr.bf16.mxu0 %v9961_v28  ;;  %6566 = vmatprep.subr.bf16.mxu1 %v9964_v48  ;;  %v10050_v28 = vld [vmem:[#allocation4 + $0x116c] ss:$16 sps:$4 sm:$0xff]   ;;  %v10045_v48 = vld [vmem:[#allocation4 + $0x1160] ss:$16 sps:$4 sm:$0xff]  }
 0x29e   :  { %6075 = vmatpush1.bf16.msra.mxu0 %v9959_v49  ;;  %6567 = vmatpush1.bf16.msra.mxu1 %v9962_v50  ;;  %v10048_v49 = vld [vmem:[#allocation4 + $0x1168] ss:$16 sps:$4 sm:$0xff]   ;;  %v10053_v50 = vld [vmem:[#allocation4 + $0x1184] ss:$16 sps:$4 sm:$0xff]  }
 0x29f   :  { %6076 = vmatprep.subr.bf16.mxu0 %v9967_v51  ;;  %6568 = vmatprep.subr.bf16.mxu1 %v9970_v52  ;;  %v10056_v51 = vld [vmem:[#allocation4 + $0x118c] ss:$16 sps:$4 sm:$0xff]   ;;  %v10051_v52 = vld [vmem:[#allocation4 + $0x1180] ss:$16 sps:$4 sm:$0xff]  }
 0x2a2   :  { %6077 = vmatpush1.bf16.msra.mxu0 %v9965_v53  ;;  %6569 = vmatpush1.bf16.msra.mxu1 %v9968_v36  ;;  %v10054_v53 = vld [vmem:[#allocation4 + $0x1188] ss:$16 sps:$4 sm:$0xff]   ;;  %v10059_v36 = vld [vmem:[#allocation4 + $0x11a4] ss:$16 sps:$4 sm:$0xff]  }
 0x2a3   :  { %6078 = vmatprep.subr.bf16.mxu0 %v9973_v55  ;;  %6570 = vmatprep.subr.bf16.mxu1 %v9976_v56  ;;  %v10062_v55 = vld [vmem:[#allocation4 + $0x11ac] ss:$16 sps:$4 sm:$0xff]   ;;  %v10057_v56 = vld [vmem:[#allocation4 + $0x11a0] ss:$16 sps:$4 sm:$0xff]  }
 0x2a6   :  { %6079 = vmatpush1.bf16.msra.mxu0 %v9971_v57  ;;  %6571 = vmatpush1.bf16.msra.mxu1 %v9974_v58  ;;  %v10060_v57 = vld [vmem:[#allocation4 + $0x11a8] ss:$16 sps:$4 sm:$0xff]   ;;  %v10065_v58 = vld [vmem:[#allocation4 + $0x11c4] ss:$16 sps:$4 sm:$0xff]  }
 0x2a7   :  { %6089 = vmatprep.subr.bf16.mxu0 %v9981_v59  ;;  %6581 = vmatprep.subr.bf16.mxu1 %v9984_v60  ;;  %v10068_v59 = vld [vmem:[#allocation4 + $0x11cc] ss:$16 sps:$4 sm:$0xff]   ;;  %v10063_v60 = vld [vmem:[#allocation4 + $0x11c0] ss:$16 sps:$4 sm:$0xff]  }
 0x2a9   :  { %6081 = vmatmul.mubr.bf16.vlgmr.msra.gmra.mrb[4].mxu0 %v7884_v61  ;;  %6573 = vmatmul.mubr.bf16.vlgmr.msra.gmra.mrb[4].mxu1 %v7884_v61  ;;  %v10066_v61 = vld [vmem:[#allocation4 + $0x11c8] ss:$16 sps:$4 sm:$0xff]  }
 0x2aa   :  { %6090 = vmatpush1.bf16.msra.mxu0 %v9979_v62  ;;  %6582 = vmatpush1.bf16.msra.mxu1 %v9982_v63  ;;  %v10071_v62 = vld [vmem:[#allocation4 + $0x11e4] ss:$16 sps:$4 sm:$0xff]   ;;  %v10074_v63 = vld [vmem:[#allocation4 + $0x11ec] ss:$16 sps:$4 sm:$0xff]  }
 0x2ab   :  { %6091 = vmatprep.subr.bf16.mxu0 %v9987_v0  ;;  %6583 = vmatprep.subr.bf16.mxu1 %v9990_v1  ;;  %v10069_v0 = vld [vmem:[#allocation4 + $0x11e0] ss:$16 sps:$4 sm:$0xff]   ;;  %v10072_v1 = vld [vmem:[#allocation4 + $0x11e8] ss:$16 sps:$4 sm:$0xff]  }
 0x2ac   :  { %6121 = vmatprep.mubr.bf16.mxu0 %v7887_v2  ;;  %6613 = vmatprep.mubr.bf16.mxu1 %v7887_v2  ;;  %v10079_v2 = vld [vmem:[#allocation4 + $0x1204] ss:$16 sps:$4 sm:$0xff]  }
 0x2ae   :  { %6092 = vmatpush1.bf16.msra.mxu0 %v9985_v54  ;;  %6584 = vmatpush1.bf16.msra.mxu1 %v9988_v3  ;;  %v10082_v54 = vld [vmem:[#allocation4 + $0x120c] ss:$16 sps:$4 sm:$0xff]   ;;  %v7886_v3 = vcombine.low %v11155_v47, %v11155_v47  ;;  %v10083_v47 = vld [vmem:[#allocation4 + $0x1220] ss:$16 sps:$4 sm:$0xff]  }
 0x2af   :  { %6093 = vmatprep.subr.bf16.mxu0 %v9993_v4  ;;  %6585 = vmatprep.subr.bf16.mxu1 %v9996_v5  ;;  %v11164_v4 = vld [vmem:[%s11480_s0 + $0x48] sm:$0xff]  ;;  %v10077_v5 = vld [vmem:[#allocation4 + $0x1200] ss:$16 sps:$4 sm:$0xff]  }
 0x2b2   :  { %6094 = vmatpush1.bf16.msra.mxu0 %v9991_v6  ;;  %6586 = vmatpush1.bf16.msra.mxu1 %v9994_v7  ;;  %v10080_v6 = vld [vmem:[#allocation4 + $0x1208] ss:$16 sps:$4 sm:$0xff]   ;;  %v10085_v7 = vld [vmem:[#allocation4 + $0x1224] ss:$16 sps:$4 sm:$0xff]  }
 0x2b3   :  { %6095 = vmatprep.subr.bf16.mxu0 %v9999_v8  ;;  %6587 = vmatprep.subr.bf16.mxu1 %v10002_v9  ;;  %v10088_v8 = vld [vmem:[#allocation4 + $0x122c] ss:$16 sps:$4 sm:$0xff]   ;;  %v7889_v9 = vcombine.high %v11164_v4, %v11164_v4 }
 0x2b6   :  { %6096 = vmatpush1.bf16.msra.mxu0 %v9997_v10  ;;  %6588 = vmatpush1.bf16.msra.mxu1 %v10000_v12  ;;  %v10086_v10 = vld [vmem:[#allocation4 + $0x1228] ss:$16 sps:$4 sm:$0xff]   ;;  %v10091_v12 = vld [vmem:[#allocation4 + $0x1244] ss:$16 sps:$4 sm:$0xff]  }
 0x2b7   :  { %6097 = vmatprep.subr.bf16.mxu0 %v10005_v13  ;;  %6589 = vmatprep.subr.bf16.mxu1 %v10008_v15  ;;  %v10094_v13 = vld [vmem:[#allocation4 + $0x124c] ss:$16 sps:$4 sm:$0xff]   ;;  %v10089_v15 = vld [vmem:[#allocation4 + $0x1240] ss:$16 sps:$4 sm:$0xff]  }
 0x2ba   :  { %6098 = vmatpush1.bf16.msra.mxu0 %v10003_v16  ;;  %6590 = vmatpush1.bf16.msra.mxu1 %v10006_v18  ;;  %v10092_v16 = vld [vmem:[#allocation4 + $0x1248] ss:$16 sps:$4 sm:$0xff]   ;;  %v10097_v18 = vld [vmem:[#allocation4 + $0x1264] ss:$16 sps:$4 sm:$0xff]  }
 0x2bb   :  { %6099 = vmatprep.subr.bf16.mxu0 %v10011_v11  ;;  %6591 = vmatprep.subr.bf16.mxu1 %v10014_v20  ;;  %v10100_v11 = vld [vmem:[#allocation4 + $0x126c] ss:$16 sps:$4 sm:$0xff]   ;;  %v10095_v20 = vld [vmem:[#allocation4 + $0x1260] ss:$16 sps:$4 sm:$0xff]  }
 0x2be   :  { %6100 = vmatpush1.bf16.msra.mxu0 %v10009_v14  ;;  %6592 = vmatpush1.bf16.msra.mxu1 %v10012_v21  ;;  %v10098_v14 = vld [vmem:[#allocation4 + $0x1268] ss:$16 sps:$4 sm:$0xff]   ;;  %v10103_v21 = vld [vmem:[#allocation4 + $0x1284] ss:$16 sps:$4 sm:$0xff]  }
 0x2bf   :  { %6101 = vmatprep.subr.bf16.mxu0 %v10017_v22  ;;  %6593 = vmatprep.subr.bf16.mxu1 %v10020_v23  ;;  %v10106_v22 = vld [vmem:[#allocation4 + $0x128c] ss:$16 sps:$4 sm:$0xff]   ;;  %v10101_v23 = vld [vmem:[#allocation4 + $0x1280] ss:$16 sps:$4 sm:$0xff]  }
 0x2c2   :  { %6102 = vmatpush1.bf16.msra.mxu0 %v10015_v24  ;;  %6594 = vmatpush1.bf16.msra.mxu1 %v10018_v25  ;;  %v10104_v24 = vld [vmem:[#allocation4 + $0x1288] ss:$16 sps:$4 sm:$0xff]   ;;  %v10109_v25 = vld [vmem:[#allocation4 + $0x12a4] ss:$16 sps:$4 sm:$0xff]  }
 0x2c3   :  { %6103 = vmatprep.subr.bf16.mxu0 %v10023_v17  ;;  %6595 = vmatprep.subr.bf16.mxu1 %v10026_v26  ;;  %v10112_v17 = vld [vmem:[#allocation4 + $0x12ac] ss:$16 sps:$4 sm:$0xff]   ;;  %v10107_v26 = vld [vmem:[#allocation4 + $0x12a0] ss:$16 sps:$4 sm:$0xff]  }
 0x2c6   :  { %6104 = vmatpush1.bf16.msra.mxu0 %v10021_v27  ;;  %6596 = vmatpush1.bf16.msra.mxu1 %v10024_v29  ;;  %v10110_v27 = vld [vmem:[#allocation4 + $0x12a8] ss:$16 sps:$4 sm:$0xff]   ;;  %v10115_v29 = vld [vmem:[#allocation4 + $0x12c4] ss:$16 sps:$4 sm:$0xff]  }
 0x2c7   :  { %6105 = vmatprep.subr.bf16.mxu0 %v10029_v30  ;;  %6597 = vmatprep.subr.bf16.mxu1 %v10032_v31  ;;  %v10118_v30 = vld [vmem:[#allocation4 + $0x12cc] ss:$16 sps:$4 sm:$0xff]   ;;  %v10113_v31 = vld [vmem:[#allocation4 + $0x12c0] ss:$16 sps:$4 sm:$0xff]  }
 0x2ca   :  { %6106 = vmatpush1.bf16.msra.mxu0 %v10027_v32  ;;  %6598 = vmatpush1.bf16.msra.mxu1 %v10030_v33  ;;  %v10116_v32 = vld [vmem:[#allocation4 + $0x12c8] ss:$16 sps:$4 sm:$0xff]   ;;  %v10121_v33 = vld [vmem:[#allocation4 + $0x12e4] ss:$16 sps:$4 sm:$0xff]  }
 0x2cb   :  { %6107 = vmatprep.subr.bf16.mxu0 %v10035_v34  ;;  %6599 = vmatprep.subr.bf16.mxu1 %v10038_v35  ;;  %v10124_v34 = vld [vmem:[#allocation4 + $0x12ec] ss:$16 sps:$4 sm:$0xff]   ;;  %v10119_v35 = vld [vmem:[#allocation4 + $0x12e0] ss:$16 sps:$4 sm:$0xff]  }
 0x2ce   :  { %6108 = vmatpush1.bf16.msra.mxu0 %v10033_v19  ;;  %6600 = vmatpush1.bf16.msra.mxu1 %v10036_v37  ;;  %v10122_v19 = vld [vmem:[#allocation4 + $0x12e8] ss:$16 sps:$4 sm:$0xff]   ;;  %v10127_v37 = vld [vmem:[#allocation4 + $0x1304] ss:$16 sps:$4 sm:$0xff]  }
 0x2cf   :  { %6109 = vmatprep.subr.bf16.mxu0 %v10041_v38  ;;  %6601 = vmatprep.subr.bf16.mxu1 %v10044_v39  ;;  %v10130_v38 = vld [vmem:[#allocation4 + $0x130c] ss:$16 sps:$4 sm:$0xff]   ;;  %v10125_v39 = vld [vmem:[#allocation4 + $0x1300] ss:$16 sps:$4 sm:$0xff]  }
 0x2d2   :  { %6110 = vmatpush1.bf16.msra.mxu0 %v10039_v40  ;;  %6602 = vmatpush1.bf16.msra.mxu1 %v10042_v41  ;;  %v10128_v40 = vld [vmem:[#allocation4 + $0x1308] ss:$16 sps:$4 sm:$0xff]   ;;  %v10133_v41 = vld [vmem:[#allocation4 + $0x1324] ss:$16 sps:$4 sm:$0xff]  }
 0x2d3   :  { %6111 = vmatprep.subr.bf16.mxu0 %v10047_v42  ;;  %6603 = vmatprep.subr.bf16.mxu1 %v10050_v28  ;;  %v10136_v42 = vld [vmem:[#allocation4 + $0x132c] ss:$16 sps:$4 sm:$0xff]   ;;  %v10131_v28 = vld [vmem:[#allocation4 + $0x1320] ss:$16 sps:$4 sm:$0xff]  }
 0x2d6   :  { %6112 = vmatpush1.bf16.msra.mxu0 %v10045_v48  ;;  %6604 = vmatpush1.bf16.msra.mxu1 %v10048_v49  ;;  %v10134_v48 = vld [vmem:[#allocation4 + $0x1328] ss:$16 sps:$4 sm:$0xff]   ;;  %v10139_v49 = vld [vmem:[#allocation4 + $0x1344] ss:$16 sps:$4 sm:$0xff]  }
 0x2d7   :  { %6113 = vmatprep.subr.bf16.mxu0 %v10053_v50  ;;  %6605 = vmatprep.subr.bf16.mxu1 %v10056_v51  ;;  %v10142_v50 = vld [vmem:[#allocation4 + $0x134c] ss:$16 sps:$4 sm:$0xff]   ;;  %v10137_v51 = vld [vmem:[#allocation4 + $0x1340] ss:$16 sps:$4 sm:$0xff]  }
 0x2da   :  { %6114 = vmatpush1.bf16.msra.mxu0 %v10051_v52  ;;  %6606 = vmatpush1.bf16.msra.mxu1 %v10054_v53  ;;  %v10140_v52 = vld [vmem:[#allocation4 + $0x1348] ss:$16 sps:$4 sm:$0xff]   ;;  %v10145_v53 = vld [vmem:[#allocation4 + $0x1364] ss:$16 sps:$4 sm:$0xff]  }
 0x2db   :  { %6115 = vmatprep.subr.bf16.mxu0 %v10059_v36  ;;  %6607 = vmatprep.subr.bf16.mxu1 %v10062_v55  ;;  %v10148_v36 = vld [vmem:[#allocation4 + $0x136c] ss:$16 sps:$4 sm:$0xff]   ;;  %v10143_v55 = vld [vmem:[#allocation4 + $0x1360] ss:$16 sps:$4 sm:$0xff]  }
 0x2de   :  { %6116 = vmatpush1.bf16.msra.mxu0 %v10057_v56  ;;  %6608 = vmatpush1.bf16.msra.mxu1 %v10060_v57  ;;  %v10146_v56 = vld [vmem:[#allocation4 + $0x1368] ss:$16 sps:$4 sm:$0xff]   ;;  %v10151_v57 = vld [vmem:[#allocation4 + $0x1384] ss:$16 sps:$4 sm:$0xff]  }
 0x2df   :  { %6117 = vmatprep.subr.bf16.mxu0 %v10065_v58  ;;  %6609 = vmatprep.subr.bf16.mxu1 %v10068_v59  ;;  %v10154_v58 = vld [vmem:[#allocation4 + $0x138c] ss:$16 sps:$4 sm:$0xff]   ;;  %v10149_v59 = vld [vmem:[#allocation4 + $0x1380] ss:$16 sps:$4 sm:$0xff]  }
 0x2e2   :  { %6118 = vmatpush1.bf16.msra.mxu0 %v10063_v60  ;;  %6610 = vmatpush1.bf16.msra.mxu1 %v10066_v61  ;;  %v10152_v60 = vld [vmem:[#allocation4 + $0x1388] ss:$16 sps:$4 sm:$0xff]   ;;  %v10157_v61 = vld [vmem:[#allocation4 + $0x13a4] ss:$16 sps:$4 sm:$0xff]  }
 0x2e3   :  { %6119 = vmatprep.subr.bf16.mxu0 %v10071_v62  ;;  %6611 = vmatprep.subr.bf16.mxu1 %v10074_v63  ;;  %v10160_v62 = vld [vmem:[#allocation4 + $0x13ac] ss:$16 sps:$4 sm:$0xff]   ;;  %v10155_v63 = vld [vmem:[#allocation4 + $0x13a0] ss:$16 sps:$4 sm:$0xff]  }
 0x2e6   :  { %6120 = vmatpush1.bf16.msra.mxu0 %v10069_v0  ;;  %6612 = vmatpush1.bf16.msra.mxu1 %v10072_v1  ;;  %v10158_v0 = vld [vmem:[#allocation4 + $0x13a8] ss:$16 sps:$4 sm:$0xff]   ;;  %v10163_v1 = vld [vmem:[#allocation4 + $0x13c4] ss:$16 sps:$4 sm:$0xff]  }
 0x2e7   :  { %6130 = vmatprep.subr.bf16.mxu0 %v10079_v2  ;;  %6622 = vmatprep.subr.bf16.mxu1 %v10082_v54  ;;  %v10166_v2 = vld [vmem:[#allocation4 + $0x13cc] ss:$16 sps:$4 sm:$0xff]   ;;  %v10161_v54 = vld [vmem:[#allocation4 + $0x13c0] ss:$16 sps:$4 sm:$0xff]  }
 0x2e9   :  { %6122 = vmatmul.mubr.bf16.vlgmr.msra.gmra.mrb[4].mxu0 %v7886_v3  ;;  %6614 = vmatmul.mubr.bf16.vlgmr.msra.gmra.mrb[4].mxu1 %v7886_v3  ;;  %v10164_v3 = vld [vmem:[#allocation4 + $0x13c8] ss:$16 sps:$4 sm:$0xff]  }
 0x2ea   :  { %6131 = vmatpush1.bf16.msra.mxu0 %v10077_v5  ;;  %6623 = vmatpush1.bf16.msra.mxu1 %v10080_v6  ;;  %v10169_v5 = vld [vmem:[#allocation4 + $0x13e4] ss:$16 sps:$4 sm:$0xff]   ;;  %v10172_v6 = vld [vmem:[#allocation4 + $0x13ec] ss:$16 sps:$4 sm:$0xff]  }
 0x2eb   :  { %6132 = vmatprep.subr.bf16.mxu0 %v10085_v7  ;;  %6624 = vmatprep.subr.bf16.mxu1 %v10088_v8  ;;  %v10167_v7 = vld [vmem:[#allocation4 + $0x13e0] ss:$16 sps:$4 sm:$0xff]   ;;  %v10170_v8 = vld [vmem:[#allocation4 + $0x13e8] ss:$16 sps:$4 sm:$0xff]  }
 0x2ec   :  { %6162 = vmatprep.mubr.bf16.mxu0 %v7889_v9  ;;  %6654 = vmatprep.mubr.bf16.mxu1 %v7889_v9  ;;  %v10177_v9 = vld [vmem:[#allocation4 + $0x1404] ss:$16 sps:$4 sm:$0xff]  }
 0x2ee   :  { %6133 = vmatpush1.bf16.msra.mxu0 %v10083_v47  ;;  %6625 = vmatpush1.bf16.msra.mxu1 %v10086_v10  ;;  %v10180_v47 = vld [vmem:[#allocation4 + $0x140c] ss:$16 sps:$4 sm:$0xff]   ;;  %v7888_v10 = vcombine.low %v11164_v4, %v11164_v4  ;;  %v10181_v4 = vld [vmem:[#allocation4 + $0x1420] ss:$16 sps:$4 sm:$0xff]  }
 0x2ef   :  { %6134 = vmatprep.subr.bf16.mxu0 %v10091_v12  ;;  %6626 = vmatprep.subr.bf16.mxu1 %v10094_v13  ;;  %v11173_v12 = vld [vmem:[%s11480_s0 + $0x50] sm:$0xff] }
 0x2f0   :  { %v10175_v13 = vld [vmem:[#allocation4 + $0x1400] ss:$16 sps:$4 sm:$0xff]  }
 0x2f2   :  { %6135 = vmatpush1.bf16.msra.mxu0 %v10089_v15  ;;  %6627 = vmatpush1.bf16.msra.mxu1 %v10092_v16  ;;  %v10178_v15 = vld [vmem:[#allocation4 + $0x1408] ss:$16 sps:$4 sm:$0xff]   ;;  %v10183_v16 = vld [vmem:[#allocation4 + $0x1424] ss:$16 sps:$4 sm:$0xff]  }
 0x2f3   :  { %6136 = vmatprep.subr.bf16.mxu0 %v10097_v18  ;;  %6628 = vmatprep.subr.bf16.mxu1 %v10100_v11  ;;  %v10186_v18 = vld [vmem:[#allocation4 + $0x142c] ss:$16 sps:$4 sm:$0xff]   ;;  %v7891_v11 = vcombine.high %v11173_v12, %v11173_v12 }
 0x2f6   :  { %6137 = vmatpush1.bf16.msra.mxu0 %v10095_v20  ;;  %6629 = vmatpush1.bf16.msra.mxu1 %v10098_v14  ;;  %v10184_v20 = vld [vmem:[#allocation4 + $0x1428] ss:$16 sps:$4 sm:$0xff]   ;;  %v10189_v14 = vld [vmem:[#allocation4 + $0x1444] ss:$16 sps:$4 sm:$0xff]  }
 0x2f7   :  { %6138 = vmatprep.subr.bf16.mxu0 %v10103_v21  ;;  %6630 = vmatprep.subr.bf16.mxu1 %v10106_v22  ;;  %v10192_v21 = vld [vmem:[#allocation4 + $0x144c] ss:$16 sps:$4 sm:$0xff]   ;;  %v10187_v22 = vld [vmem:[#allocation4 + $0x1440] ss:$16 sps:$4 sm:$0xff]  }
 0x2fa   :  { %6139 = vmatpush1.bf16.msra.mxu0 %v10101_v23  ;;  %6631 = vmatpush1.bf16.msra.mxu1 %v10104_v24  ;;  %v10190_v23 = vld [vmem:[#allocation4 + $0x1448] ss:$16 sps:$4 sm:$0xff]   ;;  %v10195_v24 = vld [vmem:[#allocation4 + $0x1464] ss:$16 sps:$4 sm:$0xff]  }
 0x2fb   :  { %6140 = vmatprep.subr.bf16.mxu0 %v10109_v25  ;;  %6632 = vmatprep.subr.bf16.mxu1 %v10112_v17  ;;  %v10198_v25 = vld [vmem:[#allocation4 + $0x146c] ss:$16 sps:$4 sm:$0xff]   ;;  %v10193_v17 = vld [vmem:[#allocation4 + $0x1460] ss:$16 sps:$4 sm:$0xff]  }
 0x2fe   :  { %6141 = vmatpush1.bf16.msra.mxu0 %v10107_v26  ;;  %6633 = vmatpush1.bf16.msra.mxu1 %v10110_v27  ;;  %v10196_v26 = vld [vmem:[#allocation4 + $0x1468] ss:$16 sps:$4 sm:$0xff]   ;;  %v10201_v27 = vld [vmem:[#allocation4 + $0x1484] ss:$16 sps:$4 sm:$0xff]  }
 0x2ff   :  { %6142 = vmatprep.subr.bf16.mxu0 %v10115_v29  ;;  %6634 = vmatprep.subr.bf16.mxu1 %v10118_v30  ;;  %v10204_v29 = vld [vmem:[#allocation4 + $0x148c] ss:$16 sps:$4 sm:$0xff]   ;;  %v10199_v30 = vld [vmem:[#allocation4 + $0x1480] ss:$16 sps:$4 sm:$0xff]  }
 0x302   :  { %6143 = vmatpush1.bf16.msra.mxu0 %v10113_v31  ;;  %6635 = vmatpush1.bf16.msra.mxu1 %v10116_v32  ;;  %v10202_v31 = vld [vmem:[#allocation4 + $0x1488] ss:$16 sps:$4 sm:$0xff]   ;;  %v10207_v32 = vld [vmem:[#allocation4 + $0x14a4] ss:$16 sps:$4 sm:$0xff]  }
 0x303   :  { %6144 = vmatprep.subr.bf16.mxu0 %v10121_v33  ;;  %6636 = vmatprep.subr.bf16.mxu1 %v10124_v34  ;;  %v10210_v33 = vld [vmem:[#allocation4 + $0x14ac] ss:$16 sps:$4 sm:$0xff]   ;;  %v10205_v34 = vld [vmem:[#allocation4 + $0x14a0] ss:$16 sps:$4 sm:$0xff]  }
 0x306   :  { %6145 = vmatpush1.bf16.msra.mxu0 %v10119_v35  ;;  %6637 = vmatpush1.bf16.msra.mxu1 %v10122_v19  ;;  %v10208_v35 = vld [vmem:[#allocation4 + $0x14a8] ss:$16 sps:$4 sm:$0xff]   ;;  %v10213_v19 = vld [vmem:[#allocation4 + $0x14c4] ss:$16 sps:$4 sm:$0xff]  }
 0x307   :  { %6146 = vmatprep.subr.bf16.mxu0 %v10127_v37  ;;  %6638 = vmatprep.subr.bf16.mxu1 %v10130_v38  ;;  %v10216_v37 = vld [vmem:[#allocation4 + $0x14cc] ss:$16 sps:$4 sm:$0xff]   ;;  %v10211_v38 = vld [vmem:[#allocation4 + $0x14c0] ss:$16 sps:$4 sm:$0xff]  }
 0x30a   :  { %6147 = vmatpush1.bf16.msra.mxu0 %v10125_v39  ;;  %6639 = vmatpush1.bf16.msra.mxu1 %v10128_v40  ;;  %v10214_v39 = vld [vmem:[#allocation4 + $0x14c8] ss:$16 sps:$4 sm:$0xff]   ;;  %v10219_v40 = vld [vmem:[#allocation4 + $0x14e4] ss:$16 sps:$4 sm:$0xff]  }
 0x30b   :  { %6148 = vmatprep.subr.bf16.mxu0 %v10133_v41  ;;  %6640 = vmatprep.subr.bf16.mxu1 %v10136_v42  ;;  %v10222_v41 = vld [vmem:[#allocation4 + $0x14ec] ss:$16 sps:$4 sm:$0xff]   ;;  %v10217_v42 = vld [vmem:[#allocation4 + $0x14e0] ss:$16 sps:$4 sm:$0xff]  }
 0x30e   :  { %6149 = vmatpush1.bf16.msra.mxu0 %v10131_v28  ;;  %6641 = vmatpush1.bf16.msra.mxu1 %v10134_v48  ;;  %v10220_v28 = vld [vmem:[#allocation4 + $0x14e8] ss:$16 sps:$4 sm:$0xff]   ;;  %v10225_v48 = vld [vmem:[#allocation4 + $0x1504] ss:$16 sps:$4 sm:$0xff]  }
 0x30f   :  { %6150 = vmatprep.subr.bf16.mxu0 %v10139_v49  ;;  %6642 = vmatprep.subr.bf16.mxu1 %v10142_v50  ;;  %v10228_v49 = vld [vmem:[#allocation4 + $0x150c] ss:$16 sps:$4 sm:$0xff]   ;;  %v10223_v50 = vld [vmem:[#allocation4 + $0x1500] ss:$16 sps:$4 sm:$0xff]  }
 0x312   :  { %6151 = vmatpush1.bf16.msra.mxu0 %v10137_v51  ;;  %6643 = vmatpush1.bf16.msra.mxu1 %v10140_v52  ;;  %v10226_v51 = vld [vmem:[#allocation4 + $0x1508] ss:$16 sps:$4 sm:$0xff]   ;;  %v10231_v52 = vld [vmem:[#allocation4 + $0x1524] ss:$16 sps:$4 sm:$0xff]  }
 0x313   :  { %6152 = vmatprep.subr.bf16.mxu0 %v10145_v53  ;;  %6644 = vmatprep.subr.bf16.mxu1 %v10148_v36  ;;  %v10234_v53 = vld [vmem:[#allocation4 + $0x152c] ss:$16 sps:$4 sm:$0xff]   ;;  %v10229_v36 = vld [vmem:[#allocation4 + $0x1520] ss:$16 sps:$4 sm:$0xff]  }
 0x316   :  { %6153 = vmatpush1.bf16.msra.mxu0 %v10143_v55  ;;  %6645 = vmatpush1.bf16.msra.mxu1 %v10146_v56  ;;  %v10232_v55 = vld [vmem:[#allocation4 + $0x1528] ss:$16 sps:$4 sm:$0xff]   ;;  %v10237_v56 = vld [vmem:[#allocation4 + $0x1544] ss:$16 sps:$4 sm:$0xff]  }
 0x317   :  { %6154 = vmatprep.subr.bf16.mxu0 %v10151_v57  ;;  %6646 = vmatprep.subr.bf16.mxu1 %v10154_v58  ;;  %v10240_v57 = vld [vmem:[#allocation4 + $0x154c] ss:$16 sps:$4 sm:$0xff]   ;;  %v10235_v58 = vld [vmem:[#allocation4 + $0x1540] ss:$16 sps:$4 sm:$0xff]  }
 0x31a   :  { %6155 = vmatpush1.bf16.msra.mxu0 %v10149_v59  ;;  %6647 = vmatpush1.bf16.msra.mxu1 %v10152_v60  ;;  %v10238_v59 = vld [vmem:[#allocation4 + $0x1548] ss:$16 sps:$4 sm:$0xff]   ;;  %v10243_v60 = vld [vmem:[#allocation4 + $0x1564] ss:$16 sps:$4 sm:$0xff]  }
 0x31b   :  { %6156 = vmatprep.subr.bf16.mxu0 %v10157_v61  ;;  %6648 = vmatprep.subr.bf16.mxu1 %v10160_v62  ;;  %v10246_v61 = vld [vmem:[#allocation4 + $0x156c] ss:$16 sps:$4 sm:$0xff]   ;;  %v10241_v62 = vld [vmem:[#allocation4 + $0x1560] ss:$16 sps:$4 sm:$0xff]  }
 0x31e   :  { %6157 = vmatpush1.bf16.msra.mxu0 %v10155_v63  ;;  %6649 = vmatpush1.bf16.msra.mxu1 %v10158_v0  ;;  %v10244_v63 = vld [vmem:[#allocation4 + $0x1568] ss:$16 sps:$4 sm:$0xff]   ;;  %v10249_v0 = vld [vmem:[#allocation4 + $0x1584] ss:$16 sps:$4 sm:$0xff]  }
 0x31f   :  { %6158 = vmatprep.subr.bf16.mxu0 %v10163_v1  ;;  %6650 = vmatprep.subr.bf16.mxu1 %v10166_v2  ;;  %v10252_v1 = vld [vmem:[#allocation4 + $0x158c] ss:$16 sps:$4 sm:$0xff]   ;;  %v10247_v2 = vld [vmem:[#allocation4 + $0x1580] ss:$16 sps:$4 sm:$0xff]  }
 0x322   :  { %6159 = vmatpush1.bf16.msra.mxu0 %v10161_v54  ;;  %6651 = vmatpush1.bf16.msra.mxu1 %v10164_v3  ;;  %v10250_v54 = vld [vmem:[#allocation4 + $0x1588] ss:$16 sps:$4 sm:$0xff]   ;;  %v10255_v3 = vld [vmem:[#allocation4 + $0x15a4] ss:$16 sps:$4 sm:$0xff]  }
 0x323   :  { %6160 = vmatprep.subr.bf16.mxu0 %v10169_v5  ;;  %6652 = vmatprep.subr.bf16.mxu1 %v10172_v6  ;;  %v10258_v5 = vld [vmem:[#allocation4 + $0x15ac] ss:$16 sps:$4 sm:$0xff]   ;;  %v10253_v6 = vld [vmem:[#allocation4 + $0x15a0] ss:$16 sps:$4 sm:$0xff]  }
 0x326   :  { %6161 = vmatpush1.bf16.msra.mxu0 %v10167_v7  ;;  %6653 = vmatpush1.bf16.msra.mxu1 %v10170_v8  ;;  %v10256_v7 = vld [vmem:[#allocation4 + $0x15a8] ss:$16 sps:$4 sm:$0xff]   ;;  %v10261_v8 = vld [vmem:[#allocation4 + $0x15c4] ss:$16 sps:$4 sm:$0xff]  }
 0x327   :  { %6171 = vmatprep.subr.bf16.mxu0 %v10177_v9  ;;  %6663 = vmatprep.subr.bf16.mxu1 %v10180_v47  ;;  %v10264_v9 = vld [vmem:[#allocation4 + $0x15cc] ss:$16 sps:$4 sm:$0xff]   ;;  %v10259_v47 = vld [vmem:[#allocation4 + $0x15c0] ss:$16 sps:$4 sm:$0xff]  }
 0x329   :  { %6163 = vmatmul.mubr.bf16.vlgmr.msra.gmra.mrb[4].mxu0 %v7888_v10  ;;  %6655 = vmatmul.mubr.bf16.vlgmr.msra.gmra.mrb[4].mxu1 %v7888_v10  ;;  %v10262_v10 = vld [vmem:[#allocation4 + $0x15c8] ss:$16 sps:$4 sm:$0xff]  }
 0x32a   :  { %6172 = vmatpush1.bf16.msra.mxu0 %v10175_v13  ;;  %6664 = vmatpush1.bf16.msra.mxu1 %v10178_v15  ;;  %v10267_v13 = vld [vmem:[#allocation4 + $0x15e4] ss:$16 sps:$4 sm:$0xff]   ;;  %v10270_v15 = vld [vmem:[#allocation4 + $0x15ec] ss:$16 sps:$4 sm:$0xff]  }
 0x32b   :  { %6173 = vmatprep.subr.bf16.mxu0 %v10183_v16  ;;  %6665 = vmatprep.subr.bf16.mxu1 %v10186_v18  ;;  %v10265_v16 = vld [vmem:[#allocation4 + $0x15e0] ss:$16 sps:$4 sm:$0xff]   ;;  %v10268_v18 = vld [vmem:[#allocation4 + $0x15e8] ss:$16 sps:$4 sm:$0xff]  }
 0x32c   :  { %6203 = vmatprep.mubr.bf16.mxu0 %v7891_v11  ;;  %6695 = vmatprep.mubr.bf16.mxu1 %v7891_v11  ;;  %v10275_v11 = vld [vmem:[#allocation4 + $0x1604] ss:$16 sps:$4 sm:$0xff]  }
 0x32e   :  { %6174 = vmatpush1.bf16.msra.mxu0 %v10181_v4  ;;  %6666 = vmatpush1.bf16.msra.mxu1 %v10184_v20  ;;  %v10278_v4 = vld [vmem:[#allocation4 + $0x160c] ss:$16 sps:$4 sm:$0xff]   ;;  %v7890_v20 = vcombine.low %v11173_v12, %v11173_v12  ;;  %v10279_v12 = vld [vmem:[#allocation4 + $0x1620] ss:$16 sps:$4 sm:$0xff]  }
 0x32f   :  { %6175 = vmatprep.subr.bf16.mxu0 %v10189_v14  ;;  %6667 = vmatprep.subr.bf16.mxu1 %v10192_v21  ;;  %v11182_v14 = vld [vmem:[%s11480_s0 + $0x58] sm:$0xff]  ;;  %v10273_v21 = vld [vmem:[#allocation4 + $0x1600] ss:$16 sps:$4 sm:$0xff]  }
 0x332   :  { %6176 = vmatpush1.bf16.msra.mxu0 %v10187_v22  ;;  %6668 = vmatpush1.bf16.msra.mxu1 %v10190_v23  ;;  %v10276_v22 = vld [vmem:[#allocation4 + $0x1608] ss:$16 sps:$4 sm:$0xff]   ;;  %v10281_v23 = vld [vmem:[#allocation4 + $0x1624] ss:$16 sps:$4 sm:$0xff]  }
 0x333   :  { %6177 = vmatprep.subr.bf16.mxu0 %v10195_v24  ;;  %6669 = vmatprep.subr.bf16.mxu1 %v10198_v25  ;;  %v10284_v24 = vld [vmem:[#allocation4 + $0x162c] ss:$16 sps:$4 sm:$0xff]   ;;  %v7893_v25 = vcombine.high %v11182_v14, %v11182_v14 }
 0x336   :  { %6178 = vmatpush1.bf16.msra.mxu0 %v10193_v17  ;;  %6670 = vmatpush1.bf16.msra.mxu1 %v10196_v26  ;;  %v10282_v17 = vld [vmem:[#allocation4 + $0x1628] ss:$16 sps:$4 sm:$0xff]   ;;  %v10287_v26 = vld [vmem:[#allocation4 + $0x1644] ss:$16 sps:$4 sm:$0xff]  }
 0x337   :  { %6179 = vmatprep.subr.bf16.mxu0 %v10201_v27  ;;  %6671 = vmatprep.subr.bf16.mxu1 %v10204_v29  ;;  %v10290_v27 = vld [vmem:[#allocation4 + $0x164c] ss:$16 sps:$4 sm:$0xff]   ;;  %v10285_v29 = vld [vmem:[#allocation4 + $0x1640] ss:$16 sps:$4 sm:$0xff]  }
 0x33a   :  { %6180 = vmatpush1.bf16.msra.mxu0 %v10199_v30  ;;  %6672 = vmatpush1.bf16.msra.mxu1 %v10202_v31  ;;  %v10288_v30 = vld [vmem:[#allocation4 + $0x1648] ss:$16 sps:$4 sm:$0xff]   ;;  %v10293_v31 = vld [vmem:[#allocation4 + $0x1664] ss:$16 sps:$4 sm:$0xff]  }
 0x33b   :  { %6181 = vmatprep.subr.bf16.mxu0 %v10207_v32  ;;  %6673 = vmatprep.subr.bf16.mxu1 %v10210_v33  ;;  %v10296_v32 = vld [vmem:[#allocation4 + $0x166c] ss:$16 sps:$4 sm:$0xff]   ;;  %v10291_v33 = vld [vmem:[#allocation4 + $0x1660] ss:$16 sps:$4 sm:$0xff]  }
 0x33e   :  { %6182 = vmatpush1.bf16.msra.mxu0 %v10205_v34  ;;  %6674 = vmatpush1.bf16.msra.mxu1 %v10208_v35  ;;  %v10294_v34 = vld [vmem:[#allocation4 + $0x1668] ss:$16 sps:$4 sm:$0xff]   ;;  %v10299_v35 = vld [vmem:[#allocation4 + $0x1684] ss:$16 sps:$4 sm:$0xff]  }
 0x33f   :  { %6183 = vmatprep.subr.bf16.mxu0 %v10213_v19  ;;  %6675 = vmatprep.subr.bf16.mxu1 %v10216_v37  ;;  %v10302_v19 = vld [vmem:[#allocation4 + $0x168c] ss:$16 sps:$4 sm:$0xff]   ;;  %v10297_v37 = vld [vmem:[#allocation4 + $0x1680] ss:$16 sps:$4 sm:$0xff]  }
 0x342   :  { %6184 = vmatpush1.bf16.msra.mxu0 %v10211_v38  ;;  %6676 = vmatpush1.bf16.msra.mxu1 %v10214_v39  ;;  %v10300_v38 = vld [vmem:[#allocation4 + $0x1688] ss:$16 sps:$4 sm:$0xff]   ;;  %v10305_v39 = vld [vmem:[#allocation4 + $0x16a4] ss:$16 sps:$4 sm:$0xff]  }
 0x343   :  { %6185 = vmatprep.subr.bf16.mxu0 %v10219_v40  ;;  %6677 = vmatprep.subr.bf16.mxu1 %v10222_v41  ;;  %v10308_v40 = vld [vmem:[#allocation4 + $0x16ac] ss:$16 sps:$4 sm:$0xff]   ;;  %v10303_v41 = vld [vmem:[#allocation4 + $0x16a0] ss:$16 sps:$4 sm:$0xff]  }
 0x346   :  { %6186 = vmatpush1.bf16.msra.mxu0 %v10217_v42  ;;  %6678 = vmatpush1.bf16.msra.mxu1 %v10220_v28  ;;  %v10306_v42 = vld [vmem:[#allocation4 + $0x16a8] ss:$16 sps:$4 sm:$0xff]   ;;  %v10311_v28 = vld [vmem:[#allocation4 + $0x16c4] ss:$16 sps:$4 sm:$0xff]  }
 0x347   :  { %6187 = vmatprep.subr.bf16.mxu0 %v10225_v48  ;;  %6679 = vmatprep.subr.bf16.mxu1 %v10228_v49  ;;  %v10314_v48 = vld [vmem:[#allocation4 + $0x16cc] ss:$16 sps:$4 sm:$0xff]   ;;  %v10309_v49 = vld [vmem:[#allocation4 + $0x16c0] ss:$16 sps:$4 sm:$0xff]  }
 0x34a   :  { %6188 = vmatpush1.bf16.msra.mxu0 %v10223_v50  ;;  %6680 = vmatpush1.bf16.msra.mxu1 %v10226_v51  ;;  %v10312_v50 = vld [vmem:[#allocation4 + $0x16c8] ss:$16 sps:$4 sm:$0xff]   ;;  %v10317_v51 = vld [vmem:[#allocation4 + $0x16e4] ss:$16 sps:$4 sm:$0xff]  }
 0x34b   :  { %6189 = vmatprep.subr.bf16.mxu0 %v10231_v52  ;;  %6681 = vmatprep.subr.bf16.mxu1 %v10234_v53  ;;  %v10320_v52 = vld [vmem:[#allocation4 + $0x16ec] ss:$16 sps:$4 sm:$0xff]   ;;  %v10315_v53 = vld [vmem:[#allocation4 + $0x16e0] ss:$16 sps:$4 sm:$0xff]  }
 0x34e   :  { %6190 = vmatpush1.bf16.msra.mxu0 %v10229_v36  ;;  %6682 = vmatpush1.bf16.msra.mxu1 %v10232_v55  ;;  %v10318_v36 = vld [vmem:[#allocation4 + $0x16e8] ss:$16 sps:$4 sm:$0xff]   ;;  %v10323_v55 = vld [vmem:[#allocation4 + $0x1704] ss:$16 sps:$4 sm:$0xff]  }
 0x34f   :  { %6191 = vmatprep.subr.bf16.mxu0 %v10237_v56  ;;  %6683 = vmatprep.subr.bf16.mxu1 %v10240_v57  ;;  %v10326_v56 = vld [vmem:[#allocation4 + $0x170c] ss:$16 sps:$4 sm:$0xff]   ;;  %v7867_v57 = vmul.f32 -1.442695, %v11110_v45 }
 0x350   :  { %v10338_v45 = vld [vmem:[#allocation4 + $0x174c] ss:$16 sps:$4 sm:$0xff]  }
 0x351   :  { %10451 = vpow2.f32 %v7867_v57  ;;  %v10389_v57 = vld [vmem:[%s11485_s5 + $0x20] sm:$0xff]  }
 0x352   :  { %6192 = vmatpush1.bf16.msra.mxu0 %v10235_v58  ;;  %6684 = vmatpush1.bf16.msra.mxu1 %v10238_v59  ;;  %v10321_v58 = vld [vmem:[#allocation4 + $0x1700] ss:$16 sps:$4 sm:$0xff]   ;;  %v10324_v59 = vld [vmem:[#allocation4 + $0x1708] ss:$16 sps:$4 sm:$0xff]  }
 0x353   :  { %6193 = vmatprep.subr.bf16.mxu0 %v10243_v60  ;;  %6685 = vmatprep.subr.bf16.mxu1 %v10246_v61  ;;  %v7869_v60 = vmul.f32 -1.442695, %v11112_v46  ;;  %v10329_v61 = vld [vmem:[#allocation4 + $0x1724] ss:$16 sps:$4 sm:$0xff]  }
 0x354   :  { %v10341_v46 = vld [vmem:[#allocation4 + $0x1764] ss:$16 sps:$4 sm:$0xff]  }
 0x355   :  { %10453 = vpow2.f32 %v7869_v60  ;;  %v10391_v60 = vld [vmem:[%s11485_s5 + $0x68] sm:$0xff]  }
 0x356   :  { %6194 = vmatpush1.bf16.msra.mxu0 %v10241_v62  ;;  %6686 = vmatpush1.bf16.msra.mxu1 %v10244_v63  ;;  %v10332_v62 = vld [vmem:[#allocation4 + $0x172c] ss:$16 sps:$4 sm:$0xff]   ;;  %v10327_v63 = vld [vmem:[#allocation4 + $0x1720] ss:$16 sps:$4 sm:$0xff]  }
 0x357   :  { %6195 = vmatprep.subr.bf16.mxu0 %v10249_v0  ;;  %6687 = vmatprep.subr.bf16.mxu1 %v10252_v1  ;;  %v10330_v0 = vld [vmem:[#allocation4 + $0x1728] ss:$16 sps:$4 sm:$0xff]   ;;  %v10335_v1 = vld [vmem:[#allocation4 + $0x1744] ss:$16 sps:$4 sm:$0xff]  }
 0x35a   :  { %6196 = vmatpush1.bf16.msra.mxu0 %v10247_v2  ;;  %6688 = vmatpush1.bf16.msra.mxu1 %v10250_v54  ;;  %v10333_v2 = vld [vmem:[#allocation4 + $0x1740] ss:$16 sps:$4 sm:$0xff]   ;;  %v10336_v54 = vld [vmem:[#allocation4 + $0x1748] ss:$16 sps:$4 sm:$0xff]  }
 0x35b   :  { %6197 = vmatprep.subr.bf16.mxu0 %v10255_v3  ;;  %6689 = vmatprep.subr.bf16.mxu1 %v10258_v5  ;;  %v10344_v3 = vld [vmem:[#allocation4 + $0x176c] ss:$16 sps:$4 sm:$0xff]   ;;  %v10339_v5 = vld [vmem:[#allocation4 + $0x1760] ss:$16 sps:$4 sm:$0xff]  }
 0x35e   :  { %6198 = vmatpush1.bf16.msra.mxu0 %v10253_v6  ;;  %6690 = vmatpush1.bf16.msra.mxu1 %v10256_v7  ;;  %v10342_v6 = vld [vmem:[#allocation4 + $0x1768] ss:$16 sps:$4 sm:$0xff]   ;;  %v10347_v7 = vld [vmem:[#allocation4 + $0x1784] ss:$16 sps:$4 sm:$0xff]  }
 0x35f   :  { %6199 = vmatprep.subr.bf16.mxu0 %v10261_v8  ;;  %6691 = vmatprep.subr.bf16.mxu1 %v10264_v9  ;;  %v10350_v8 = vld [vmem:[#allocation4 + $0x178c] ss:$16 sps:$4 sm:$0xff]   ;;  %v10452_v9 = vpop.eup %10451 }
 0x362   :  { %6200 = vmatpush1.bf16.msra.mxu0 %v10259_v47  ;;  %6692 = vmatpush1.bf16.msra.mxu1 %v10262_v10  ;;  %v10454_v47 = vpop.eup %10453  ;;  %v10345_v10 = vld [vmem:[#allocation4 + $0x1780] ss:$16 sps:$4 sm:$0xff]  }
 0x363   :  { %6201 = vmatprep.subr.bf16.mxu0 %v10267_v13  ;;  %6693 = vmatprep.subr.bf16.mxu1 %v10270_v15  ;;  %v10348_v13 = vld [vmem:[#allocation4 + $0x1788] ss:$16 sps:$4 sm:$0xff]   ;;  %v1038_v15 = vadd.f32 1.0, %v10452_v9 }
 0x365   :  { %10455 = vrcp.f32 %v1038_v15  ;;  %v10406_v15 = vld [vmem:[%s11484_s4 + $0x80] sm:$0xff]  }
 0x366   :  { %6202 = vmatpush1.bf16.msra.mxu0 %v10265_v16  ;;  %6694 = vmatpush1.bf16.msra.mxu1 %v10268_v18  ;;  %v10353_v16 = vld [vmem:[#allocation4 + $0x17a4] ss:$16 sps:$4 sm:$0xff]   ;;  %v10356_v18 = vld [vmem:[#allocation4 + $0x17ac] ss:$16 sps:$4 sm:$0xff]  }
 0x367   :  { %6212 = vmatprep.subr.bf16.mxu0 %v10275_v11  ;;  %6704 = vmatprep.subr.bf16.mxu1 %v10278_v4  ;;  %v1040_v11 = vadd.f32 1.0, %v10454_v47  ;;  %v10351_v4 = vld [vmem:[#allocation4 + $0x17a0] ss:$16 sps:$4 sm:$0xff]  }
 0x369   :  { %6204 = vmatmul.mubr.bf16.vlgmr.msra.gmra.mrb[4].mxu0 %v7890_v20  ;;  %6696 = vmatmul.mubr.bf16.vlgmr.msra.gmra.mrb[4].mxu1 %v7890_v20  ;;  %v10354_v20 = vld [vmem:[#allocation4 + $0x17a8] ss:$16 sps:$4 sm:$0xff]   ;;  %10457 = vrcp.f32 %v1040_v11 }
 0x36a   :  { %6213 = vmatpush1.bf16.msra.mxu0 %v10273_v21  ;;  %6705 = vmatpush1.bf16.msra.mxu1 %v10276_v22  ;;  %v10359_v21 = vld [vmem:[#allocation4 + $0x17c4] ss:$16 sps:$4 sm:$0xff]   ;;  %v10362_v22 = vld [vmem:[#allocation4 + $0x17cc] ss:$16 sps:$4 sm:$0xff]  }
 0x36b   :  { %6214 = vmatprep.subr.bf16.mxu0 %v10281_v23  ;;  %6706 = vmatprep.subr.bf16.mxu1 %v10284_v24  ;;  %v10357_v23 = vld [vmem:[#allocation4 + $0x17c0] ss:$16 sps:$4 sm:$0xff]   ;;  %v10360_v24 = vld [vmem:[#allocation4 + $0x17c8] ss:$16 sps:$4 sm:$0xff]  }
 0x36c   :  { %6244 = vmatprep.mubr.bf16.mxu0 %v7893_v25  ;;  %6736 = vmatprep.mubr.bf16.mxu1 %v7893_v25  ;;  %v10365_v25 = vld [vmem:[#allocation4 + $0x17e4] ss:$16 sps:$4 sm:$0xff]   ;;  %v10409_v11 = vld [vmem:[%s11484_s4 + $0x8] sm:$0xff]  }
 0x36e   :  { %6215 = vmatpush1.bf16.msra.mxu0 %v10279_v12  ;;  %6707 = vmatpush1.bf16.msra.mxu1 %v10282_v17  ;;  %v10368_v12 = vld [vmem:[#allocation4 + $0x17ec] ss:$16 sps:$4 sm:$0xff]   ;;  %v10363_v17 = vld [vmem:[#allocation4 + $0x17e0] ss:$16 sps:$4 sm:$0xff]  }
 0x36f   :  { %6216 = vmatprep.subr.bf16.mxu0 %v10287_v26  ;;  %6708 = vmatprep.subr.bf16.mxu1 %v10290_v27  ;;  %v10366_v26 = vld [vmem:[#allocation4 + $0x17e8] ss:$16 sps:$4 sm:$0xff]   ;;  %v10371_v27 = vld [vmem:[%s11485_s5 + $0x40] sm:$0xff]  }
 0x372   :  { %6217 = vmatpush1.bf16.msra.mxu0 %v10285_v29  ;;  %6709 = vmatpush1.bf16.msra.mxu1 %v10288_v30  ;;  %v10372_v29 = vld [vmem:[%s11485_s5 + $0xc0] sm:$0xff]   ;;  %v10456_v30 = vpop.eup %10455 }
 0x373   :  { %6218 = vmatprep.subr.bf16.mxu0 %v10293_v31  ;;  %6710 = vmatprep.subr.bf16.mxu1 %v10296_v32  ;;  %v7866_v31 = vmul.f32 -1.442695, %v11106_v43  ;;  %v7892_v32 = vcombine.low %v11182_v14, %v11182_v14  ;;  %v10375_v43 = vld [vmem:[%s11485_s5 + $0x48] sm:$0xff]  }
 0x375   :  { %10459 = vpow2.f32 %v7866_v31  ;;  %v10423_v31 = vld [vmem:[%s11484_s4 + $0x68] sm:$0xff]  }
 0x376   :  { %6219 = vmatpush1.bf16.msra.mxu0 %v10291_v33  ;;  %6711 = vmatpush1.bf16.msra.mxu1 %v10294_v34  ;;  %v10458_v33 = vpop.eup %10457  ;;  %v7868_v34 = vmul.f32 -1.442695, %v11108_v44  ;;  %v10376_v44 = vld [vmem:[%s11485_s5 + $0xc8] sm:$0xff]  }
 0x377   :  { %6220 = vmatprep.subr.bf16.mxu0 %v10299_v35  ;;  %6712 = vmatprep.subr.bf16.mxu1 %v10302_v19  ;;  %v10373_v35 = vld [vmem:[%s11485_s5] sm:$0xff]   ;;  %v6795_v14 = vpack.c.bf16 %v10458_v33, %v10458_v33  ;;  %v10425_v33 = vld [vmem:[%s11484_s4 + $0x28] sm:$0xff]  }
 0x378   :  { %v10374_v19 = vld [vmem:[%s11485_s5 + $0x80] sm:$0xff]   ;;  %10461 = vpow2.f32 %v7868_v34  ;;  %v10426_v34 = vld [vmem:[%s11484_s4 + $0xa8] sm:$0xff]  }
 0x37a   :  { %6221 = vmatpush1.bf16.msra.mxu0 %v10297_v37  ;;  %6713 = vmatpush1.bf16.msra.mxu1 %v10300_v38  ;;  %v6793_v37 = vpack.c.bf16 %v10456_v30, %v10456_v30  ;;  %v10377_v38 = vld [vmem:[%s11485_s5 + $0x8] sm:$0xff]   ;;  %v10422_v30 = vld [vmem:[%s11484_s4 + $0xa0] sm:$0xff]  }
 0x37b   :  { %6222 = vmatprep.subr.bf16.mxu0 %v10305_v39  ;;  %6714 = vmatprep.subr.bf16.mxu1 %v10308_v40  ;;  %v10378_v39 = vld [vmem:[%s11485_s5 + $0x88] sm:$0xff]   ;;  %v10379_v40 = vld [vmem:[%s11485_s5 + $0x50] sm:$0xff]  }
 0x37e   :  { %6223 = vmatpush1.bf16.msra.mxu0 %v10303_v41  ;;  %6715 = vmatpush1.bf16.msra.mxu1 %v10306_v42  ;;  %v10380_v41 = vld [vmem:[%s11485_s5 + $0xd0] sm:$0xff]  }
 0x37f   :  { %6224 = vmatprep.subr.bf16.mxu0 %v10311_v28  ;;  %6716 = vmatprep.subr.bf16.mxu1 %v10314_v48  ;;  %v10381_v42 = vld [vmem:[%s11485_s5 + $0x10] sm:$0xff]   ;;  %v10383_v48 = vld [vmem:[%s11485_s5 + $0x58] sm:$0xff]  }
 0x380   :  { %v10382_v28 = vld [vmem:[%s11485_s5 + $0x90] sm:$0xff]  }
 0x382   :  { %6225 = vmatpush1.bf16.msra.mxu0 %v10309_v49  ;;  %6717 = vmatpush1.bf16.msra.mxu1 %v10312_v50  ;;  %v10384_v49 = vld [vmem:[%s11485_s5 + $0xd8] sm:$0xff]  }
 0x383   :  { %6226 = vmatprep.subr.bf16.mxu0 %v10317_v51  ;;  %6718 = vmatprep.subr.bf16.mxu1 %v10320_v52  ;;  %v10385_v50 = vld [vmem:[%s11485_s5 + $0x18] sm:$0xff]   ;;  %v10460_v51 = vpop.eup %10459 }
 0x384   :  { %v10386_v52 = vld [vmem:[%s11485_s5 + $0x98] sm:$0xff]  }
 0x386   :  { %6227 = vmatpush1.bf16.msra.mxu0 %v10315_v53  ;;  %6719 = vmatpush1.bf16.msra.mxu1 %v10318_v36  ;;  %v10387_v53 = vld [vmem:[%s11485_s5 + $0x60] sm:$0xff]   ;;  %v10462_v36 = vpop.eup %10461 }
 0x387   :  { %6228 = vmatprep.subr.bf16.mxu0 %v10323_v55  ;;  %6720 = vmatprep.subr.bf16.mxu1 %v10326_v56  ;;  %v10388_v55 = vld [vmem:[%s11485_s5 + $0xe0] sm:$0xff]   ;;  %v1037_v56 = vadd.f32 1.0, %v10460_v51 }
 0x389   :  { %10463 = vrcp.f32 %v1037_v56 }
 0x38a   :  { %6229 = vmatpush1.bf16.msra.mxu0 %v10321_v58  ;;  %6721 = vmatpush1.bf16.msra.mxu1 %v10324_v59  ;;  %v1039_v58 = vadd.f32 1.0, %v10462_v36  ;;  %v10390_v59 = vld [vmem:[%s11485_s5 + $0xa0] sm:$0xff]  }
 0x38b   :  { %6230 = vmatprep.subr.bf16.mxu0 %v10329_v61  ;;  %6722 = vmatprep.subr.bf16.mxu1 %v10332_v62  ;;  %v10392_v61 = vld [vmem:[%s11485_s5 + $0xe8] sm:$0xff]  }
 0x38c   :  { %v10393_v62 = vld [vmem:[%s11485_s5 + $0x28] sm:$0xff]   ;;  %10465 = vrcp.f32 %v1039_v58 }
 0x38e   :  { %6231 = vmatpush1.bf16.msra.mxu0 %v10327_v63  ;;  %6723 = vmatpush1.bf16.msra.mxu1 %v10330_v0  ;;  %v10394_v63 = vld [vmem:[%s11485_s5 + $0xa8] sm:$0xff]   ;;  %v10395_v0 = vld [vmem:[%s11485_s5 + $0x70] sm:$0xff]  }
 0x38f   :  { %6232 = vmatprep.subr.bf16.mxu0 %v10335_v1  ;;  %6724 = vmatprep.subr.bf16.mxu1 %v10338_v45  ;;  %v10396_v1 = vld [vmem:[%s11485_s5 + $0xf0] sm:$0xff]  }
 0x390   :  { %v10397_v45 = vld [vmem:[%s11485_s5 + $0x30] sm:$0xff]  }
 0x392   :  { %6233 = vmatpush1.bf16.msra.mxu0 %v10333_v2  ;;  %6725 = vmatpush1.bf16.msra.mxu1 %v10336_v54  ;;  %v10398_v2 = vld [vmem:[%s11485_s5 + $0xb0] sm:$0xff]   ;;  %v10399_v54 = vld [vmem:[%s11485_s5 + $0x78] sm:$0xff]  }
 0x393   :  { %6234 = vmatprep.subr.bf16.mxu0 %v10341_v46  ;;  %6726 = vmatprep.subr.bf16.mxu1 %v10344_v3  ;;  %v10400_v46 = vld [vmem:[%s11485_s5 + $0xf8] sm:$0xff]  }
 0x394   :  { %v10401_v3 = vld [vmem:[%s11485_s5 + $0x38] sm:$0xff]  }
 0x396   :  { %6235 = vmatpush1.bf16.msra.mxu0 %v10339_v5  ;;  %6727 = vmatpush1.bf16.msra.mxu1 %v10342_v6  ;;  %v10402_v5 = vld [vmem:[%s11485_s5 + $0xb8] sm:$0xff]   ;;  %v10403_v6 = vld [vmem:[%s11484_s4 + $0x40] sm:$0xff]  }
 0x397   :  { %6236 = vmatprep.subr.bf16.mxu0 %v10347_v7  ;;  %6728 = vmatprep.subr.bf16.mxu1 %v10350_v8  ;;  %v10464_v7 = vpop.eup %10463  ;;  %v10404_v8 = vld [vmem:[%s11484_s4 + $0xc0] sm:$0xff]  }
 0x398   :  { %v10466_v9 = vpop.eup %10465  ;;  %v6792_v47 = vpack.c.bf16 %v10464_v7, %v10464_v7 }
 0x39a   :  { %6237 = vmatpush1.bf16.msra.mxu0 %v10345_v10  ;;  %6729 = vmatpush1.bf16.msra.mxu1 %v10348_v13  ;;  %v6794_v10 = vpack.c.bf16 %v10466_v9, %v10466_v9  ;;  %v10405_v13 = vld [vmem:[%s11484_s4] sm:$0xff]  }
 0x39b   :  { %6238 = vmatprep.subr.bf16.mxu0 %v10353_v16  ;;  %6730 = vmatprep.subr.bf16.mxu1 %v10356_v18  ;;  %v10407_v16 = vld [vmem:[%s11484_s4 + $0x48] sm:$0xff]  }
 0x39c   :  { %v10408_v18 = vld [vmem:[%s11484_s4 + $0xc8] sm:$0xff]  }
 0x39e   :  { %6239 = vmatpush1.bf16.msra.mxu0 %v10351_v4  ;;  %6731 = vmatpush1.bf16.msra.mxu1 %v10354_v20  ;;  %v10410_v4 = vld [vmem:[%s11484_s4 + $0x88] sm:$0xff]   ;;  %v10411_v20 = vld [vmem:[%s11484_s4 + $0x50] sm:$0xff]  }
 0x39f   :  { %6240 = vmatprep.subr.bf16.mxu0 %v10359_v21  ;;  %6732 = vmatprep.subr.bf16.mxu1 %v10362_v22  ;;  %v10412_v21 = vld [vmem:[%s11484_s4 + $0xd0] sm:$0xff]  }
 0x3a0   :  { %v10413_v22 = vld [vmem:[%s11484_s4 + $0x10] sm:$0xff]  }
 0x3a2   :  { %6241 = vmatpush1.bf16.msra.mxu0 %v10357_v23  ;;  %6733 = vmatpush1.bf16.msra.mxu1 %v10360_v24  ;;  %v10414_v23 = vld [vmem:[%s11484_s4 + $0x90] sm:$0xff]   ;;  %v10415_v24 = vld [vmem:[%s11484_s4 + $0x58] sm:$0xff]  }
 0x3a3   :  { %6242 = vmatprep.subr.bf16.mxu0 %v10365_v25  ;;  %6734 = vmatprep.subr.bf16.mxu1 %v10368_v12  ;;  %v10416_v25 = vld [vmem:[%s11484_s4 + $0xd8] sm:$0xff]  }
 0x3a4   :  { %v10417_v12 = vld [vmem:[%s11484_s4 + $0x18] sm:$0xff]  }
 0x3a6   :  { %6243 = vmatpush1.bf16.msra.mxu0 %v10363_v17  ;;  %6735 = vmatpush1.bf16.msra.mxu1 %v10366_v26  ;;  %v10418_v17 = vld [vmem:[%s11484_s4 + $0x98] sm:$0xff]   ;;  %v10419_v26 = vld [vmem:[%s11484_s4 + $0x60] sm:$0xff]  }
 0x3a7   :  { %8749 = vmatprep.subr.bf16.mxu0 %v10371_v27  ;;  %8771 = vmatprep.subr.bf16.mxu1 %v10372_v29  ;;  %v10420_v27 = vld [vmem:[%s11484_s4 + $0xe0] sm:$0xff]  }
 0x3a8   :  { %v10421_v29 = vld [vmem:[%s11484_s4 + $0x20] sm:$0xff]  }
 0x3a9   :  { %6245 = vmatmul.mubr.bf16.vlgmr.msra.gmra.mrb[4].mxu0 %v7892_v32  ;;  %6737 = vmatmul.mubr.bf16.vlgmr.msra.gmra.mrb[4].mxu1 %v7892_v32  ;;  %v10424_v32 = vld [vmem:[%s11484_s4 + $0xe8] sm:$0xff]  }
 0x3aa   :  { %8750 = vmatpush3.bf16.msra.mxu0 %v10373_v35  ;;  %7148 = vmatprep.mubr.bf16.mxu0 %v6793_v37  ;;  %v10427_v35 = vld [vmem:[%s11484_s4 + $0x70] sm:$0xff]  }
 0x3ab   :  { %8772 = vmatpush3.bf16.msra.mxu1 %v10374_v19  ;;  %7188 = vmatprep.mubr.bf16.mxu1 %v6795_v14  ;;  %v10428_v19 = vld [vmem:[%s11484_s4 + $0xf0] sm:$0xff]   ;;  %v10432_v14 = vld [vmem:[%s11484_s4 + $0xf8] sm:$0xff]  }
 0x3ac   :  { %8751 = vmatprep.subr.bf16.mxu0 %v10375_v43  ;;  %8773 = vmatprep.subr.bf16.mxu1 %v10376_v44  ;;  %v10429_v37 = vld [vmem:[%s11484_s4 + $0x30] sm:$0xff]   ;;  %v10431_v44 = vld [vmem:[%s11484_s4 + $0x78] sm:$0xff]  }
 0x3ad   :  { %v10430_v43 = vld [vmem:[%s11484_s4 + $0xb0] sm:$0xff]  }
 0x3ae   :  { %8752 = vmatpush3.bf16.msra.mxu0 %v10377_v38  ;;  %v10433_v38 = vld [vmem:[%s11484_s4 + $0x38] sm:$0xff]  }
 0x3af   :  { %8774 = vmatpush3.bf16.msra.mxu1 %v10378_v39  ;;  %8753 = vmatprep.subr.bf16.mxu0 %v10379_v40  ;;  %v10434_v39 = vld [vmem:[%s11484_s4 + $0xb8] sm:$0xff]   ;;  %v10583_v40 = vmov 0.0  }
 0x3b0   :  { %8775 = vmatprep.subr.bf16.mxu1 %v10380_v41 }
 0x3b2   :  { %8754 = vmatpush3.bf16.msra.mxu0 %v10381_v42 }
 0x3b3   :  { %8776 = vmatpush3.bf16.msra.mxu1 %v10382_v28  ;;  %8755 = vmatprep.subr.bf16.mxu0 %v10383_v48 }
 0x3b4   :  { %8777 = vmatprep.subr.bf16.mxu1 %v10384_v49 }
 0x3b6   :  { %8756 = vmatpush3.bf16.msra.mxu0 %v10385_v50 }
 0x3b7   :  { %8778 = vmatpush3.bf16.msra.mxu1 %v10386_v52  ;;  %8757 = vmatprep.subr.bf16.mxu0 %v10387_v53 }
 0x3b8   :  { %8779 = vmatprep.subr.bf16.mxu1 %v10388_v55 }
 0x3ba   :  { %8758 = vmatpush3.bf16.msra.mxu0 %v10389_v57 }
 0x3bb   :  { %8780 = vmatpush3.bf16.msra.mxu1 %v10390_v59  ;;  %8759 = vmatprep.subr.bf16.mxu0 %v10391_v60 }
 0x3bc   :  { %8781 = vmatprep.subr.bf16.mxu1 %v10392_v61 }
 0x3be   :  { %8760 = vmatpush3.bf16.msra.mxu0 %v10393_v62 }
 0x3bf   :  { %8782 = vmatpush3.bf16.msra.mxu1 %v10394_v63  ;;  %8761 = vmatprep.subr.bf16.mxu0 %v10395_v0 }
 0x3c0   :  { %8783 = vmatprep.subr.bf16.mxu1 %v10396_v1 }
 0x3c2   :  { %8762 = vmatpush3.bf16.msra.mxu0 %v10397_v45 }
 0x3c3   :  { %8784 = vmatpush3.bf16.msra.mxu1 %v10398_v2  ;;  %8763 = vmatprep.subr.bf16.mxu0 %v10399_v54 }
 0x3c4   :  { %8785 = vmatprep.subr.bf16.mxu1 %v10400_v46 }
 0x3c6   :  { %8764 = vmatpush3.bf16.msra.mxu0 %v10401_v3  ;;  %v10435_v3 = vld [vmem:[%s11487_s7] sm:$0xff]  }
 0x3c7   :  { %8786 = vmatpush3.bf16.msra.mxu1 %v10402_v5  ;;  %8793 = vmatprep.subr.bf16.mxu0 %v10403_v6 }
 0x3c8   :  { %8815 = vmatprep.subr.bf16.mxu1 %v10404_v8 }
 0x3c9   :  { %7149 = vmatmul.mubr.bf16.vlgmr.msra.gmra.mrb[8].mxu0 %v6792_v47 }
 0x3ca   :  { %7189 = vmatmul.mubr.bf16.vlgmr.msra.gmra.mrb[8].mxu1 %v6794_v10  ;;  %8794 = vmatpush3.bf16.msra.mxu0 %v10405_v13  ;;  %v10436_v10 = vld [vmem:[%s11487_s7 + $0x8] sm:$0xff]  }
 0x3cb   :  { %8816 = vmatpush3.bf16.msra.mxu1 %v10406_v15  ;;  %8795 = vmatprep.subr.bf16.mxu0 %v10407_v16 }
 0x3cc   :  { %8817 = vmatprep.subr.bf16.mxu1 %v10408_v18 }
 0x3ce   :  { %8796 = vmatpush3.bf16.msra.mxu0 %v10409_v11 }
 0x3cf   :  { %8818 = vmatpush3.bf16.msra.mxu1 %v10410_v4  ;;  %8797 = vmatprep.subr.bf16.mxu0 %v10411_v20 }
 0x3d0   :  { %8819 = vmatprep.subr.bf16.mxu1 %v10412_v21 }
 0x3d2   :  { %8798 = vmatpush3.bf16.msra.mxu0 %v10413_v22  ;;  %v10437_v22 = vld [vmem:[%s11487_s7 + $0x10] sm:$0xff]  }
 0x3d3   :  { %8820 = vmatpush3.bf16.msra.mxu1 %v10414_v23  ;;  %8799 = vmatprep.subr.bf16.mxu0 %v10415_v24  ;;  %v10438_v23 = vld [vmem:[%s11487_s7 + $0x18] sm:$0xff]   ;;  %v10439_v24 = vld [vmem:[%s11487_s7 + $0x20] sm:$0xff]  }
 0x3d4   :  { %8821 = vmatprep.subr.bf16.mxu1 %v10416_v25  ;;  %v10440_v25 = vld [vmem:[%s11487_s7 + $0x28] sm:$0xff]  }
 0x3d6   :  { %8800 = vmatpush3.bf16.msra.mxu0 %v10417_v12  ;;  %v10441_v12 = vld [vmem:[%s11487_s7 + $0x30] sm:$0xff]  }
 0x3d7   :  { %8822 = vmatpush3.bf16.msra.mxu1 %v10418_v17  ;;  %8801 = vmatprep.subr.bf16.mxu0 %v10419_v26  ;;  %v10442_v17 = vld [vmem:[%s11487_s7 + $0x38] sm:$0xff]   ;;  %v10443_v26 = vld [vmem:[%s11489_s9] sm:$0xff]  }
 0x3d8   :  { %8823 = vmatprep.subr.bf16.mxu1 %v10420_v27  ;;  %v10444_v27 = vld [vmem:[%s11489_s9 + $0x8] sm:$0xff]  }
 0x3da   :  { %8802 = vmatpush3.bf16.msra.mxu0 %v10421_v29  ;;  %v10445_v29 = vld [vmem:[%s11489_s9 + $0x10] sm:$0xff]  }
 0x3db   :  { %8824 = vmatpush3.bf16.msra.mxu1 %v10422_v30  ;;  %8803 = vmatprep.subr.bf16.mxu0 %v10423_v31  ;;  %v10446_v30 = vld [vmem:[%s11489_s9 + $0x18] sm:$0xff]   ;;  %v10447_v31 = vld [vmem:[%s11489_s9 + $0x20] sm:$0xff]  }
 0x3dc   :  { %8825 = vmatprep.subr.bf16.mxu1 %v10424_v32  ;;  %v10448_v32 = vld [vmem:[%s11489_s9 + $0x28] sm:$0xff]  }
 0x3de   :  { %8804 = vmatpush3.bf16.msra.mxu0 %v10425_v33 }
 0x3df   :  { %8826 = vmatpush3.bf16.msra.mxu1 %v10426_v34  ;;  %8805 = vmatprep.subr.bf16.mxu0 %v10427_v35 }
 0x3e0   :  { %8827 = vmatprep.subr.bf16.mxu1 %v10428_v19 }
 0x3e2   :  { %8806 = vmatpush3.bf16.msra.mxu0 %v10429_v37 }
 0x3e3   :  { %8828 = vmatpush3.bf16.msra.mxu1 %v10430_v43  ;;  %8807 = vmatprep.subr.bf16.mxu0 %v10431_v44 }
 0x3e4   :  { %8829 = vmatprep.subr.bf16.mxu1 %v10432_v14 }
 0x3e6   :  { %8808 = vmatpush3.bf16.msra.mxu0 %v10433_v38 }
 0x3e7   :  { %8830 = vmatpush3.bf16.msra.mxu1 %v10434_v39  ;;  %8855 = vmatprep.subr.bf16.mxu0 %v10583_v40 }
 0x3e8   :  { %8875 = vmatprep.subr.bf16.mxu1 %v10583_v40 }
 0x47c   :  { %v6246_v41 = vpop.f32.mrb[4].mxu0  ;;  %v6738_v42 = vpop.f32.mrb[4].mxu1 }
 0x47d   :  { %v8662_v28 = vmul.f32 -1.442695, %v6246_v41  ;;  %v8664_v48 = vmul.f32 -1.442695, %v6738_v42  ;;  %v6248_v49 = vpop.f32.mrb[5].mxu0  ;;  %v6740_v50 = vpop.f32.mrb[5].mxu1 }
 0x47e   :  { %v8663_v51 = vmul.f32 -1.442695, %v6248_v49  ;;  %v8665_v52 = vmul.f32 -1.442695, %v6740_v50  ;;  %v6250_v53 = vpop.f32.mrb[6].mxu0  ;;  %v6742_v36 = vpop.f32.mrb[6].mxu1 }
 0x47f   :  { %10467 = vpow2.f32 %v8662_v28  ;;  %v6251_v55 = vpop.f32.mrb[7].mxu0  ;;  %v6743_v56 = vpop.f32.mrb[7].mxu1  ;;  %v8730_v42 = vld [vmem:[#allocation7] ss:$0 sm:$0xff] }
 0x480   :  { %10469 = vpow2.f32 %v8664_v48  ;;  %v8731_v53 = vld [vmem:[%s11488_s8] ss:$0 sm:$0xff] }
 0x481   :  { %10471 = vpow2.f32 %v8663_v51  ;;  %v10449_v51 = vld [vmem:[%s11489_s9 + $0x30] sm:$0xff]  }
 0x482   :  { %10473 = vpow2.f32 %v8665_v52  ;;  %v10450_v52 = vld [vmem:[%s11489_s9 + $0x38] sm:$0xff]  }
 0x489   :  { %v10468_v57 = vpop.eup %10467 }
 0x48a   :  { %v10470_v58 = vpop.eup %10469  ;;  %v6772_v59 = vadd.f32 1.0, %v10468_v57 }
 0x48b   :  { %v10472_v60 = vpop.eup %10471  ;;  %v6774_v61 = vadd.f32 1.0, %v10470_v58 }
 0x48c   :  { %v10474_v62 = vpop.eup %10473  ;;  %10475 = vrcp.f32 %v6772_v59  ;;  %v6773_v63 = vadd.f32 1.0, %v10472_v60 }
 0x48d   :  { %10477 = vrcp.f32 %v6774_v61  ;;  %v6775_v0 = vadd.f32 1.0, %v10474_v62 }
 0x48e   :  { %10479 = vrcp.f32 %v6773_v63 }
 0x48f   :  { %10481 = vrcp.f32 %v6775_v0 }
 0x496   :  { %v10476_v1 = vpop.eup %10475 }
 0x497   :  { %v10478_v45 = vpop.eup %10477  ;;  %v6784_v5 = vpack.c.bf16 %v10476_v1, %v10476_v1 }
 0x498   :  { %v10480_v2 = vpop.eup %10479  ;;  %v6786_v7 = vpack.c.bf16 %v10478_v45, %v10478_v45 }
 0x499   :  { %v10482_v54 = vpop.eup %10481  ;;  %v6785_v46 = vpack.c.bf16 %v10480_v2, %v10480_v2 }
 0x49a   :  { %v6787_v6 = vpack.c.bf16 %v10482_v54, %v10482_v54 }
 0x49b   :  { %7420 = vmatprep.mubr.bf16.mxu0 %v6785_v46 }
 0x49c   :  { %7460 = vmatprep.mubr.bf16.mxu1 %v6787_v6  ;;  %7421 = vmatmul.mubr.bf16.vlgmr.msra.gmra.mrb[12].mxu0 %v6784_v5  ;;  %v8765_v8 = vpop.f32.mrb[8].mxu0 }
 0x49d   :  { %7461 = vmatmul.mubr.bf16.vlgmr.msra.gmra.mrb[12].mxu1 %v6786_v7  ;;  %v8787_v9 = vpop.f32.mrb[8].mxu1  ;;  %v8766_v47 = vpop.f32.mrb[9].mxu0  ;;  %8856 = vmatpush3.bf16.msra.mxu0 %v10435_v3 }
 0x49e   :  { %v8767_v13 = vadd.f32 %v8766_v47, %v8765_v8  ;;  %v8788_v15 = vpop.f32.mrb[9].mxu1  ;;  %v8768_v16 = vpop.f32.mrb[10].mxu0  ;;  %8857 = vmatprep.subr.bf16.mxu0 %v10583_v40  ;;  %8871 = vmatprep.mubr.msk.bf16.mxu0 %vm10584_vm0, %v10583_v40 }
 0x49f   :  { %v8789_v18 = vadd.f32 %v8788_v15, %v8787_v9  ;;  %v8790_v11 = vpop.f32.mrb[10].mxu1  ;;  %v8769_v4 = vpop.f32.mrb[11].mxu0  ;;  %8891 = vmatprep.mubr.msk.bf16.mxu1 %vm10584_vm0, %v10583_v40  ;;  %8876 = vmatpush3.bf16.msra.mxu1 %v10443_v26 }
 0x4a0   :  { %v8791_v20 = vpop.f32.mrb[11].mxu1  ;;  %8877 = vmatprep.subr.bf16.mxu1 %v10583_v40 }
 0x4a1   :  { %v7191_v21 = vadd.f32 %v8789_v18, %v8767_v13  ;;  %8858 = vmatpush3.bf16.msra.mxu0 %v10436_v10 }
 0x4a2   :  { %8859 = vmatprep.subr.bf16.mxu0 %v10583_v40 }
 0x4a3   :  { %8878 = vmatpush3.bf16.msra.mxu1 %v10444_v27 }
 0x4a4   :  { %8879 = vmatprep.subr.bf16.mxu1 %v10583_v40 }
 0x4a5   :  { %8860 = vmatpush3.bf16.msra.mxu0 %v10437_v22 }
 0x4a6   :  { %8861 = vmatprep.subr.bf16.mxu0 %v10583_v40 }
 0x4a7   :  { %8880 = vmatpush3.bf16.msra.mxu1 %v10445_v29 }
 0x4a8   :  { %8881 = vmatprep.subr.bf16.mxu1 %v10583_v40 }
 0x4a9   :  { %8862 = vmatpush3.bf16.msra.mxu0 %v10438_v23 }
 0x4aa   :  { %8863 = vmatprep.subr.bf16.mxu0 %v10583_v40 }
 0x4ab   :  { %8882 = vmatpush3.bf16.msra.mxu1 %v10446_v30 }
 0x4ac   :  { %8883 = vmatprep.subr.bf16.mxu1 %v10583_v40 }
 0x4ad   :  { %8864 = vmatpush3.bf16.msra.mxu0 %v10439_v24 }
 0x4ae   :  { %8865 = vmatprep.subr.bf16.mxu0 %v10583_v40 }
 0x4af   :  { %8884 = vmatpush3.bf16.msra.mxu1 %v10447_v31 }
 0x4b0   :  { %8885 = vmatprep.subr.bf16.mxu1 %v10583_v40 }
 0x4b1   :  { %8866 = vmatpush3.bf16.msra.mxu0 %v10440_v25 }
 0x4b2   :  { %8867 = vmatprep.subr.bf16.mxu0 %v10583_v40 }
 0x4b3   :  { %8886 = vmatpush3.bf16.msra.mxu1 %v10448_v32 }
 0x4b4   :  { %8887 = vmatprep.subr.bf16.mxu1 %v10583_v40 }
 0x4b5   :  { %8868 = vmatpush3.bf16.msra.mxu0 %v10441_v12 }
 0x4b6   :  { %8869 = vmatprep.subr.bf16.mxu0 %v10583_v40 }
 0x4b7   :  { %8888 = vmatpush3.bf16.msra.mxu1 %v10449_v51 }
 0x4b8   :  { %8889 = vmatprep.subr.bf16.mxu1 %v10583_v40 }
 0x4b9   :  { %8870 = vmatpush3.bf16.msra.mxu0 %v10442_v17 }
 0x4bb   :  { %8890 = vmatpush3.bf16.msra.mxu1 %v10450_v52 }
 0x56f   :  { %v8809_v33 = vpop.f32.mrb[12].mxu0 }
 0x570   :  { %v8831_v34 = vpop.f32.mrb[12].mxu1  ;;  %v8810_v35 = vpop.f32.mrb[13].mxu0 }
 0x571   :  { %v8811_v19 = vadd.f32 %v8810_v35, %v8809_v33  ;;  %v8832_v37 = vpop.f32.mrb[13].mxu1  ;;  %v8812_v43 = vpop.f32.mrb[14].mxu0 }
 0x572   :  { %v8833_v44 = vadd.f32 %v8832_v37, %v8831_v34  ;;  %v8834_v14 = vpop.f32.mrb[14].mxu1  ;;  %v8813_v38 = vpop.f32.mrb[15].mxu0 }
 0x573   :  { %v7423_v39 = vadd.f32 %v8811_v19, %v7191_v21  ;;  %v8835_v41 = vpop.f32.mrb[15].mxu1 }
 0x575   :  { %v7463_v28 = vadd.f32 %v8833_v44, %v7423_v39 }
 0x577   :  { %v7475_v48 = vadd.f32 %v8730_v42, %v7463_v28 }
 0x579   :  { %v7476_v49 = vmax.f32 %v7475_v48, 0.0 }
 0x57b   :  { %v7477_v50 = vpack.c.bf16 %v7476_v49, %v7476_v49 }
 0x57d   :  { %8872 = vmatmul.mubr.bf16.vlgmr.msra.gmra.mrb[16].mxu0 %v7477_v50 }
 0x650   :  { %v7583_v36 = vpop.f32.mrb[16].mxu0 }
 0x651   :  { %v7584_v55 = vadd.f32 %v8731_v53, %v7583_v36  ;;  %v8873_v56 = vpop.f32.mrb[17].mxu0 }
 0x652   :  { %v7586_v57 = vpop.f32.mrb[18].mxu0 }
 0x653   :  { %v7589_v58 = vmax.f32 %v7584_v55, 0.0  ;;  %v8874_v59 = vpop.f32.mrb[19].mxu0 }
 0x655   :  { %v7590_v60 = vpack.c.bf16 %v7589_v58, %v7589_v58  ;;  %7703 = vst [vmem:[#allocation10] sm:$0xff] %v7589_v58 }
 0x657   :  { %8892 = vmatmul.mubr.bf16.vlgmr.msra.gmra.mrb[16].mxu1 %v7590_v60 }
 0x658   :  { %10538 = shalt.err (!%p10535_p6)
}
 0x659   :  { %s10539_s26 = scalar_lea.hbm %s11492_s12, 128 }
 0x65a   :  { %p10540_p7 = scmp.ne.s32.totalorder %s11492_s12, %s10539_s26  ;;  %p10543_p8 = scmp.lt.u32.totalorder %s10539_s26, %s11492_s12 }
 0x65c   :  { %p10545_p9 = pnand %p10543_p8, %p10540_p7 }
 0x65e   :  { %10548 = shalt.err (!%p10545_p9)
}
 0x65f   :  { %7723 = dma.vmem_to_hbm [thread:$0]  %s7721_s24, 128, %s11492_s12, [#allocation11]   ;;  %v8740_v40 = vld [vmem:[%s11490_s10] ss:$0 sm:$0xff] }
 0x660   :  { %s10586_s30 = smov [#allocation9]  }
 0x661   :  { %s7710_s7 = sshll.u32 %s10586_s30, 4  ;;  %s7711_s7 = int_to_ptr.vmem [resolvable:$true] %s7710_s7 }
 0x662   :  { %s10549_s13 = scalar_lea.vmem %s7711_s7, 128  ;;  %p10554_p11 = scmp.lt.s32.totalorder %s7711_s7, %s7711_s7 }
 0x663   :  { %p10550_p10 = scmp.ne.s32.totalorder %s7711_s7, %s10549_s13  ;;  %p10555_p12 = scmp.lt.s32.totalorder %s10549_s13, %s10549_s13 }
 0x665   :  { %p10556_p13 = por %p10555_p12, %p10554_p11 }
 0x667   :  { %p10557_p0 = pnand %p10556_p13, %p10550_p10 }
 0x72a   :  { %v7696_v61 = vpop.f32.mrb[16].mxu1 }
 0x72b   :  { %v7697_v62 = vadd.f32 %v8740_v40, %v7696_v61  ;;  %v8893_v63 = vpop.f32.mrb[17].mxu1 }
 0x72c   :  { %v7699_v0 = vpop.f32.mrb[18].mxu1 }
 0x72d   :  { %7702 = vst [vmem:[#allocation9] sm:$0xff] %v7697_v62  ;;  %v8894_v1 = vpop.f32.mrb[19].mxu1 }
 0x72e   :  { %10560 = shalt.err (!%p10557_p0)
}
 0x72f   :  { %s10561_s10 = scalar_lea.hbm %s11491_s11, 128 }
 0x730   :  { %p10562_p1 = scmp.ne.s32.totalorder %s11491_s11, %s10561_s10  ;;  %p10565_p2 = scmp.lt.u32.totalorder %s10561_s10, %s11491_s11 }
 0x732   :  { %p10567_p3 = pnand %p10565_p2, %p10562_p1 }
 0x734   :  { %10570 = shalt.err (!%p10567_p3)
}
 0x735   :  { %7713 = dma.vmem_to_hbm [thread:$0]  %s7711_s7, 128, %s11491_s11, [#allocation6]  }
 0x736   :  { %10575 = dma.done.wait [#allocation6], 128  }
 0x737   :  { %10576 = vsyncadd [#allocation6], 4294967168 }
 0x738   :  { %10577 = dma.done.wait [#allocation11], 128  }
 0x739   :  { %10578 = vsyncadd [#allocation11], 4294967168 }
 0x73a   :  { %7730 = vsyncpa [#allocation5], 1 }
 0x73b   :  { %7731 = vsyncpa [#allocation8], 1 }
 0x73c   :  { %7732 = vsyncpa [#allocation6], 1 }
 0x73d   :  { %7733 = vsyncpa [#allocation11], 1 }

</bundles_post_ra>
